<compile_context>
chip_gen: v7x
topology: tpu7x:2x2x1
jax: 0.10.0
libtpu: 0.0.40
codegen_flags: <defaults>
</compile_context>

<pallas_src>
import jax
import jax.numpy as jnp
from jax.experimental import pallas as pl
from jax.experimental.pallas import tpu as pltpu

HP = 128      # hidden padded so each gate owns one full 128-lane block
OUTP = 128    # lane-dense output slab width (sliced to dim_z in the wrapper)


# ----------------------------------------------------------------------------
# Kernel
# ----------------------------------------------------------------------------
def _make_encoder_kernel(n_layers: int, seq_len: int, batch_p: int, hp: int):
    def kernel(*refs):
        # refs layout:
        #   x2d                                    (T*BP, D_in)   time-major
        #   layer 0 : w_ih (D_in, 3hp), b_gi (1, 3hp), w_hh (hp, 3hp), b_hn (1, hp)
        #   layer l>=1: w_ih (hp, 3hp), w_hh (hp, 3hp), b_gi (1, 3hp), b_hn (1, hp)
        #   fc_w (hp, OUTP), fc_b (1, OUTP)
        #   out_ref (BP, OUTP)
        idx = 0
        x_ref = refs[idx]; idx += 1
        w_ih0_ref, b_gi0_ref, w_hh0_ref, b_hn0_ref = refs[idx:idx + 4]; idx += 4
        upper = []
        for _ in range(n_layers - 1):
            upper.append(tuple(refs[idx:idx + 4])); idx += 4
        fc_w_ref, fc_b_ref = refs[idx:idx + 2]; idx += 2
        out_ref = refs[idx]

        BP = batch_p

        # ------------------------------------------------------------------
        # Hoisted layer-0 input projection: one matmul covering all timesteps
        # (removes T MXU dots from the serial recurrence chain).  Combined
        # r/z bias (b_ih + b_hh) and the n-gate b_ih are already folded in.
        # ------------------------------------------------------------------
        gi0_all = (
            jnp.dot(x_ref[...], w_ih0_ref[...],
                    preferred_element_type=jnp.float32)
            + b_gi0_ref[...]
        )                                                   # (T*BP, 3hp)

        # Hoisted bias broadcasts (outside the unrolled loop).
        b_hn0_b = jnp.broadcast_to(b_hn0_ref[...], (BP, hp))
        upper_w = []
        upper_b = []
        for (w_ih_ref, w_hh_ref, b_gi_ref, b_hn_ref) in upper:
            upper_w.append((w_ih_ref, w_hh_ref))
            upper_b.append((jnp.broadcast_to(b_gi_ref[...], (BP, 3 * hp)),
                            jnp.broadcast_to(b_hn_ref[...], (BP, hp))))

        def gates(gi, gh, b_hn_b, h):
            # lane-aligned gate blocks: [0:hp]=r, [hp:2hp]=z, [2hp:3hp]=n
            # sigmoid(x) = 0.5*(1 + tanh(0.5*x)) -> single EUP op per gate
            r = 0.5 + 0.5 * jnp.tanh(0.5 * (gi[:, 0:hp] + gh[:, 0:hp]))
            z = 0.5 + 0.5 * jnp.tanh(0.5 * (gi[:, hp:2 * hp] + gh[:, hp:2 * hp]))
            n = jnp.tanh(gi[:, 2 * hp:3 * hp] + r * (gh[:, 2 * hp:3 * hp] + b_hn_b))
            # (1-z)*n + z*h  ==  n + z*(h - n)   (one fewer multiply)
            return n + z * (h - n)

        hs = [jnp.zeros((BP, hp), jnp.float32) for _ in range(n_layers)]

        # Fully-unrolled time loop (short, fixed trip count) walking the
        # original sequence backwards  ==  torch.flip(x, [1]) + forward GRU.
        for i in range(seq_len):
            t = seq_len - 1 - i

            # --- layer 0: only the recurrent dot remains on the chain ------
            gi0 = gi0_all[t * BP:(t + 1) * BP, :]           # (8,128)-aligned
            gh0 = jnp.dot(hs[0], w_hh0_ref[...],
                          preferred_element_type=jnp.float32)
            hs[0] = gates(gi0, gh0, b_hn0_b, hs[0])

            # --- layers >= 1: two K=128 dots (no structural-zero weights) ---
            for l in range(1, n_layers):
                w_ih_ref, w_hh_ref = upper_w[l - 1]
                b_gi_b, b_hn_b = upper_b[l - 1]
                gi = (jnp.dot(hs[l - 1], w_ih_ref[...],
                              preferred_element_type=jnp.float32) + b_gi_b)
                gh = jnp.dot(hs[l], w_hh_ref[...],
                             preferred_element_type=jnp.float32)
                hs[l] = gates(gi, gh, b_hn_b, hs[l])

        # Final Linear on the top-layer hidden after the last step
        # ( == GRU output[:, -1, :] ).  Lane-dense (BP, OUTP) store.
        out_ref[...] = (
            jnp.dot(hs[-1], fc_w_ref[...], preferred_element_type=jnp.float32)
            + fc_b_ref[...]
        )

    return kernel


# ----------------------------------------------------------------------------
# Wrapper: weight packing (gate-aligned 128-lane blocks, bias folding) + call
# ----------------------------------------------------------------------------
def _gate_pad_cols(w_t, H, hp):
    """(in_dim, 3H) -> (in_dim, 3*hp); gate g occupies columns [g*hp, g*hp+H)."""
    in_dim = w_t.shape[0]
    out = jnp.zeros((in_dim, 3 * hp), jnp.float32)
    for g in range(3):
        out = out.at[:, g * hp:g * hp + H].set(w_t[:, g * H:(g + 1) * H])
    return out


def _gate_pad_bias(b3h, H, hp):
    out = jnp.zeros((3 * hp,), jnp.float32)
    for g in range(3):
        out = out.at[g * hp:g * hp + H].set(b3h[g * H:(g + 1) * H])
    return out


def _pad_rows(w, rows):
    out = jnp.zeros((rows, w.shape[1]), jnp.float32)
    return out.at[:w.shape[0], :].set(w)


def _pack_layer(w_ih, w_hh, b_ih, b_hh, H, hp):
    """Lane-aligned gate blocks; r/z biases pre-summed (b_ih + b_hh); the
    n-gate keeps b_hh separate (it is multiplied by r in the cell)."""
    w_ih_p = _gate_pad_cols(jnp.asarray(w_ih, jnp.float32).T, H, hp)
    w_hh_p = _pad_rows(_gate_pad_cols(jnp.asarray(w_hh, jnp.float32).T, H, hp), hp)
    b_ih = jnp.asarray(b_ih, jnp.float32)
    b_hh = jnp.asarray(b_hh, jnp.float32)
    b_comb = jnp.concatenate(
        [b_ih[:H] + b_hh[:H], b_ih[H:2 * H] + b_hh[H:2 * H], b_ih[2 * H:]])
    b_gi = _gate_pad_bias(b_comb, H, hp)[None, :]                       # (1, 3hp)
    b_hn = jnp.zeros((hp,), jnp.float32).at[:H].set(b_hh[2 * H:])[None, :]
    return w_ih_p, w_hh_p, b_gi, b_hn


def encoder_forward(x, gru_params, fc_w, fc_b):
    """x: (B, T, D_in) float32 — same convention as the PyTorch module."""
    B, T, D_in = x.shape
    H = gru_params[0][1].shape[1]      # w_hh has shape (3H, H)
    dim_z = fc_w.shape[0]
    n_layers = len(gru_params)
    hp = HP
    BP = max(8, ((B + 7) // 8) * 8)    # batch padded to the f32 sublane tile

    # Time-major, batch padded to BP rows per timestep, flattened to
    # (T*BP, D_in): every per-step slice is (8,128)-tile aligned.  Pad rows
    # carry zeros; GRU rows never mix, so they never touch real outputs.
    x_tm = jnp.transpose(x, (1, 0, 2)).astype(jnp.float32)          # (T, B, D_in)
    x_pad = jnp.zeros((T, BP, D_in), jnp.float32).at[:, :B, :].set(x_tm)
    x2d = x_pad.reshape(T * BP, D_in)

    args = [x2d]

    # Layer 0: keep w_ih / w_hh separate (the input dot is hoisted in-kernel).
    w_ih0_p, w_hh0_p, b_gi0, b_hn0 = _pack_layer(*gru_params[0], H, hp)
    args += [w_ih0_p, b_gi0, w_hh0_p, b_hn0]

    # Layers >= 1: separate w_ih / w_hh (no block-diagonal zero padding) —
    # halves streamed weight bytes and avoids zero-tile MXU passes.
    for l in range(1, n_layers):
        w_ih_p, w_hh_p, b_gi, b_hn = _pack_layer(*gru_params[l], H, hp)
        w_ih_p = _pad_rows(w_ih_p, hp)           # this layer's input is hp-wide
        args += [w_ih_p, w_hh_p, b_gi, b_hn]

    # Final Linear padded to a lane-dense (hp, 128) / (1, 128) slab; padded
    # rows/cols are zero so garbage lanes cannot leak into the result.
    fc_w_p = jnp.zeros((hp, OUTP), jnp.float32).at[:H, :dim_z].set(
        jnp.asarray(fc_w, jnp.float32).T)
    fc_b_p = jnp.zeros((1, OUTP), jnp.float32).at[0, :dim_z].set(
        jnp.asarray(fc_b, jnp.float32))
    args += [fc_w_p, fc_b_p]

    kernel = _make_encoder_kernel(n_layers, T, BP, hp)

    out_padded = pl.pallas_call(
        kernel,
        out_shape=jax.ShapeDtypeStruct((BP, OUTP), jnp.float32),
        in_specs=[pl.BlockSpec(memory_space=pltpu.MemorySpace.VMEM)] * len(args),
        out_specs=pl.BlockSpec(memory_space=pltpu.MemorySpace.VMEM),
    )(*args)
    return out_padded[:B, :dim_z]


# ----------------------------------------------------------------------------
# Pure-JAX reference (same math, for verification)
# ----------------------------------------------------------------------------
def encoder_reference(x, gru_params, fc_w, fc_b):
    B, T, _ = x.shape
    H = gru_params[0][1].shape[1]
    xr = x[:, ::-1, :]                                   # torch.flip(x, [1])
    inp = xr
    for (w_ih, w_hh, b_ih, b_hh) in gru_params:
        h = jnp.zeros((B, H), jnp.float32)
        outs = []
        for t in range(T):
            xt = inp[:, t, :]
            gi = xt @ w_ih.T + b_ih
            gh = h @ w_hh.T + b_hh
            r = jax.nn.sigmoid(gi[:, :H] + gh[:, :H])
            z = jax.nn.sigmoid(gi[:, H:2 * H] + gh[:, H:2 * H])
            n = jnp.tanh(gi[:, 2 * H:] + r * gh[:, 2 * H:])
            h = (1.0 - z) * n + z * h
            outs.append(h)
        inp = jnp.stack(outs, axis=1)
    return inp[:, -1, :] @ fc_w.T + fc_b


# ----------------------------------------------------------------------------
# Deterministic parameter init (PyTorch-style uniform(-1/sqrt(H), 1/sqrt(H)))
# ----------------------------------------------------------------------------
def init_params(key, dim_x, dim_z, hidden, n_layers):
    k = 1.0 / jnp.sqrt(hidden)
    gru_params = []
    d_in = dim_x + dim_z
    for l in range(n_layers):
        key, k1, k2, k3, k4 = jax.random.split(key, 5)
        in_dim = d_in if l == 0 else hidden
        w_ih = jax.random.uniform(k1, (3 * hidden, in_dim), jnp.float32, -k, k)
        w_hh = jax.random.uniform(k2, (3 * hidden, hidden), jnp.float32, -k, k)
        b_ih = jax.random.uniform(k3, (3 * hidden,), jnp.float32, -k, k)
        b_hh = jax.random.uniform(k4, (3 * hidden,), jnp.float32, -k, k)
        gru_params.append((w_ih, w_hh, b_ih, b_hh))
    key, k5, k6 = jax.random.split(key, 3)
    kf = 1.0 / jnp.sqrt(hidden)
    fc_w = jax.random.uniform(k5, (dim_z, hidden), jnp.float32, -kf, kf)
    fc_b = jax.random.uniform(k6, (dim_z,), jnp.float32, -kf, kf)
    return gru_params, fc_w, fc_b


if __name__ == "__main__":
    # config: data.dim_x=4, data.dim_z=2, model.n_hidden_encode=32,
    #         model.n_layers_encode=2
    dim_x, dim_z, hidden, n_layers = 4, 2, 32, 2
    batch, seq = 2, 8

    key = jax.random.PRNGKey(0)
    key, kx, kp = jax.random.split(key, 3)
    x = jax.random.normal(kx, (batch, seq, dim_x + dim_z), jnp.float32)
    gru_params, fc_w, fc_b = init_params(kp, dim_x, dim_z, hidden, n_layers)

    out = encoder_forward(x, gru_params, fc_w, fc_b)
    out = jax.block_until_ready(out)

    ref = encoder_reference(x, gru_params, fc_w, fc_b)
    assert out.shape == (batch, dim_z)
    assert jnp.allclose(out, ref, atol=1e-4, rtol=1e-4)

    print("KERNEL_OK")
</pallas_src>

<mosaic_0001>
module attributes {stable_mosaic.version = 11 : i64} {
  func.func @kernel(%arg0: memref<64x6xf32, #tpu.memory_space<vmem>>, %arg1: memref<6x384xf32, #tpu.memory_space<vmem>>, %arg2: memref<1x384xf32, #tpu.memory_space<vmem>>, %arg3: memref<128x384xf32, #tpu.memory_space<vmem>>, %arg4: memref<1x128xf32, #tpu.memory_space<vmem>>, %arg5: memref<128x384xf32, #tpu.memory_space<vmem>>, %arg6: memref<128x384xf32, #tpu.memory_space<vmem>>, %arg7: memref<1x384xf32, #tpu.memory_space<vmem>>, %arg8: memref<1x128xf32, #tpu.memory_space<vmem>>, %arg9: memref<128x128xf32, #tpu.memory_space<vmem>>, %arg10: memref<1x128xf32, #tpu.memory_space<vmem>>, %arg11: memref<8x128xf32, #tpu.memory_space<vmem>>) attributes {dimension_semantics = [], scalar_prefetch = 0 : i64, scratch_operands = 0 : i64, tpu.core_type = #tpu.core_type<tc>} {
    %c0 = arith.constant 0 : index
    %c0_0 = arith.constant 0 : index
    %0 = vector.load %arg0[%c0, %c0_0] : memref<64x6xf32, #tpu.memory_space<vmem>>, vector<64x6xf32>
    %c0_1 = arith.constant 0 : index
    %c0_2 = arith.constant 0 : index
    %1 = vector.load %arg1[%c0_1, %c0_2] : memref<6x384xf32, #tpu.memory_space<vmem>>, vector<6x384xf32>
    %cst = arith.constant dense<0.000000e+00> : vector<64x384xf32>
    %2 = tpu.matmul %0, %1, %cst {dimension_numbers = #tpu.dot_dimension_numbers<[1], [0], [0], [1], [0, 0, 1, 1], [], []>} : vector<64x6xf32>, vector<6x384xf32>, vector<64x384xf32> -> vector<64x384xf32>
    %c0_3 = arith.constant 0 : index
    %c0_4 = arith.constant 0 : index
    %3 = vector.load %arg2[%c0_3, %c0_4] : memref<1x384xf32, #tpu.memory_space<vmem>>, vector<1x384xf32>
    %4 = vector.broadcast %3 : vector<1x384xf32> to vector<64x384xf32>
    %5 = arith.addf %2, %4 : vector<64x384xf32>
    %c0_5 = arith.constant 0 : index
    %c0_6 = arith.constant 0 : index
    %6 = vector.load %arg4[%c0_5, %c0_6] : memref<1x128xf32, #tpu.memory_space<vmem>>, vector<1x128xf32>
    %7 = vector.shape_cast %6 : vector<1x128xf32> to vector<1x128xf32>
    %8 = vector.broadcast %7 : vector<1x128xf32> to vector<8x128xf32>
    %c0_7 = arith.constant 0 : index
    %c0_8 = arith.constant 0 : index
    %9 = vector.load %arg7[%c0_7, %c0_8] : memref<1x384xf32, #tpu.memory_space<vmem>>, vector<1x384xf32>
    %10 = vector.shape_cast %9 : vector<1x384xf32> to vector<1x384xf32>
    %11 = vector.broadcast %10 : vector<1x384xf32> to vector<8x384xf32>
    %c0_9 = arith.constant 0 : index
    %c0_10 = arith.constant 0 : index
    %12 = vector.load %arg8[%c0_9, %c0_10] : memref<1x128xf32, #tpu.memory_space<vmem>>, vector<1x128xf32>
    %13 = vector.shape_cast %12 : vector<1x128xf32> to vector<1x128xf32>
    %14 = vector.broadcast %13 : vector<1x128xf32> to vector<8x128xf32>
    %cst_11 = arith.constant 0.000000e+00 : f32
    %15 = vector.broadcast %cst_11 : f32 to vector<8x128xf32>
    %cst_12 = arith.constant 0.000000e+00 : f32
    %16 = vector.broadcast %cst_12 : f32 to vector<8x128xf32>
    %17 = vector.extract_strided_slice %5 {offsets = [56, 0], sizes = [8, 384], strides = [1, 1]} : vector<64x384xf32> to vector<8x384xf32>
    %c0_13 = arith.constant 0 : index
    %c0_14 = arith.constant 0 : index
    %18 = vector.load %arg3[%c0_13, %c0_14] : memref<128x384xf32, #tpu.memory_space<vmem>>, vector<128x384xf32>
    %cst_15 = arith.constant dense<0.000000e+00> : vector<8x384xf32>
    %19 = tpu.matmul %15, %18, %cst_15 {dimension_numbers = #tpu.dot_dimension_numbers<[1], [0], [0], [1], [0, 0, 1, 1], [], []>} : vector<8x128xf32>, vector<128x384xf32>, vector<8x384xf32> -> vector<8x384xf32>
    %20 = vector.extract_strided_slice %17 {offsets = [0, 0], sizes = [8, 128], strides = [1, 1]} : vector<8x384xf32> to vector<8x128xf32>
    %21 = vector.extract_strided_slice %19 {offsets = [0, 0], sizes = [8, 128], strides = [1, 1]} : vector<8x384xf32> to vector<8x128xf32>
    %22 = arith.addf %20, %21 : vector<8x128xf32>
    %cst_16 = arith.constant 5.000000e-01 : f32
    %23 = vector.broadcast %cst_16 : f32 to vector<8x128xf32>
    %24 = arith.mulf %23, %22 : vector<8x128xf32>
    %25 = math.tanh %24 : vector<8x128xf32>
    %cst_17 = arith.constant 5.000000e-01 : f32
    %26 = vector.broadcast %cst_17 : f32 to vector<8x128xf32>
    %27 = arith.mulf %26, %25 : vector<8x128xf32>
    %cst_18 = arith.constant 5.000000e-01 : f32
    %28 = vector.broadcast %cst_18 : f32 to vector<8x128xf32>
    %29 = arith.addf %28, %27 : vector<8x128xf32>
    %30 = vector.extract_strided_slice %17 {offsets = [0, 128], sizes = [8, 128], strides = [1, 1]} : vector<8x384xf32> to vector<8x128xf32>
    %31 = vector.extract_strided_slice %19 {offsets = [0, 128], sizes = [8, 128], strides = [1, 1]} : vector<8x384xf32> to vector<8x128xf32>
    %32 = arith.addf %30, %31 : vector<8x128xf32>
    %cst_19 = arith.constant 5.000000e-01 : f32
    %33 = vector.broadcast %cst_19 : f32 to vector<8x128xf32>
    %34 = arith.mulf %33, %32 : vector<8x128xf32>
    %35 = math.tanh %34 : vector<8x128xf32>
    %cst_20 = arith.constant 5.000000e-01 : f32
    %36 = vector.broadcast %cst_20 : f32 to vector<8x128xf32>
    %37 = arith.mulf %36, %35 : vector<8x128xf32>
    %cst_21 = arith.constant 5.000000e-01 : f32
    %38 = vector.broadcast %cst_21 : f32 to vector<8x128xf32>
    %39 = arith.addf %38, %37 : vector<8x128xf32>
    %40 = vector.extract_strided_slice %17 {offsets = [0, 256], sizes = [8, 128], strides = [1, 1]} : vector<8x384xf32> to vector<8x128xf32>
    %41 = vector.extract_strided_slice %19 {offsets = [0, 256], sizes = [8, 128], strides = [1, 1]} : vector<8x384xf32> to vector<8x128xf32>
    %42 = arith.addf %41, %8 : vector<8x128xf32>
    %43 = arith.mulf %29, %42 : vector<8x128xf32>
    %44 = arith.addf %40, %43 : vector<8x128xf32>
    %45 = math.tanh %44 : vector<8x128xf32>
    %46 = arith.subf %15, %45 : vector<8x128xf32>
    %47 = arith.mulf %39, %46 : vector<8x128xf32>
    %48 = arith.addf %45, %47 : vector<8x128xf32>
    %c0_22 = arith.constant 0 : index
    %c0_23 = arith.constant 0 : index
    %49 = vector.load %arg5[%c0_22, %c0_23] : memref<128x384xf32, #tpu.memory_space<vmem>>, vector<128x384xf32>
    %cst_24 = arith.constant dense<0.000000e+00> : vector<8x384xf32>
    %50 = tpu.matmul %48, %49, %cst_24 {dimension_numbers = #tpu.dot_dimension_numbers<[1], [0], [0], [1], [0, 0, 1, 1], [], []>} : vector<8x128xf32>, vector<128x384xf32>, vector<8x384xf32> -> vector<8x384xf32>
    %51 = arith.addf %50, %11 : vector<8x384xf32>
    %c0_25 = arith.constant 0 : index
    %c0_26 = arith.constant 0 : index
    %52 = vector.load %arg6[%c0_25, %c0_26] : memref<128x384xf32, #tpu.memory_space<vmem>>, vector<128x384xf32>
    %cst_27 = arith.constant dense<0.000000e+00> : vector<8x384xf32>
    %53 = tpu.matmul %16, %52, %cst_27 {dimension_numbers = #tpu.dot_dimension_numbers<[1], [0], [0], [1], [0, 0, 1, 1], [], []>} : vector<8x128xf32>, vector<128x384xf32>, vector<8x384xf32> -> vector<8x384xf32>
    %54 = vector.extract_strided_slice %51 {offsets = [0, 0], sizes = [8, 128], strides = [1, 1]} : vector<8x384xf32> to vector<8x128xf32>
    %55 = vector.extract_strided_slice %53 {offsets = [0, 0], sizes = [8, 128], strides = [1, 1]} : vector<8x384xf32> to vector<8x128xf32>
    %56 = arith.addf %54, %55 : vector<8x128xf32>
    %cst_28 = arith.constant 5.000000e-01 : f32
    %57 = vector.broadcast %cst_28 : f32 to vector<8x128xf32>
    %58 = arith.mulf %57, %56 : vector<8x128xf32>
    %59 = math.tanh %58 : vector<8x128xf32>
    %cst_29 = arith.constant 5.000000e-01 : f32
    %60 = vector.broadcast %cst_29 : f32 to vector<8x128xf32>
    %61 = arith.mulf %60, %59 : vector<8x128xf32>
    %cst_30 = arith.constant 5.000000e-01 : f32
    %62 = vector.broadcast %cst_30 : f32 to vector<8x128xf32>
    %63 = arith.addf %62, %61 : vector<8x128xf32>
    %64 = vector.extract_strided_slice %51 {offsets = [0, 128], sizes = [8, 128], strides = [1, 1]} : vector<8x384xf32> to vector<8x128xf32>
    %65 = vector.extract_strided_slice %53 {offsets = [0, 128], sizes = [8, 128], strides = [1, 1]} : vector<8x384xf32> to vector<8x128xf32>
    %66 = arith.addf %64, %65 : vector<8x128xf32>
    %cst_31 = arith.constant 5.000000e-01 : f32
    %67 = vector.broadcast %cst_31 : f32 to vector<8x128xf32>
    %68 = arith.mulf %67, %66 : vector<8x128xf32>
    %69 = math.tanh %68 : vector<8x128xf32>
    %cst_32 = arith.constant 5.000000e-01 : f32
    %70 = vector.broadcast %cst_32 : f32 to vector<8x128xf32>
    %71 = arith.mulf %70, %69 : vector<8x128xf32>
    %cst_33 = arith.constant 5.000000e-01 : f32
    %72 = vector.broadcast %cst_33 : f32 to vector<8x128xf32>
    %73 = arith.addf %72, %71 : vector<8x128xf32>
    %74 = vector.extract_strided_slice %51 {offsets = [0, 256], sizes = [8, 128], strides = [1, 1]} : vector<8x384xf32> to vector<8x128xf32>
    %75 = vector.extract_strided_slice %53 {offsets = [0, 256], sizes = [8, 128], strides = [1, 1]} : vector<8x384xf32> to vector<8x128xf32>
    %76 = arith.addf %75, %14 : vector<8x128xf32>
    %77 = arith.mulf %63, %76 : vector<8x128xf32>
    %78 = arith.addf %74, %77 : vector<8x128xf32>
    %79 = math.tanh %78 : vector<8x128xf32>
    %80 = arith.subf %16, %79 : vector<8x128xf32>
    %81 = arith.mulf %73, %80 : vector<8x128xf32>
    %82 = arith.addf %79, %81 : vector<8x128xf32>
    %83 = vector.extract_strided_slice %5 {offsets = [48, 0], sizes = [8, 384], strides = [1, 1]} : vector<64x384xf32> to vector<8x384xf32>
    %c0_34 = arith.constant 0 : index
    %c0_35 = arith.constant 0 : index
    %84 = vector.load %arg3[%c0_34, %c0_35] : memref<128x384xf32, #tpu.memory_space<vmem>>, vector<128x384xf32>
    %cst_36 = arith.constant dense<0.000000e+00> : vector<8x384xf32>
    %85 = tpu.matmul %48, %84, %cst_36 {dimension_numbers = #tpu.dot_dimension_numbers<[1], [0], [0], [1], [0, 0, 1, 1], [], []>} : vector<8x128xf32>, vector<128x384xf32>, vector<8x384xf32> -> vector<8x384xf32>
    %86 = vector.extract_strided_slice %83 {offsets = [0, 0], sizes = [8, 128], strides = [1, 1]} : vector<8x384xf32> to vector<8x128xf32>
    %87 = vector.extract_strided_slice %85 {offsets = [0, 0], sizes = [8, 128], strides = [1, 1]} : vector<8x384xf32> to vector<8x128xf32>
    %88 = arith.addf %86, %87 : vector<8x128xf32>
    %cst_37 = arith.constant 5.000000e-01 : f32
    %89 = vector.broadcast %cst_37 : f32 to vector<8x128xf32>
    %90 = arith.mulf %89, %88 : vector<8x128xf32>
    %91 = math.tanh %90 : vector<8x128xf32>
    %cst_38 = arith.constant 5.000000e-01 : f32
    %92 = vector.broadcast %cst_38 : f32 to vector<8x128xf32>
    %93 = arith.mulf %92, %91 : vector<8x128xf32>
    %cst_39 = arith.constant 5.000000e-01 : f32
    %94 = vector.broadcast %cst_39 : f32 to vector<8x128xf32>
    %95 = arith.addf %94, %93 : vector<8x128xf32>
    %96 = vector.extract_strided_slice %83 {offsets = [0, 128], sizes = [8, 128], strides = [1, 1]} : vector<8x384xf32> to vector<8x128xf32>
    %97 = vector.extract_strided_slice %85 {offsets = [0, 128], sizes = [8, 128], strides = [1, 1]} : vector<8x384xf32> to vector<8x128xf32>
    %98 = arith.addf %96, %97 : vector<8x128xf32>
    %cst_40 = arith.constant 5.000000e-01 : f32
    %99 = vector.broadcast %cst_40 : f32 to vector<8x128xf32>
    %100 = arith.mulf %99, %98 : vector<8x128xf32>
    %101 = math.tanh %100 : vector<8x128xf32>
    %cst_41 = arith.constant 5.000000e-01 : f32
    %102 = vector.broadcast %cst_41 : f32 to vector<8x128xf32>
    %103 = arith.mulf %102, %101 : vector<8x128xf32>
    %cst_42 = arith.constant 5.000000e-01 : f32
    %104 = vector.broadcast %cst_42 : f32 to vector<8x128xf32>
    %105 = arith.addf %104, %103 : vector<8x128xf32>
    %106 = vector.extract_strided_slice %83 {offsets = [0, 256], sizes = [8, 128], strides = [1, 1]} : vector<8x384xf32> to vector<8x128xf32>
    %107 = vector.extract_strided_slice %85 {offsets = [0, 256], sizes = [8, 128], strides = [1, 1]} : vector<8x384xf32> to vector<8x128xf32>
    %108 = arith.addf %107, %8 : vector<8x128xf32>
    %109 = arith.mulf %95, %108 : vector<8x128xf32>
    %110 = arith.addf %106, %109 : vector<8x128xf32>
    %111 = math.tanh %110 : vector<8x128xf32>
    %112 = arith.subf %48, %111 : vector<8x128xf32>
    %113 = arith.mulf %105, %112 : vector<8x128xf32>
    %114 = arith.addf %111, %113 : vector<8x128xf32>
    %c0_43 = arith.constant 0 : index
    %c0_44 = arith.constant 0 : index
    %115 = vector.load %arg5[%c0_43, %c0_44] : memref<128x384xf32, #tpu.memory_space<vmem>>, vector<128x384xf32>
    %cst_45 = arith.constant dense<0.000000e+00> : vector<8x384xf32>
    %116 = tpu.matmul %114, %115, %cst_45 {dimension_numbers = #tpu.dot_dimension_numbers<[1], [0], [0], [1], [0, 0, 1, 1], [], []>} : vector<8x128xf32>, vector<128x384xf32>, vector<8x384xf32> -> vector<8x384xf32>
    %117 = arith.addf %116, %11 : vector<8x384xf32>
    %c0_46 = arith.constant 0 : index
    %c0_47 = arith.constant 0 : index
    %118 = vector.load %arg6[%c0_46, %c0_47] : memref<128x384xf32, #tpu.memory_space<vmem>>, vector<128x384xf32>
    %cst_48 = arith.constant dense<0.000000e+00> : vector<8x384xf32>
    %119 = tpu.matmul %82, %118, %cst_48 {dimension_numbers = #tpu.dot_dimension_numbers<[1], [0], [0], [1], [0, 0, 1, 1], [], []>} : vector<8x128xf32>, vector<128x384xf32>, vector<8x384xf32> -> vector<8x384xf32>
    %120 = vector.extract_strided_slice %117 {offsets = [0, 0], sizes = [8, 128], strides = [1, 1]} : vector<8x384xf32> to vector<8x128xf32>
    %121 = vector.extract_strided_slice %119 {offsets = [0, 0], sizes = [8, 128], strides = [1, 1]} : vector<8x384xf32> to vector<8x128xf32>
    %122 = arith.addf %120, %121 : vector<8x128xf32>
    %cst_49 = arith.constant 5.000000e-01 : f32
    %123 = vector.broadcast %cst_49 : f32 to vector<8x128xf32>
    %124 = arith.mulf %123, %122 : vector<8x128xf32>
    %125 = math.tanh %124 : vector<8x128xf32>
    %cst_50 = arith.constant 5.000000e-01 : f32
    %126 = vector.broadcast %cst_50 : f32 to vector<8x128xf32>
    %127 = arith.mulf %126, %125 : vector<8x128xf32>
    %cst_51 = arith.constant 5.000000e-01 : f32
    %128 = vector.broadcast %cst_51 : f32 to vector<8x128xf32>
    %129 = arith.addf %128, %127 : vector<8x128xf32>
    %130 = vector.extract_strided_slice %117 {offsets = [0, 128], sizes = [8, 128], strides = [1, 1]} : vector<8x384xf32> to vector<8x128xf32>
    %131 = vector.extract_strided_slice %119 {offsets = [0, 128], sizes = [8, 128], strides = [1, 1]} : vector<8x384xf32> to vector<8x128xf32>
    %132 = arith.addf %130, %131 : vector<8x128xf32>
    %cst_52 = arith.constant 5.000000e-01 : f32
    %133 = vector.broadcast %cst_52 : f32 to vector<8x128xf32>
    %134 = arith.mulf %133, %132 : vector<8x128xf32>
    %135 = math.tanh %134 : vector<8x128xf32>
    %cst_53 = arith.constant 5.000000e-01 : f32
    %136 = vector.broadcast %cst_53 : f32 to vector<8x128xf32>
    %137 = arith.mulf %136, %135 : vector<8x128xf32>
    %cst_54 = arith.constant 5.000000e-01 : f32
    %138 = vector.broadcast %cst_54 : f32 to vector<8x128xf32>
    %139 = arith.addf %138, %137 : vector<8x128xf32>
    %140 = vector.extract_strided_slice %117 {offsets = [0, 256], sizes = [8, 128], strides = [1, 1]} : vector<8x384xf32> to vector<8x128xf32>
    %141 = vector.extract_strided_slice %119 {offsets = [0, 256], sizes = [8, 128], strides = [1, 1]} : vector<8x384xf32> to vector<8x128xf32>
    %142 = arith.addf %141, %14 : vector<8x128xf32>
    %143 = arith.mulf %129, %142 : vector<8x128xf32>
    %144 = arith.addf %140, %143 : vector<8x128xf32>
    %145 = math.tanh %144 : vector<8x128xf32>
    %146 = arith.subf %82, %145 : vector<8x128xf32>
    %147 = arith.mulf %139, %146 : vector<8x128xf32>
    %148 = arith.addf %145, %147 : vector<8x128xf32>
    %149 = vector.extract_strided_slice %5 {offsets = [40, 0], sizes = [8, 384], strides = [1, 1]} : vector<64x384xf32> to vector<8x384xf32>
    %c0_55 = arith.constant 0 : index
    %c0_56 = arith.constant 0 : index
    %150 = vector.load %arg3[%c0_55, %c0_56] : memref<128x384xf32, #tpu.memory_space<vmem>>, vector<128x384xf32>
    %cst_57 = arith.constant dense<0.000000e+00> : vector<8x384xf32>
    %151 = tpu.matmul %114, %150, %cst_57 {dimension_numbers = #tpu.dot_dimension_numbers<[1], [0], [0], [1], [0, 0, 1, 1], [], []>} : vector<8x128xf32>, vector<128x384xf32>, vector<8x384xf32> -> vector<8x384xf32>
    %152 = vector.extract_strided_slice %149 {offsets = [0, 0], sizes = [8, 128], strides = [1, 1]} : vector<8x384xf32> to vector<8x128xf32>
    %153 = vector.extract_strided_slice %151 {offsets = [0, 0], sizes = [8, 128], strides = [1, 1]} : vector<8x384xf32> to vector<8x128xf32>
    %154 = arith.addf %152, %153 : vector<8x128xf32>
    %cst_58 = arith.constant 5.000000e-01 : f32
    %155 = vector.broadcast %cst_58 : f32 to vector<8x128xf32>
    %156 = arith.mulf %155, %154 : vector<8x128xf32>
    %157 = math.tanh %156 : vector<8x128xf32>
    %cst_59 = arith.constant 5.000000e-01 : f32
    %158 = vector.broadcast %cst_59 : f32 to vector<8x128xf32>
    %159 = arith.mulf %158, %157 : vector<8x128xf32>
    %cst_60 = arith.constant 5.000000e-01 : f32
    %160 = vector.broadcast %cst_60 : f32 to vector<8x128xf32>
    %161 = arith.addf %160, %159 : vector<8x128xf32>
    %162 = vector.extract_strided_slice %149 {offsets = [0, 128], sizes = [8, 128], strides = [1, 1]} : vector<8x384xf32> to vector<8x128xf32>
    %163 = vector.extract_strided_slice %151 {offsets = [0, 128], sizes = [8, 128], strides = [1, 1]} : vector<8x384xf32> to vector<8x128xf32>
    %164 = arith.addf %162, %163 : vector<8x128xf32>
    %cst_61 = arith.constant 5.000000e-01 : f32
    %165 = vector.broadcast %cst_61 : f32 to vector<8x128xf32>
    %166 = arith.mulf %165, %164 : vector<8x128xf32>
    %167 = math.tanh %166 : vector<8x128xf32>
    %cst_62 = arith.constant 5.000000e-01 : f32
    %168 = vector.broadcast %cst_62 : f32 to vector<8x128xf32>
    %169 = arith.mulf %168, %167 : vector<8x128xf32>
    %cst_63 = arith.constant 5.000000e-01 : f32
    %170 = vector.broadcast %cst_63 : f32 to vector<8x128xf32>
    %171 = arith.addf %170, %169 : vector<8x128xf32>
    %172 = vector.extract_strided_slice %149 {offsets = [0, 256], sizes = [8, 128], strides = [1, 1]} : vector<8x384xf32> to vector<8x128xf32>
    %173 = vector.extract_strided_slice %151 {offsets = [0, 256], sizes = [8, 128], strides = [1, 1]} : vector<8x384xf32> to vector<8x128xf32>
    %174 = arith.addf %173, %8 : vector<8x128xf32>
    %175 = arith.mulf %161, %174 : vector<8x128xf32>
    %176 = arith.addf %172, %175 : vector<8x128xf32>
    %177 = math.tanh %176 : vector<8x128xf32>
    %178 = arith.subf %114, %177 : vector<8x128xf32>
    %179 = arith.mulf %171, %178 : vector<8x128xf32>
    %180 = arith.addf %177, %179 : vector<8x128xf32>
    %c0_64 = arith.constant 0 : index
    %c0_65 = arith.constant 0 : index
    %181 = vector.load %arg5[%c0_64, %c0_65] : memref<128x384xf32, #tpu.memory_space<vmem>>, vector<128x384xf32>
    %cst_66 = arith.constant dense<0.000000e+00> : vector<8x384xf32>
    %182 = tpu.matmul %180, %181, %cst_66 {dimension_numbers = #tpu.dot_dimension_numbers<[1], [0], [0], [1], [0, 0, 1, 1], [], []>} : vector<8x128xf32>, vector<128x384xf32>, vector<8x384xf32> -> vector<8x384xf32>
    %183 = arith.addf %182, %11 : vector<8x384xf32>
    %c0_67 = arith.constant 0 : index
    %c0_68 = arith.constant 0 : index
    %184 = vector.load %arg6[%c0_67, %c0_68] : memref<128x384xf32, #tpu.memory_space<vmem>>, vector<128x384xf32>
    %cst_69 = arith.constant dense<0.000000e+00> : vector<8x384xf32>
    %185 = tpu.matmul %148, %184, %cst_69 {dimension_numbers = #tpu.dot_dimension_numbers<[1], [0], [0], [1], [0, 0, 1, 1], [], []>} : vector<8x128xf32>, vector<128x384xf32>, vector<8x384xf32> -> vector<8x384xf32>
    %186 = vector.extract_strided_slice %183 {offsets = [0, 0], sizes = [8, 128], strides = [1, 1]} : vector<8x384xf32> to vector<8x128xf32>
    %187 = vector.extract_strided_slice %185 {offsets = [0, 0], sizes = [8, 128], strides = [1, 1]} : vector<8x384xf32> to vector<8x128xf32>
    %188 = arith.addf %186, %187 : vector<8x128xf32>
    %cst_70 = arith.constant 5.000000e-01 : f32
    %189 = vector.broadcast %cst_70 : f32 to vector<8x128xf32>
    %190 = arith.mulf %189, %188 : vector<8x128xf32>
    %191 = math.tanh %190 : vector<8x128xf32>
    %cst_71 = arith.constant 5.000000e-01 : f32
    %192 = vector.broadcast %cst_71 : f32 to vector<8x128xf32>
    %193 = arith.mulf %192, %191 : vector<8x128xf32>
    %cst_72 = arith.constant 5.000000e-01 : f32
    %194 = vector.broadcast %cst_72 : f32 to vector<8x128xf32>
    %195 = arith.addf %194, %193 : vector<8x128xf32>
    %196 = vector.extract_strided_slice %183 {offsets = [0, 128], sizes = [8, 128], strides = [1, 1]} : vector<8x384xf32> to vector<8x128xf32>
    %197 = vector.extract_strided_slice %185 {offsets = [0, 128], sizes = [8, 128], strides = [1, 1]} : vector<8x384xf32> to vector<8x128xf32>
    %198 = arith.addf %196, %197 : vector<8x128xf32>
    %cst_73 = arith.constant 5.000000e-01 : f32
    %199 = vector.broadcast %cst_73 : f32 to vector<8x128xf32>
    %200 = arith.mulf %199, %198 : vector<8x128xf32>
    %201 = math.tanh %200 : vector<8x128xf32>
    %cst_74 = arith.constant 5.000000e-01 : f32
    %202 = vector.broadcast %cst_74 : f32 to vector<8x128xf32>
    %203 = arith.mulf %202, %201 : vector<8x128xf32>
    %cst_75 = arith.constant 5.000000e-01 : f32
    %204 = vector.broadcast %cst_75 : f32 to vector<8x128xf32>
    %205 = arith.addf %204, %203 : vector<8x128xf32>
    %206 = vector.extract_strided_slice %183 {offsets = [0, 256], sizes = [8, 128], strides = [1, 1]} : vector<8x384xf32> to vector<8x128xf32>
    %207 = vector.extract_strided_slice %185 {offsets = [0, 256], sizes = [8, 128], strides = [1, 1]} : vector<8x384xf32> to vector<8x128xf32>
    %208 = arith.addf %207, %14 : vector<8x128xf32>
    %209 = arith.mulf %195, %208 : vector<8x128xf32>
    %210 = arith.addf %206, %209 : vector<8x128xf32>
    %211 = math.tanh %210 : vector<8x128xf32>
    %212 = arith.subf %148, %211 : vector<8x128xf32>
    %213 = arith.mulf %205, %212 : vector<8x128xf32>
    %214 = arith.addf %211, %213 : vector<8x128xf32>
    %215 = vector.extract_strided_slice %5 {offsets = [32, 0], sizes = [8, 384], strides = [1, 1]} : vector<64x384xf32> to vector<8x384xf32>
    %c0_76 = arith.constant 0 : index
    %c0_77 = arith.constant 0 : index
    %216 = vector.load %arg3[%c0_76, %c0_77] : memref<128x384xf32, #tpu.memory_space<vmem>>, vector<128x384xf32>
    %cst_78 = arith.constant dense<0.000000e+00> : vector<8x384xf32>
    %217 = tpu.matmul %180, %216, %cst_78 {dimension_numbers = #tpu.dot_dimension_numbers<[1], [0], [0], [1], [0, 0, 1, 1], [], []>} : vector<8x128xf32>, vector<128x384xf32>, vector<8x384xf32> -> vector<8x384xf32>
    %218 = vector.extract_strided_slice %215 {offsets = [0, 0], sizes = [8, 128], strides = [1, 1]} : vector<8x384xf32> to vector<8x128xf32>
    %219 = vector.extract_strided_slice %217 {offsets = [0, 0], sizes = [8, 128], strides = [1, 1]} : vector<8x384xf32> to vector<8x128xf32>
    %220 = arith.addf %218, %219 : vector<8x128xf32>
    %cst_79 = arith.constant 5.000000e-01 : f32
    %221 = vector.broadcast %cst_79 : f32 to vector<8x128xf32>
    %222 = arith.mulf %221, %220 : vector<8x128xf32>
    %223 = math.tanh %222 : vector<8x128xf32>
    %cst_80 = arith.constant 5.000000e-01 : f32
    %224 = vector.broadcast %cst_80 : f32 to vector<8x128xf32>
    %225 = arith.mulf %224, %223 : vector<8x128xf32>
    %cst_81 = arith.constant 5.000000e-01 : f32
    %226 = vector.broadcast %cst_81 : f32 to vector<8x128xf32>
    %227 = arith.addf %226, %225 : vector<8x128xf32>
    %228 = vector.extract_strided_slice %215 {offsets = [0, 128], sizes = [8, 128], strides = [1, 1]} : vector<8x384xf32> to vector<8x128xf32>
    %229 = vector.extract_strided_slice %217 {offsets = [0, 128], sizes = [8, 128], strides = [1, 1]} : vector<8x384xf32> to vector<8x128xf32>
    %230 = arith.addf %228, %229 : vector<8x128xf32>
    %cst_82 = arith.constant 5.000000e-01 : f32
    %231 = vector.broadcast %cst_82 : f32 to vector<8x128xf32>
    %232 = arith.mulf %231, %230 : vector<8x128xf32>
    %233 = math.tanh %232 : vector<8x128xf32>
    %cst_83 = arith.constant 5.000000e-01 : f32
    %234 = vector.broadcast %cst_83 : f32 to vector<8x128xf32>
    %235 = arith.mulf %234, %233 : vector<8x128xf32>
    %cst_84 = arith.constant 5.000000e-01 : f32
    %236 = vector.broadcast %cst_84 : f32 to vector<8x128xf32>
    %237 = arith.addf %236, %235 : vector<8x128xf32>
    %238 = vector.extract_strided_slice %215 {offsets = [0, 256], sizes = [8, 128], strides = [1, 1]} : vector<8x384xf32> to vector<8x128xf32>
    %239 = vector.extract_strided_slice %217 {offsets = [0, 256], sizes = [8, 128], strides = [1, 1]} : vector<8x384xf32> to vector<8x128xf32>
    %240 = arith.addf %239, %8 : vector<8x128xf32>
    %241 = arith.mulf %227, %240 : vector<8x128xf32>
    %242 = arith.addf %238, %241 : vector<8x128xf32>
    %243 = math.tanh %242 : vector<8x128xf32>
    %244 = arith.subf %180, %243 : vector<8x128xf32>
    %245 = arith.mulf %237, %244 : vector<8x128xf32>
    %246 = arith.addf %243, %245 : vector<8x128xf32>
    %c0_85 = arith.constant 0 : index
    %c0_86 = arith.constant 0 : index
    %247 = vector.load %arg5[%c0_85, %c0_86] : memref<128x384xf32, #tpu.memory_space<vmem>>, vector<128x384xf32>
    %cst_87 = arith.constant dense<0.000000e+00> : vector<8x384xf32>
    %248 = tpu.matmul %246, %247, %cst_87 {dimension_numbers = #tpu.dot_dimension_numbers<[1], [0], [0], [1], [0, 0, 1, 1], [], []>} : vector<8x128xf32>, vector<128x384xf32>, vector<8x384xf32> -> vector<8x384xf32>
    %249 = arith.addf %248, %11 : vector<8x384xf32>
    %c0_88 = arith.constant 0 : index
    %c0_89 = arith.constant 0 : index
    %250 = vector.load %arg6[%c0_88, %c0_89] : memref<128x384xf32, #tpu.memory_space<vmem>>, vector<128x384xf32>
    %cst_90 = arith.constant dense<0.000000e+00> : vector<8x384xf32>
    %251 = tpu.matmul %214, %250, %cst_90 {dimension_numbers = #tpu.dot_dimension_numbers<[1], [0], [0], [1], [0, 0, 1, 1], [], []>} : vector<8x128xf32>, vector<128x384xf32>, vector<8x384xf32> -> vector<8x384xf32>
    %252 = vector.extract_strided_slice %249 {offsets = [0, 0], sizes = [8, 128], strides = [1, 1]} : vector<8x384xf32> to vector<8x128xf32>
    %253 = vector.extract_strided_slice %251 {offsets = [0, 0], sizes = [8, 128], strides = [1, 1]} : vector<8x384xf32> to vector<8x128xf32>
    %254 = arith.addf %252, %253 : vector<8x128xf32>
    %cst_91 = arith.constant 5.000000e-01 : f32
    %255 = vector.broadcast %cst_91 : f32 to vector<8x128xf32>
    %256 = arith.mulf %255, %254 : vector<8x128xf32>
    %257 = math.tanh %256 : vector<8x128xf32>
    %cst_92 = arith.constant 5.000000e-01 : f32
    %258 = vector.broadcast %cst_92 : f32 to vector<8x128xf32>
    %259 = arith.mulf %258, %257 : vector<8x128xf32>
    %cst_93 = arith.constant 5.000000e-01 : f32
    %260 = vector.broadcast %cst_93 : f32 to vector<8x128xf32>
    %261 = arith.addf %260, %259 : vector<8x128xf32>
    %262 = vector.extract_strided_slice %249 {offsets = [0, 128], sizes = [8, 128], strides = [1, 1]} : vector<8x384xf32> to vector<8x128xf32>
    %263 = vector.extract_strided_slice %251 {offsets = [0, 128], sizes = [8, 128], strides = [1, 1]} : vector<8x384xf32> to vector<8x128xf32>
    %264 = arith.addf %262, %263 : vector<8x128xf32>
    %cst_94 = arith.constant 5.000000e-01 : f32
    %265 = vector.broadcast %cst_94 : f32 to vector<8x128xf32>
    %266 = arith.mulf %265, %264 : vector<8x128xf32>
    %267 = math.tanh %266 : vector<8x128xf32>
    %cst_95 = arith.constant 5.000000e-01 : f32
    %268 = vector.broadcast %cst_95 : f32 to vector<8x128xf32>
    %269 = arith.mulf %268, %267 : vector<8x128xf32>
    %cst_96 = arith.constant 5.000000e-01 : f32
    %270 = vector.broadcast %cst_96 : f32 to vector<8x128xf32>
    %271 = arith.addf %270, %269 : vector<8x128xf32>
    %272 = vector.extract_strided_slice %249 {offsets = [0, 256], sizes = [8, 128], strides = [1, 1]} : vector<8x384xf32> to vector<8x128xf32>
    %273 = vector.extract_strided_slice %251 {offsets = [0, 256], sizes = [8, 128], strides = [1, 1]} : vector<8x384xf32> to vector<8x128xf32>
    %274 = arith.addf %273, %14 : vector<8x128xf32>
    %275 = arith.mulf %261, %274 : vector<8x128xf32>
    %276 = arith.addf %272, %275 : vector<8x128xf32>
    %277 = math.tanh %276 : vector<8x128xf32>
    %278 = arith.subf %214, %277 : vector<8x128xf32>
    %279 = arith.mulf %271, %278 : vector<8x128xf32>
    %280 = arith.addf %277, %279 : vector<8x128xf32>
    %281 = vector.extract_strided_slice %5 {offsets = [24, 0], sizes = [8, 384], strides = [1, 1]} : vector<64x384xf32> to vector<8x384xf32>
    %c0_97 = arith.constant 0 : index
    %c0_98 = arith.constant 0 : index
    %282 = vector.load %arg3[%c0_97, %c0_98] : memref<128x384xf32, #tpu.memory_space<vmem>>, vector<128x384xf32>
    %cst_99 = arith.constant dense<0.000000e+00> : vector<8x384xf32>
    %283 = tpu.matmul %246, %282, %cst_99 {dimension_numbers = #tpu.dot_dimension_numbers<[1], [0], [0], [1], [0, 0, 1, 1], [], []>} : vector<8x128xf32>, vector<128x384xf32>, vector<8x384xf32> -> vector<8x384xf32>
    %284 = vector.extract_strided_slice %281 {offsets = [0, 0], sizes = [8, 128], strides = [1, 1]} : vector<8x384xf32> to vector<8x128xf32>
    %285 = vector.extract_strided_slice %283 {offsets = [0, 0], sizes = [8, 128], strides = [1, 1]} : vector<8x384xf32> to vector<8x128xf32>
    %286 = arith.addf %284, %285 : vector<8x128xf32>
    %cst_100 = arith.constant 5.000000e-01 : f32
    %287 = vector.broadcast %cst_100 : f32 to vector<8x128xf32>
    %288 = arith.mulf %287, %286 : vector<8x128xf32>
    %289 = math.tanh %288 : vector<8x128xf32>
    %cst_101 = arith.constant 5.000000e-01 : f32
    %290 = vector.broadcast %cst_101 : f32 to vector<8x128xf32>
    %291 = arith.mulf %290, %289 : vector<8x128xf32>
    %cst_102 = arith.constant 5.000000e-01 : f32
    %292 = vector.broadcast %cst_102 : f32 to vector<8x128xf32>
    %293 = arith.addf %292, %291 : vector<8x128xf32>
    %294 = vector.extract_strided_slice %281 {offsets = [0, 128], sizes = [8, 128], strides = [1, 1]} : vector<8x384xf32> to vector<8x128xf32>
    %295 = vector.extract_strided_slice %283 {offsets = [0, 128], sizes = [8, 128], strides = [1, 1]} : vector<8x384xf32> to vector<8x128xf32>
    %296 = arith.addf %294, %295 : vector<8x128xf32>
    %cst_103 = arith.constant 5.000000e-01 : f32
    %297 = vector.broadcast %cst_103 : f32 to vector<8x128xf32>
    %298 = arith.mulf %297, %296 : vector<8x128xf32>
    %299 = math.tanh %298 : vector<8x128xf32>
    %cst_104 = arith.constant 5.000000e-01 : f32
    %300 = vector.broadcast %cst_104 : f32 to vector<8x128xf32>
    %301 = arith.mulf %300, %299 : vector<8x128xf32>
    %cst_105 = arith.constant 5.000000e-01 : f32
    %302 = vector.broadcast %cst_105 : f32 to vector<8x128xf32>
    %303 = arith.addf %302, %301 : vector<8x128xf32>
    %304 = vector.extract_strided_slice %281 {offsets = [0, 256], sizes = [8, 128], strides = [1, 1]} : vector<8x384xf32> to vector<8x128xf32>
    %305 = vector.extract_strided_slice %283 {offsets = [0, 256], sizes = [8, 128], strides = [1, 1]} : vector<8x384xf32> to vector<8x128xf32>
    %306 = arith.addf %305, %8 : vector<8x128xf32>
    %307 = arith.mulf %293, %306 : vector<8x128xf32>
    %308 = arith.addf %304, %307 : vector<8x128xf32>
    %309 = math.tanh %308 : vector<8x128xf32>
    %310 = arith.subf %246, %309 : vector<8x128xf32>
    %311 = arith.mulf %303, %310 : vector<8x128xf32>
    %312 = arith.addf %309, %311 : vector<8x128xf32>
    %c0_106 = arith.constant 0 : index
    %c0_107 = arith.constant 0 : index
    %313 = vector.load %arg5[%c0_106, %c0_107] : memref<128x384xf32, #tpu.memory_space<vmem>>, vector<128x384xf32>
    %cst_108 = arith.constant dense<0.000000e+00> : vector<8x384xf32>
    %314 = tpu.matmul %312, %313, %cst_108 {dimension_numbers = #tpu.dot_dimension_numbers<[1], [0], [0], [1], [0, 0, 1, 1], [], []>} : vector<8x128xf32>, vector<128x384xf32>, vector<8x384xf32> -> vector<8x384xf32>
    %315 = arith.addf %314, %11 : vector<8x384xf32>
    %c0_109 = arith.constant 0 : index
    %c0_110 = arith.constant 0 : index
    %316 = vector.load %arg6[%c0_109, %c0_110] : memref<128x384xf32, #tpu.memory_space<vmem>>, vector<128x384xf32>
    %cst_111 = arith.constant dense<0.000000e+00> : vector<8x384xf32>
    %317 = tpu.matmul %280, %316, %cst_111 {dimension_numbers = #tpu.dot_dimension_numbers<[1], [0], [0], [1], [0, 0, 1, 1], [], []>} : vector<8x128xf32>, vector<128x384xf32>, vector<8x384xf32> -> vector<8x384xf32>
    %318 = vector.extract_strided_slice %315 {offsets = [0, 0], sizes = [8, 128], strides = [1, 1]} : vector<8x384xf32> to vector<8x128xf32>
    %319 = vector.extract_strided_slice %317 {offsets = [0, 0], sizes = [8, 128], strides = [1, 1]} : vector<8x384xf32> to vector<8x128xf32>
    %320 = arith.addf %318, %319 : vector<8x128xf32>
    %cst_112 = arith.constant 5.000000e-01 : f32
    %321 = vector.broadcast %cst_112 : f32 to vector<8x128xf32>
    %322 = arith.mulf %321, %320 : vector<8x128xf32>
    %323 = math.tanh %322 : vector<8x128xf32>
    %cst_113 = arith.constant 5.000000e-01 : f32
    %324 = vector.broadcast %cst_113 : f32 to vector<8x128xf32>
    %325 = arith.mulf %324, %323 : vector<8x128xf32>
    %cst_114 = arith.constant 5.000000e-01 : f32
    %326 = vector.broadcast %cst_114 : f32 to vector<8x128xf32>
    %327 = arith.addf %326, %325 : vector<8x128xf32>
    %328 = vector.extract_strided_slice %315 {offsets = [0, 128], sizes = [8, 128], strides = [1, 1]} : vector<8x384xf32> to vector<8x128xf32>
    %329 = vector.extract_strided_slice %317 {offsets = [0, 128], sizes = [8, 128], strides = [1, 1]} : vector<8x384xf32> to vector<8x128xf32>
    %330 = arith.addf %328, %329 : vector<8x128xf32>
    %cst_115 = arith.constant 5.000000e-01 : f32
    %331 = vector.broadcast %cst_115 : f32 to vector<8x128xf32>
    %332 = arith.mulf %331, %330 : vector<8x128xf32>
    %333 = math.tanh %332 : vector<8x128xf32>
    %cst_116 = arith.constant 5.000000e-01 : f32
    %334 = vector.broadcast %cst_116 : f32 to vector<8x128xf32>
    %335 = arith.mulf %334, %333 : vector<8x128xf32>
    %cst_117 = arith.constant 5.000000e-01 : f32
    %336 = vector.broadcast %cst_117 : f32 to vector<8x128xf32>
    %337 = arith.addf %336, %335 : vector<8x128xf32>
    %338 = vector.extract_strided_slice %315 {offsets = [0, 256], sizes = [8, 128], strides = [1, 1]} : vector<8x384xf32> to vector<8x128xf32>
    %339 = vector.extract_strided_slice %317 {offsets = [0, 256], sizes = [8, 128], strides = [1, 1]} : vector<8x384xf32> to vector<8x128xf32>
    %340 = arith.addf %339, %14 : vector<8x128xf32>
    %341 = arith.mulf %327, %340 : vector<8x128xf32>
    %342 = arith.addf %338, %341 : vector<8x128xf32>
    %343 = math.tanh %342 : vector<8x128xf32>
    %344 = arith.subf %280, %343 : vector<8x128xf32>
    %345 = arith.mulf %337, %344 : vector<8x128xf32>
    %346 = arith.addf %343, %345 : vector<8x128xf32>
    %347 = vector.extract_strided_slice %5 {offsets = [16, 0], sizes = [8, 384], strides = [1, 1]} : vector<64x384xf32> to vector<8x384xf32>
    %c0_118 = arith.constant 0 : index
    %c0_119 = arith.constant 0 : index
    %348 = vector.load %arg3[%c0_118, %c0_119] : memref<128x384xf32, #tpu.memory_space<vmem>>, vector<128x384xf32>
    %cst_120 = arith.constant dense<0.000000e+00> : vector<8x384xf32>
    %349 = tpu.matmul %312, %348, %cst_120 {dimension_numbers = #tpu.dot_dimension_numbers<[1], [0], [0], [1], [0, 0, 1, 1], [], []>} : vector<8x128xf32>, vector<128x384xf32>, vector<8x384xf32> -> vector<8x384xf32>
    %350 = vector.extract_strided_slice %347 {offsets = [0, 0], sizes = [8, 128], strides = [1, 1]} : vector<8x384xf32> to vector<8x128xf32>
    %351 = vector.extract_strided_slice %349 {offsets = [0, 0], sizes = [8, 128], strides = [1, 1]} : vector<8x384xf32> to vector<8x128xf32>
    %352 = arith.addf %350, %351 : vector<8x128xf32>
    %cst_121 = arith.constant 5.000000e-01 : f32
    %353 = vector.broadcast %cst_121 : f32 to vector<8x128xf32>
    %354 = arith.mulf %353, %352 : vector<8x128xf32>
    %355 = math.tanh %354 : vector<8x128xf32>
    %cst_122 = arith.constant 5.000000e-01 : f32
    %356 = vector.broadcast %cst_122 : f32 to vector<8x128xf32>
    %357 = arith.mulf %356, %355 : vector<8x128xf32>
    %cst_123 = arith.constant 5.000000e-01 : f32
    %358 = vector.broadcast %cst_123 : f32 to vector<8x128xf32>
    %359 = arith.addf %358, %357 : vector<8x128xf32>
    %360 = vector.extract_strided_slice %347 {offsets = [0, 128], sizes = [8, 128], strides = [1, 1]} : vector<8x384xf32> to vector<8x128xf32>
    %361 = vector.extract_strided_slice %349 {offsets = [0, 128], sizes = [8, 128], strides = [1, 1]} : vector<8x384xf32> to vector<8x128xf32>
    %362 = arith.addf %360, %361 : vector<8x128xf32>
    %cst_124 = arith.constant 5.000000e-01 : f32
    %363 = vector.broadcast %cst_124 : f32 to vector<8x128xf32>
    %364 = arith.mulf %363, %362 : vector<8x128xf32>
    %365 = math.tanh %364 : vector<8x128xf32>
    %cst_125 = arith.constant 5.000000e-01 : f32
    %366 = vector.broadcast %cst_125 : f32 to vector<8x128xf32>
    %367 = arith.mulf %366, %365 : vector<8x128xf32>
    %cst_126 = arith.constant 5.000000e-01 : f32
    %368 = vector.broadcast %cst_126 : f32 to vector<8x128xf32>
    %369 = arith.addf %368, %367 : vector<8x128xf32>
    %370 = vector.extract_strided_slice %347 {offsets = [0, 256], sizes = [8, 128], strides = [1, 1]} : vector<8x384xf32> to vector<8x128xf32>
    %371 = vector.extract_strided_slice %349 {offsets = [0, 256], sizes = [8, 128], strides = [1, 1]} : vector<8x384xf32> to vector<8x128xf32>
    %372 = arith.addf %371, %8 : vector<8x128xf32>
    %373 = arith.mulf %359, %372 : vector<8x128xf32>
    %374 = arith.addf %370, %373 : vector<8x128xf32>
    %375 = math.tanh %374 : vector<8x128xf32>
    %376 = arith.subf %312, %375 : vector<8x128xf32>
    %377 = arith.mulf %369, %376 : vector<8x128xf32>
    %378 = arith.addf %375, %377 : vector<8x128xf32>
    %c0_127 = arith.constant 0 : index
    %c0_128 = arith.constant 0 : index
    %379 = vector.load %arg5[%c0_127, %c0_128] : memref<128x384xf32, #tpu.memory_space<vmem>>, vector<128x384xf32>
    %cst_129 = arith.constant dense<0.000000e+00> : vector<8x384xf32>
    %380 = tpu.matmul %378, %379, %cst_129 {dimension_numbers = #tpu.dot_dimension_numbers<[1], [0], [0], [1], [0, 0, 1, 1], [], []>} : vector<8x128xf32>, vector<128x384xf32>, vector<8x384xf32> -> vector<8x384xf32>
    %381 = arith.addf %380, %11 : vector<8x384xf32>
    %c0_130 = arith.constant 0 : index
    %c0_131 = arith.constant 0 : index
    %382 = vector.load %arg6[%c0_130, %c0_131] : memref<128x384xf32, #tpu.memory_space<vmem>>, vector<128x384xf32>
    %cst_132 = arith.constant dense<0.000000e+00> : vector<8x384xf32>
    %383 = tpu.matmul %346, %382, %cst_132 {dimension_numbers = #tpu.dot_dimension_numbers<[1], [0], [0], [1], [0, 0, 1, 1], [], []>} : vector<8x128xf32>, vector<128x384xf32>, vector<8x384xf32> -> vector<8x384xf32>
    %384 = vector.extract_strided_slice %381 {offsets = [0, 0], sizes = [8, 128], strides = [1, 1]} : vector<8x384xf32> to vector<8x128xf32>
    %385 = vector.extract_strided_slice %383 {offsets = [0, 0], sizes = [8, 128], strides = [1, 1]} : vector<8x384xf32> to vector<8x128xf32>
    %386 = arith.addf %384, %385 : vector<8x128xf32>
    %cst_133 = arith.constant 5.000000e-01 : f32
    %387 = vector.broadcast %cst_133 : f32 to vector<8x128xf32>
    %388 = arith.mulf %387, %386 : vector<8x128xf32>
    %389 = math.tanh %388 : vector<8x128xf32>
    %cst_134 = arith.constant 5.000000e-01 : f32
    %390 = vector.broadcast %cst_134 : f32 to vector<8x128xf32>
    %391 = arith.mulf %390, %389 : vector<8x128xf32>
    %cst_135 = arith.constant 5.000000e-01 : f32
    %392 = vector.broadcast %cst_135 : f32 to vector<8x128xf32>
    %393 = arith.addf %392, %391 : vector<8x128xf32>
    %394 = vector.extract_strided_slice %381 {offsets = [0, 128], sizes = [8, 128], strides = [1, 1]} : vector<8x384xf32> to vector<8x128xf32>
    %395 = vector.extract_strided_slice %383 {offsets = [0, 128], sizes = [8, 128], strides = [1, 1]} : vector<8x384xf32> to vector<8x128xf32>
    %396 = arith.addf %394, %395 : vector<8x128xf32>
    %cst_136 = arith.constant 5.000000e-01 : f32
    %397 = vector.broadcast %cst_136 : f32 to vector<8x128xf32>
    %398 = arith.mulf %397, %396 : vector<8x128xf32>
    %399 = math.tanh %398 : vector<8x128xf32>
    %cst_137 = arith.constant 5.000000e-01 : f32
    %400 = vector.broadcast %cst_137 : f32 to vector<8x128xf32>
    %401 = arith.mulf %400, %399 : vector<8x128xf32>
    %cst_138 = arith.constant 5.000000e-01 : f32
    %402 = vector.broadcast %cst_138 : f32 to vector<8x128xf32>
    %403 = arith.addf %402, %401 : vector<8x128xf32>
    %404 = vector.extract_strided_slice %381 {offsets = [0, 256], sizes = [8, 128], strides = [1, 1]} : vector<8x384xf32> to vector<8x128xf32>
    %405 = vector.extract_strided_slice %383 {offsets = [0, 256], sizes = [8, 128], strides = [1, 1]} : vector<8x384xf32> to vector<8x128xf32>
    %406 = arith.addf %405, %14 : vector<8x128xf32>
    %407 = arith.mulf %393, %406 : vector<8x128xf32>
    %408 = arith.addf %404, %407 : vector<8x128xf32>
    %409 = math.tanh %408 : vector<8x128xf32>
    %410 = arith.subf %346, %409 : vector<8x128xf32>
    %411 = arith.mulf %403, %410 : vector<8x128xf32>
    %412 = arith.addf %409, %411 : vector<8x128xf32>
    %413 = vector.extract_strided_slice %5 {offsets = [8, 0], sizes = [8, 384], strides = [1, 1]} : vector<64x384xf32> to vector<8x384xf32>
    %c0_139 = arith.constant 0 : index
    %c0_140 = arith.constant 0 : index
    %414 = vector.load %arg3[%c0_139, %c0_140] : memref<128x384xf32, #tpu.memory_space<vmem>>, vector<128x384xf32>
    %cst_141 = arith.constant dense<0.000000e+00> : vector<8x384xf32>
    %415 = tpu.matmul %378, %414, %cst_141 {dimension_numbers = #tpu.dot_dimension_numbers<[1], [0], [0], [1], [0, 0, 1, 1], [], []>} : vector<8x128xf32>, vector<128x384xf32>, vector<8x384xf32> -> vector<8x384xf32>
    %416 = vector.extract_strided_slice %413 {offsets = [0, 0], sizes = [8, 128], strides = [1, 1]} : vector<8x384xf32> to vector<8x128xf32>
    %417 = vector.extract_strided_slice %415 {offsets = [0, 0], sizes = [8, 128], strides = [1, 1]} : vector<8x384xf32> to vector<8x128xf32>
    %418 = arith.addf %416, %417 : vector<8x128xf32>
    %cst_142 = arith.constant 5.000000e-01 : f32
    %419 = vector.broadcast %cst_142 : f32 to vector<8x128xf32>
    %420 = arith.mulf %419, %418 : vector<8x128xf32>
    %421 = math.tanh %420 : vector<8x128xf32>
    %cst_143 = arith.constant 5.000000e-01 : f32
    %422 = vector.broadcast %cst_143 : f32 to vector<8x128xf32>
    %423 = arith.mulf %422, %421 : vector<8x128xf32>
    %cst_144 = arith.constant 5.000000e-01 : f32
    %424 = vector.broadcast %cst_144 : f32 to vector<8x128xf32>
    %425 = arith.addf %424, %423 : vector<8x128xf32>
    %426 = vector.extract_strided_slice %413 {offsets = [0, 128], sizes = [8, 128], strides = [1, 1]} : vector<8x384xf32> to vector<8x128xf32>
    %427 = vector.extract_strided_slice %415 {offsets = [0, 128], sizes = [8, 128], strides = [1, 1]} : vector<8x384xf32> to vector<8x128xf32>
    %428 = arith.addf %426, %427 : vector<8x128xf32>
    %cst_145 = arith.constant 5.000000e-01 : f32
    %429 = vector.broadcast %cst_145 : f32 to vector<8x128xf32>
    %430 = arith.mulf %429, %428 : vector<8x128xf32>
    %431 = math.tanh %430 : vector<8x128xf32>
    %cst_146 = arith.constant 5.000000e-01 : f32
    %432 = vector.broadcast %cst_146 : f32 to vector<8x128xf32>
    %433 = arith.mulf %432, %431 : vector<8x128xf32>
    %cst_147 = arith.constant 5.000000e-01 : f32
    %434 = vector.broadcast %cst_147 : f32 to vector<8x128xf32>
    %435 = arith.addf %434, %433 : vector<8x128xf32>
    %436 = vector.extract_strided_slice %413 {offsets = [0, 256], sizes = [8, 128], strides = [1, 1]} : vector<8x384xf32> to vector<8x128xf32>
    %437 = vector.extract_strided_slice %415 {offsets = [0, 256], sizes = [8, 128], strides = [1, 1]} : vector<8x384xf32> to vector<8x128xf32>
    %438 = arith.addf %437, %8 : vector<8x128xf32>
    %439 = arith.mulf %425, %438 : vector<8x128xf32>
    %440 = arith.addf %436, %439 : vector<8x128xf32>
    %441 = math.tanh %440 : vector<8x128xf32>
    %442 = arith.subf %378, %441 : vector<8x128xf32>
    %443 = arith.mulf %435, %442 : vector<8x128xf32>
    %444 = arith.addf %441, %443 : vector<8x128xf32>
    %c0_148 = arith.constant 0 : index
    %c0_149 = arith.constant 0 : index
    %445 = vector.load %arg5[%c0_148, %c0_149] : memref<128x384xf32, #tpu.memory_space<vmem>>, vector<128x384xf32>
    %cst_150 = arith.constant dense<0.000000e+00> : vector<8x384xf32>
    %446 = tpu.matmul %444, %445, %cst_150 {dimension_numbers = #tpu.dot_dimension_numbers<[1], [0], [0], [1], [0, 0, 1, 1], [], []>} : vector<8x128xf32>, vector<128x384xf32>, vector<8x384xf32> -> vector<8x384xf32>
    %447 = arith.addf %446, %11 : vector<8x384xf32>
    %c0_151 = arith.constant 0 : index
    %c0_152 = arith.constant 0 : index
    %448 = vector.load %arg6[%c0_151, %c0_152] : memref<128x384xf32, #tpu.memory_space<vmem>>, vector<128x384xf32>
    %cst_153 = arith.constant dense<0.000000e+00> : vector<8x384xf32>
    %449 = tpu.matmul %412, %448, %cst_153 {dimension_numbers = #tpu.dot_dimension_numbers<[1], [0], [0], [1], [0, 0, 1, 1], [], []>} : vector<8x128xf32>, vector<128x384xf32>, vector<8x384xf32> -> vector<8x384xf32>
    %450 = vector.extract_strided_slice %447 {offsets = [0, 0], sizes = [8, 128], strides = [1, 1]} : vector<8x384xf32> to vector<8x128xf32>
    %451 = vector.extract_strided_slice %449 {offsets = [0, 0], sizes = [8, 128], strides = [1, 1]} : vector<8x384xf32> to vector<8x128xf32>
    %452 = arith.addf %450, %451 : vector<8x128xf32>
    %cst_154 = arith.constant 5.000000e-01 : f32
    %453 = vector.broadcast %cst_154 : f32 to vector<8x128xf32>
    %454 = arith.mulf %453, %452 : vector<8x128xf32>
    %455 = math.tanh %454 : vector<8x128xf32>
    %cst_155 = arith.constant 5.000000e-01 : f32
    %456 = vector.broadcast %cst_155 : f32 to vector<8x128xf32>
    %457 = arith.mulf %456, %455 : vector<8x128xf32>
    %cst_156 = arith.constant 5.000000e-01 : f32
    %458 = vector.broadcast %cst_156 : f32 to vector<8x128xf32>
    %459 = arith.addf %458, %457 : vector<8x128xf32>
    %460 = vector.extract_strided_slice %447 {offsets = [0, 128], sizes = [8, 128], strides = [1, 1]} : vector<8x384xf32> to vector<8x128xf32>
    %461 = vector.extract_strided_slice %449 {offsets = [0, 128], sizes = [8, 128], strides = [1, 1]} : vector<8x384xf32> to vector<8x128xf32>
    %462 = arith.addf %460, %461 : vector<8x128xf32>
    %cst_157 = arith.constant 5.000000e-01 : f32
    %463 = vector.broadcast %cst_157 : f32 to vector<8x128xf32>
    %464 = arith.mulf %463, %462 : vector<8x128xf32>
    %465 = math.tanh %464 : vector<8x128xf32>
    %cst_158 = arith.constant 5.000000e-01 : f32
    %466 = vector.broadcast %cst_158 : f32 to vector<8x128xf32>
    %467 = arith.mulf %466, %465 : vector<8x128xf32>
    %cst_159 = arith.constant 5.000000e-01 : f32
    %468 = vector.broadcast %cst_159 : f32 to vector<8x128xf32>
    %469 = arith.addf %468, %467 : vector<8x128xf32>
    %470 = vector.extract_strided_slice %447 {offsets = [0, 256], sizes = [8, 128], strides = [1, 1]} : vector<8x384xf32> to vector<8x128xf32>
    %471 = vector.extract_strided_slice %449 {offsets = [0, 256], sizes = [8, 128], strides = [1, 1]} : vector<8x384xf32> to vector<8x128xf32>
    %472 = arith.addf %471, %14 : vector<8x128xf32>
    %473 = arith.mulf %459, %472 : vector<8x128xf32>
    %474 = arith.addf %470, %473 : vector<8x128xf32>
    %475 = math.tanh %474 : vector<8x128xf32>
    %476 = arith.subf %412, %475 : vector<8x128xf32>
    %477 = arith.mulf %469, %476 : vector<8x128xf32>
    %478 = arith.addf %475, %477 : vector<8x128xf32>
    %479 = vector.extract_strided_slice %5 {offsets = [0, 0], sizes = [8, 384], strides = [1, 1]} : vector<64x384xf32> to vector<8x384xf32>
    %c0_160 = arith.constant 0 : index
    %c0_161 = arith.constant 0 : index
    %480 = vector.load %arg3[%c0_160, %c0_161] : memref<128x384xf32, #tpu.memory_space<vmem>>, vector<128x384xf32>
    %cst_162 = arith.constant dense<0.000000e+00> : vector<8x384xf32>
    %481 = tpu.matmul %444, %480, %cst_162 {dimension_numbers = #tpu.dot_dimension_numbers<[1], [0], [0], [1], [0, 0, 1, 1], [], []>} : vector<8x128xf32>, vector<128x384xf32>, vector<8x384xf32> -> vector<8x384xf32>
    %482 = vector.extract_strided_slice %479 {offsets = [0, 0], sizes = [8, 128], strides = [1, 1]} : vector<8x384xf32> to vector<8x128xf32>
    %483 = vector.extract_strided_slice %481 {offsets = [0, 0], sizes = [8, 128], strides = [1, 1]} : vector<8x384xf32> to vector<8x128xf32>
    %484 = arith.addf %482, %483 : vector<8x128xf32>
    %cst_163 = arith.constant 5.000000e-01 : f32
    %485 = vector.broadcast %cst_163 : f32 to vector<8x128xf32>
    %486 = arith.mulf %485, %484 : vector<8x128xf32>
    %487 = math.tanh %486 : vector<8x128xf32>
    %cst_164 = arith.constant 5.000000e-01 : f32
    %488 = vector.broadcast %cst_164 : f32 to vector<8x128xf32>
    %489 = arith.mulf %488, %487 : vector<8x128xf32>
    %cst_165 = arith.constant 5.000000e-01 : f32
    %490 = vector.broadcast %cst_165 : f32 to vector<8x128xf32>
    %491 = arith.addf %490, %489 : vector<8x128xf32>
    %492 = vector.extract_strided_slice %479 {offsets = [0, 128], sizes = [8, 128], strides = [1, 1]} : vector<8x384xf32> to vector<8x128xf32>
    %493 = vector.extract_strided_slice %481 {offsets = [0, 128], sizes = [8, 128], strides = [1, 1]} : vector<8x384xf32> to vector<8x128xf32>
    %494 = arith.addf %492, %493 : vector<8x128xf32>
    %cst_166 = arith.constant 5.000000e-01 : f32
    %495 = vector.broadcast %cst_166 : f32 to vector<8x128xf32>
    %496 = arith.mulf %495, %494 : vector<8x128xf32>
    %497 = math.tanh %496 : vector<8x128xf32>
    %cst_167 = arith.constant 5.000000e-01 : f32
    %498 = vector.broadcast %cst_167 : f32 to vector<8x128xf32>
    %499 = arith.mulf %498, %497 : vector<8x128xf32>
    %cst_168 = arith.constant 5.000000e-01 : f32
    %500 = vector.broadcast %cst_168 : f32 to vector<8x128xf32>
    %501 = arith.addf %500, %499 : vector<8x128xf32>
    %502 = vector.extract_strided_slice %479 {offsets = [0, 256], sizes = [8, 128], strides = [1, 1]} : vector<8x384xf32> to vector<8x128xf32>
    %503 = vector.extract_strided_slice %481 {offsets = [0, 256], sizes = [8, 128], strides = [1, 1]} : vector<8x384xf32> to vector<8x128xf32>
    %504 = arith.addf %503, %8 : vector<8x128xf32>
    %505 = arith.mulf %491, %504 : vector<8x128xf32>
    %506 = arith.addf %502, %505 : vector<8x128xf32>
    %507 = math.tanh %506 : vector<8x128xf32>
    %508 = arith.subf %444, %507 : vector<8x128xf32>
    %509 = arith.mulf %501, %508 : vector<8x128xf32>
    %510 = arith.addf %507, %509 : vector<8x128xf32>
    %c0_169 = arith.constant 0 : index
    %c0_170 = arith.constant 0 : index
    %511 = vector.load %arg5[%c0_169, %c0_170] : memref<128x384xf32, #tpu.memory_space<vmem>>, vector<128x384xf32>
    %cst_171 = arith.constant dense<0.000000e+00> : vector<8x384xf32>
    %512 = tpu.matmul %510, %511, %cst_171 {dimension_numbers = #tpu.dot_dimension_numbers<[1], [0], [0], [1], [0, 0, 1, 1], [], []>} : vector<8x128xf32>, vector<128x384xf32>, vector<8x384xf32> -> vector<8x384xf32>
    %513 = arith.addf %512, %11 : vector<8x384xf32>
    %c0_172 = arith.constant 0 : index
    %c0_173 = arith.constant 0 : index
    %514 = vector.load %arg6[%c0_172, %c0_173] : memref<128x384xf32, #tpu.memory_space<vmem>>, vector<128x384xf32>
    %cst_174 = arith.constant dense<0.000000e+00> : vector<8x384xf32>
    %515 = tpu.matmul %478, %514, %cst_174 {dimension_numbers = #tpu.dot_dimension_numbers<[1], [0], [0], [1], [0, 0, 1, 1], [], []>} : vector<8x128xf32>, vector<128x384xf32>, vector<8x384xf32> -> vector<8x384xf32>
    %516 = vector.extract_strided_slice %513 {offsets = [0, 0], sizes = [8, 128], strides = [1, 1]} : vector<8x384xf32> to vector<8x128xf32>
    %517 = vector.extract_strided_slice %515 {offsets = [0, 0], sizes = [8, 128], strides = [1, 1]} : vector<8x384xf32> to vector<8x128xf32>
    %518 = arith.addf %516, %517 : vector<8x128xf32>
    %cst_175 = arith.constant 5.000000e-01 : f32
    %519 = vector.broadcast %cst_175 : f32 to vector<8x128xf32>
    %520 = arith.mulf %519, %518 : vector<8x128xf32>
    %521 = math.tanh %520 : vector<8x128xf32>
    %cst_176 = arith.constant 5.000000e-01 : f32
    %522 = vector.broadcast %cst_176 : f32 to vector<8x128xf32>
    %523 = arith.mulf %522, %521 : vector<8x128xf32>
    %cst_177 = arith.constant 5.000000e-01 : f32
    %524 = vector.broadcast %cst_177 : f32 to vector<8x128xf32>
    %525 = arith.addf %524, %523 : vector<8x128xf32>
    %526 = vector.extract_strided_slice %513 {offsets = [0, 128], sizes = [8, 128], strides = [1, 1]} : vector<8x384xf32> to vector<8x128xf32>
    %527 = vector.extract_strided_slice %515 {offsets = [0, 128], sizes = [8, 128], strides = [1, 1]} : vector<8x384xf32> to vector<8x128xf32>
    %528 = arith.addf %526, %527 : vector<8x128xf32>
    %cst_178 = arith.constant 5.000000e-01 : f32
    %529 = vector.broadcast %cst_178 : f32 to vector<8x128xf32>
    %530 = arith.mulf %529, %528 : vector<8x128xf32>
    %531 = math.tanh %530 : vector<8x128xf32>
    %cst_179 = arith.constant 5.000000e-01 : f32
    %532 = vector.broadcast %cst_179 : f32 to vector<8x128xf32>
    %533 = arith.mulf %532, %531 : vector<8x128xf32>
    %cst_180 = arith.constant 5.000000e-01 : f32
    %534 = vector.broadcast %cst_180 : f32 to vector<8x128xf32>
    %535 = arith.addf %534, %533 : vector<8x128xf32>
    %536 = vector.extract_strided_slice %513 {offsets = [0, 256], sizes = [8, 128], strides = [1, 1]} : vector<8x384xf32> to vector<8x128xf32>
    %537 = vector.extract_strided_slice %515 {offsets = [0, 256], sizes = [8, 128], strides = [1, 1]} : vector<8x384xf32> to vector<8x128xf32>
    %538 = arith.addf %537, %14 : vector<8x128xf32>
    %539 = arith.mulf %525, %538 : vector<8x128xf32>
    %540 = arith.addf %536, %539 : vector<8x128xf32>
    %541 = math.tanh %540 : vector<8x128xf32>
    %542 = arith.subf %478, %541 : vector<8x128xf32>
    %543 = arith.mulf %535, %542 : vector<8x128xf32>
    %544 = arith.addf %541, %543 : vector<8x128xf32>
    %c0_181 = arith.constant 0 : index
    %c0_182 = arith.constant 0 : index
    %545 = vector.load %arg9[%c0_181, %c0_182] : memref<128x128xf32, #tpu.memory_space<vmem>>, vector<128x128xf32>
    %cst_183 = arith.constant dense<0.000000e+00> : vector<8x128xf32>
    %546 = tpu.matmul %544, %545, %cst_183 {dimension_numbers = #tpu.dot_dimension_numbers<[1], [0], [0], [1], [0, 0, 1, 1], [], []>} : vector<8x128xf32>, vector<128x128xf32>, vector<8x128xf32> -> vector<8x128xf32>
    %c0_184 = arith.constant 0 : index
    %c0_185 = arith.constant 0 : index
    %547 = vector.load %arg10[%c0_184, %c0_185] : memref<1x128xf32, #tpu.memory_space<vmem>>, vector<1x128xf32>
    %548 = vector.broadcast %547 : vector<1x128xf32> to vector<8x128xf32>
    %549 = arith.addf %546, %548 : vector<8x128xf32>
    %c0_186 = arith.constant 0 : index
    %c0_187 = arith.constant 0 : index
    %550 = vector.load %arg11[%c0_186, %c0_187] : memref<8x128xf32, #tpu.memory_space<vmem>>, vector<8x128xf32>
    tpu.vector_store %arg11[%c0_186, %c0_187], %549 {strides = array<i32>} : memref<8x128xf32, #tpu.memory_space<vmem>>, vector<8x128xf32>,
    return
  }
}

</mosaic_0001>

<bundles_post_ra>
// kernel: tpu_custom_call.1
= control target key start
LH: loop header
LB: loop body
LE: loop exit
PB: predicated region body
PF: predicated region fallthrough
CT: control target
= control target key end

     0   :  { %16 = vsyncpa [#allocation3], 0  ;;  %s8756_s0 = inlined_call_operand.vmem [shape: f32[64,6], index: 0, kind: input, shape index: {}]   ;;  %s8757_s1 = inlined_call_operand.vmem [shape: f32[6,384], index: 1, kind: input, shape index: {}]   ;;  %s8758_s2 = inlined_call_operand.vmem [shape: f32[1,384], index: 2, kind: input, shape index: {}]   ;;  %s8759_s3 = inlined_call_operand.hbm [shape: f32[128,384], index: 3, kind: input, shape index: {}]   ;;  %s8760_s4 = inlined_call_operand.vmem [shape: f32[1,128], index: 4, kind: input, shape index: {}]   ;;  %s8761_s5 = inlined_call_operand.hbm [shape: f32[128,384], index: 5, kind: input, shape index: {}]   ;;  %s8762_s6 = inlined_call_operand.hbm [shape: f32[128,384], index: 6, kind: input, shape index: {}]   ;;  %s8763_s7 = inlined_call_operand.vmem [shape: f32[1,384], index: 7, kind: input, shape index: {}]   ;;  %s8764_s8 = inlined_call_operand.vmem [shape: f32[1,128], index: 8, kind: input, shape index: {}]   ;;  %s8765_s9 = inlined_call_operand.hbm [shape: f32[128,128], index: 9, kind: input, shape index: {}]   ;;  %s8766_s10 = inlined_call_operand.vmem [shape: f32[1,128], index: 10, kind: input, shape index: {}]   ;;  %s8767_s11 = inlined_call_operand.hbm [shape: f32[8,128], index: 11, kind: output, shape index: {}]  }
   0x1   :  { %17 = vsyncpa [#allocation6], 0 }
   0x2   :  { %18 = vsyncpa [#allocation9], 0 }
   0x3   :  { %19 = vsyncpa [#allocation4], 0  ;;  %s7323_s17 = smov [#allocation5]   ;;  %s7324_s19 = smov [#allocation2]  }
   0x4   :  { %s45_s18 = sshll.u32 %s7323_s17, 4  ;;  %s31_s20 = sshll.u32 %s7324_s19, 4  ;;  %s46_s18 = int_to_ptr.vmem [resolvable:$true] %s45_s18  ;;  %s7395_s20 = int_to_ptr.vmem [resolvable:$true] %s31_s20 }
   0x5   :  { %s7205_s23 = scalar_lea.hbm %s8761_s5, 6144 }
   0x6   :  { %p7206_p0 = scmp.ne.s32.totalorder %s8761_s5, %s7205_s23  ;;  %p7209_p1 = scmp.lt.u32.totalorder %s7205_s23, %s8761_s5 }
   0x8   :  { %p7211_p2 = pnand %p7209_p1, %p7206_p0 }
   0xa   :  { %7214 = shalt.err (!%p7211_p2)
}
   0xb   :  { %s7215_s28 = scalar_lea.vmem %s46_s18, 6144  ;;  %p7220_p4 = scmp.lt.s32.totalorder %s46_s18, %s46_s18 }
   0xc   :  { %p7216_p3 = scmp.ne.s32.totalorder %s46_s18, %s7215_s28  ;;  %p7221_p5 = scmp.lt.s32.totalorder %s7215_s28, %s7215_s28 }
   0xe   :  { %p7222_p6 = por %p7221_p5, %p7220_p4 }
  0x10   :  { %p7223_p7 = pnand %p7222_p6, %p7216_p3 }
  0x12   :  { %7226 = shalt.err (!%p7223_p7)
}
  0x13   :  { %s7325_s29 = smov 384   ;;  %s7326_s30 = smov 24  }
  0x14   :  { %51 = dma.hbm_to_vmem [thread:$0]  %s8761_s5, 6144, %s46_s18, [#allocation6], %s7325_s29, %s7325_s29, %s7326_s30  }
  0x15   :  { %s7227_s16 = scalar_lea.hbm %s8759_s3, 6144 }
  0x16   :  { %p7228_p8 = scmp.ne.s32.totalorder %s8759_s3, %s7227_s16  ;;  %p7231_p9 = scmp.lt.u32.totalorder %s7227_s16, %s8759_s3 }
  0x18   :  { %p7233_p10 = pnand %p7231_p9, %p7228_p8 }
  0x1a   :  { %7236 = shalt.err (!%p7233_p10)
}
  0x1b   :  { %s7237_s23 = scalar_lea.vmem %s7395_s20, 6144  ;;  %p7242_p12 = scmp.lt.s32.totalorder %s7395_s20, %s7395_s20 }
  0x1c   :  { %p7238_p11 = scmp.ne.s32.totalorder %s7395_s20, %s7237_s23  ;;  %p7243_p13 = scmp.lt.s32.totalorder %s7237_s23, %s7237_s23 }
  0x1e   :  { %p7244_p0 = por %p7243_p13, %p7242_p12 }
  0x20   :  { %p7245_p1 = pnand %p7244_p0, %p7238_p11 }
  0x22   :  { %7248 = shalt.err (!%p7245_p1)
}
  0x23   :  { %37 = dma.hbm_to_vmem [thread:$0]  %s8759_s3, 6144, %s7395_s20, [#allocation3], %s7325_s29, %s7325_s29, %s7326_s30  }
  0x24   :  { %s7327_s24 = smov [#allocation7]   ;;  %s7328_s26 = smov [#allocation8]  }
  0x25   :  { %s57_s25 = sshll.u32 %s7327_s24, 4  ;;  %s73_s27 = sshll.u32 %s7328_s26, 4  ;;  %s58_s25 = int_to_ptr.vmem [resolvable:$true] %s57_s25  ;;  %s7432_s27 = int_to_ptr.vmem [resolvable:$true] %s73_s27 }
  0x26   :  { %s7249_s13 = scalar_lea.hbm %s8762_s6, 6144 }
  0x27   :  { %p7250_p2 = scmp.ne.s32.totalorder %s8762_s6, %s7249_s13  ;;  %p7253_p3 = scmp.lt.u32.totalorder %s7249_s13, %s8762_s6 }
  0x29   :  { %p7255_p4 = pnand %p7253_p3, %p7250_p2 }
  0x2b   :  { %7258 = shalt.err (!%p7255_p4)
}
  0x2c   :  { %s7259_s3 = scalar_lea.vmem %s58_s25, 6144  ;;  %p7264_p6 = scmp.lt.s32.totalorder %s58_s25, %s58_s25 }
  0x2d   :  { %p7260_p5 = scmp.ne.s32.totalorder %s58_s25, %s7259_s3  ;;  %p7265_p7 = scmp.lt.s32.totalorder %s7259_s3, %s7259_s3 }
  0x2f   :  { %p7266_p8 = por %p7265_p7, %p7264_p6 }
  0x31   :  { %p7267_p9 = pnand %p7266_p8, %p7260_p5 }
  0x33   :  { %7270 = shalt.err (!%p7267_p9)
}
  0x34   :  { %63 = dma.hbm_to_vmem [thread:$0]  %s8762_s6, 6144, %s58_s25, [#allocation6], %s7325_s29, %s7325_s29, %s7326_s30  }
  0x35   :  { %s7271_s23 = scalar_lea.hbm %s8765_s9, 2048 }
  0x36   :  { %p7272_p10 = scmp.ne.s32.totalorder %s8765_s9, %s7271_s23  ;;  %p7275_p11 = scmp.lt.u32.totalorder %s7271_s23, %s8765_s9 }
  0x38   :  { %p7277_p12 = pnand %p7275_p11, %p7272_p10 }
  0x3a   :  { %7280 = shalt.err (!%p7277_p12)
}
  0x3b   :  { %s7281_s28 = scalar_lea.vmem %s7432_s27, 2048  ;;  %p7286_p0 = scmp.lt.s32.totalorder %s7432_s27, %s7432_s27 }
  0x3c   :  { %p7282_p13 = scmp.ne.s32.totalorder %s7432_s27, %s7281_s28  ;;  %p7287_p1 = scmp.lt.s32.totalorder %s7281_s28, %s7281_s28 }
  0x3e   :  { %p7288_p2 = por %p7287_p1, %p7286_p0 }
  0x40   :  { %p7289_p3 = pnand %p7288_p2, %p7282_p13 }
  0x42   :  { %7292 = shalt.err (!%p7289_p3)
}
  0x43   :  { %s7329_s6 = smov 128   ;;  %s7330_s29 = smov 8  }
  0x44   :  { %79 = dma.hbm_to_vmem [thread:$0]  %s8765_s9, 2048, %s7432_s27, [#allocation9], %s7329_s6, %s7329_s6, %s7330_s29  }
  0x45   :  { %7315 = dma.done.wait [#allocation3], 6144  }
  0x46   :  { %7316 = vsyncadd [#allocation3], 4294961152 }
  0x47   :  { %7317 = dma.done.wait [#allocation6], 12288  }
  0x48   :  { %7318 = vsyncadd [#allocation6], 4294955008 }
  0x49   :  { %7319 = dma.done.wait [#allocation9], 2048  }
  0x4a   :  { %7320 = vsyncadd [#allocation9], 4294965248  ;;  %v8768_v0 = vmov 0.0   ;;  %vm147_vm0 = vcmask 1045504   ;;  %v103_v1 = vld [vmem:[%s8757_s1 + $0x8] sm:$0x3f] }
  0x4b   :  { %221 = vmatprep.mubr.f32.mxu0 %v8768_v0  ;;  %v102_v2 = vld [vmem:[%s8757_s1] sm:$0x3f]  ;;  %vm122_vm1 = vcmask 48128   ;;  %4317 = vmatprep.subr.msk.mxu0 %vm147_vm0, %v103_v1  ;;  %v410_v5 = vld [vmem:[#allocation2 + $0x20] sm:$0xff]  ;;  %v409_v8 = vld [vmem:[#allocation2 + $0x18] sm:$0xff]  ;;  %v8770_v34 = vmov 0.0|0.0  }
  0x4c   :  { %v94_v3 = vld [vmem:[%s8756_s0] sm:$0xff]  ;;  %v406_v6 = vld [vmem:[#allocation2] sm:$0xff]  ;;  %4318 = vmatpush1.msk.msra.mxu0 %vm147_vm0, %v102_v2  ;;  %v413_v9 = vld [vmem:[#allocation2 + $0x38] sm:$0xff]  ;;  %vm7333_vm2 = vmmov 0   ;;  %s7334_s20 = smov [#allocation10]  }
  0x4d   :  { %v407_v4 = vld [vmem:[#allocation2 + $0x8] sm:$0xff]  ;;  %4775 = vmatprep.mubr.msk.f32.mxu1 %vm122_vm1, %v94_v3  ;;  %4319 = vmatmul.mubr.msk.f32.vlgmr.msra.gmra.mrb[0].mxu0 %vm122_vm1, %v94_v3  ;;  %v7482_v10 = vpack.c.bf16 %v409_v8, %v406_v6  ;;  %v416_v11 = vld [vmem:[#allocation2 + $0x50] sm:$0xff]  ;;  %v422_v17 = vld [vmem:[#allocation2 + $0x80] sm:$0xff]  ;;  %s4306_s19 = sshll.u32 %s7334_s20, 4  ;;  %s4307_s19 = int_to_ptr.vmem [resolvable:$true] %s4306_s19 }
  0x4e   :  { %v7479_v7 = vpack.c.bf16 %v410_v5, %v407_v4  ;;  %v412_v12 = vld [vmem:[#allocation2 + $0x30] sm:$0xff]  ;;  %v415_v13 = vld [vmem:[#allocation2 + $0x48] sm:$0xff]  ;;  %227 = vmatprep.mubr.f32.mxu0 %v8768_v0  ;;  %v7489_v15 = vpack.c.bf16 %v416_v11, %v413_v9  ;;  %v418_v20 = vld [vmem:[#allocation2 + $0x60] sm:$0xff]  ;;  %s7293_s21 = scalar_lea.vmem %s4307_s19, 128  ;;  %p7298_p5 = scmp.lt.s32.totalorder %s4307_s19, %s4307_s19 }
  0x4f   :  { %v95_v14 = vld [vmem:[%s8756_s0 + $0x8] sm:$0xff]  ;;  %v419_v16 = vld [vmem:[#allocation2 + $0x68] sm:$0xff]  ;;  %v7492_v18 = vpack.c.bf16 %v415_v13, %v412_v12  ;;  %v421_v21 = vld [vmem:[#allocation2 + $0x78] sm:$0xff]  ;;  %p7294_p4 = scmp.ne.s32.totalorder %s4307_s19, %s7293_s21  ;;  %p7299_p6 = scmp.lt.s32.totalorder %s7293_s21, %s7293_s21 }
  0x50   :  { %5663 = vmatprep.subr.bf16.mxu0 %v7479_v7  ;;  %v7495_v19 = vpack.c.bf16 %v422_v17, %v419_v16  ;;  %v425_v22 = vld [vmem:[#allocation2 + $0x98] sm:$0xff]  ;;  %v428_v23 = vld [vmem:[#allocation2 + $0xb0] sm:$0xff]  ;;  %v7506_v26 = vpack.c.bf16 %v421_v21, %v418_v20  ;;  %v427_v30 = vld [vmem:[#allocation2 + $0xa8] sm:$0xff] }
  0x51   :  { %5665 = vmatpush1.bf16.msra.mxu0 %v7482_v10  ;;  %v96_v24 = vld [vmem:[%s8756_s0 + $0x10] sm:$0xff]  ;;  %v408_v27 = vld [vmem:[#allocation2 + $0x10] sm:$0xff]  ;;  %v7510_v28 = vpack.c.bf16 %v428_v23, %v425_v22  ;;  %v411_v31 = vld [vmem:[#allocation2 + $0x28] sm:$0xff]  ;;  %p7300_p7 = por %p7299_p6, %p7298_p5 }
  0x52   :  { %5667 = vmatprep.subr.bf16.mxu0 %v7489_v15  ;;  %4320 = vmatmul.mubr.msk.f32.gmra.mrb[2].mxu0 %vm122_vm1, %v95_v14  ;;  %v104_v25 = vld [vmem:[%s8757_s1 + $0x10] sm:$0x3f]  ;;  %v424_v29 = vld [vmem:[#allocation2 + $0x90] sm:$0xff]  ;;  %v431_v32 = vld [vmem:[#allocation2 + $0xc8] sm:$0xff]  ;;  %v7515_v35 = vpack.c.bf16 %v411_v31, %v408_v27 }
  0x53   :  { %233 = vmatprep.mubr.f32.mxu0 %v8768_v0  ;;  %4773 = vmatprep.subr.msk.mxu1 %vm147_vm0, %v104_v25  ;;  %v434_v33 = vld [vmem:[#allocation2 + $0xe0] sm:$0xff]  ;;  %v417_v38 = vld [vmem:[#allocation2 + $0x58] sm:$0xff]  ;;  %v7523_v39 = vpack.c.bf16 %v427_v30, %v424_v29  ;;  %v420_v44 = vld [vmem:[#allocation2 + $0x70] sm:$0xff]  ;;  %p7301_p8 = pnand %p7300_p7, %p7294_p4 }
  0x54   :  { %4774 = vmatpush3.msk.msra.mxu1 %vm147_vm0, %v104_v25  ;;  %v97_v36 = vld [vmem:[%s8756_s0 + $0x18] sm:$0xff]  ;;  %v7529_v42 = vpack.c.bf16 %v434_v33, %v431_v32  ;;  %v433_v43 = vld [vmem:[#allocation2 + $0xd8] sm:$0xff]  ;;  %v423_v45 = vld [vmem:[#allocation2 + $0x88] sm:$0xff] }
  0x55   :  { %5669 = vmatpush1.bf16.msra.mxu0 %v7492_v18  ;;  %5694 = vmatprep.subr.bf16.mxu1 %v8770_v34  ;;  %v414_v37 = vld [vmem:[#allocation2 + $0x40] sm:$0xff]  ;;  %v437_v46 = vld [vmem:[#allocation2 + $0xf8] sm:$0xff]  ;;  %v440_v47 = vld [vmem:[#allocation2 + $0x110] sm:$0xff]  ;;  %v7543_v51 = vpack.c.bf16 %v423_v45, %v420_v44 }
  0x56   :  { %5671 = vmatprep.subr.bf16.mxu0 %v7495_v19  ;;  %4321 = vmatmul.mubr.msk.f32.gmra.mrb[4].mxu0 %vm122_vm1, %v96_v24  ;;  %v430_v40 = vld [vmem:[#allocation2 + $0xc0] sm:$0xff]  ;;  %v7526_v41 = vpack.c.bf16 %v417_v38, %v414_v37  ;;  %v98_v48 = vld [vmem:[%s8756_s0 + $0x20] sm:$0xff]  ;;  %v436_v50 = vld [vmem:[#allocation2 + $0xf0] sm:$0xff]  ;;  %v7546_v52 = vpack.c.bf16 %v440_v47, %v437_v46 }
  0x57   :  { %239 = vmatprep.mubr.f32.mxu0 %v8768_v0  ;;  %4776 = vmatmul.mubr.msk.f32.vlgmr.msra.gmra.mrb[0].mxu1 %vm122_vm1, %v95_v14  ;;  %v7540_v49 = vpack.c.bf16 %v433_v43, %v430_v40  ;;  %v439_v53 = vld [vmem:[#allocation2 + $0x108] sm:$0xff]  ;;  %v426_v54 = vld [vmem:[#allocation2 + $0xa0] sm:$0xff]  ;;  %v429_v55 = vld [vmem:[#allocation2 + $0xb8] sm:$0xff] }
  0x58   :  { %5696 = vmatpush3.bf16.msra.mxu1 %v7515_v35  ;;  %4778 = vmatprep.mubr.msk.f32.mxu1 %vm122_vm1, %v96_v24  ;;  %8883 = vst [vmem:[#allocation16_spill] sm:$0xff] %v7546_v52  ;;  %v99_v56 = vld [vmem:[%s8756_s0 + $0x28] sm:$0xff]  ;;  %v443_v57 = vld [vmem:[#allocation2 + $0x128] sm:$0xff]  ;;  %v446_v58 = vld [vmem:[#allocation2 + $0x140] sm:$0xff]  ;;  %v7560_v60 = vpack.c.bf16 %v439_v53, %v436_v50  ;;  %v7563_v62 = vpack.c.bf16 %v429_v55, %v426_v54 }
  0x59   :  { %5673 = vmatpush1.bf16.msra.mxu0 %v7506_v26  ;;  %5697 = vmatprep.subr.bf16.mxu1 %v8770_v34  ;;  %8882 = vst [vmem:[#allocation15_spill] sm:$0xff] %v7540_v49  ;;  %v100_v59 = vld [vmem:[%s8756_s0 + $0x30] sm:$0xff]  ;;  %v442_v61 = vld [vmem:[#allocation2 + $0x120] sm:$0xff]  ;;  %v7566_v63 = vpack.c.bf16 %v446_v58, %v443_v57  ;;  %v432_v2 = vld [vmem:[#allocation2 + $0xd0] sm:$0xff] }
  0x5a   :  { %5675 = vmatprep.subr.bf16.mxu0 %v7510_v28  ;;  %4322 = vmatmul.mubr.msk.f32.gmra.mrb[6].mxu0 %vm122_vm1, %v97_v36  ;;  %8884 = vst [vmem:[#allocation17_spill] sm:$0xff] %v7560_v60  ;;  %v445_v1 = vld [vmem:[#allocation2 + $0x138] sm:$0xff]  ;;  %v435_v3 = vld [vmem:[#allocation2 + $0xe8] sm:$0xff]  ;;  %v101_v4 = vld [vmem:[%s8756_s0 + $0x38] sm:$0xff] }
  0x5b   :  { %245 = vmatprep.mubr.f32.mxu0 %v8768_v0  ;;  %4779 = vmatmul.mubr.msk.f32.gmra.mrb[2].mxu1 %vm122_vm1, %v97_v36  ;;  %8885 = vst [vmem:[#allocation18_spill] sm:$0xff] %v7566_v63  ;;  %v449_v5 = vld [vmem:[#allocation2 + $0x158] sm:$0xff]  ;;  %v452_v6 = vld [vmem:[#allocation2 + $0x170] sm:$0xff]  ;;  %v7577_v8 = vpack.c.bf16 %v445_v1, %v442_v61  ;;  %v7580_v11 = vpack.c.bf16 %v435_v3, %v432_v2  ;;  %v451_v13 = vld [vmem:[#allocation2 + $0x168] sm:$0xff] }
  0x5c   :  { %5699 = vmatpush3.bf16.msra.mxu1 %v7526_v41  ;;  %4781 = vmatprep.mubr.msk.f32.mxu1 %vm122_vm1, %v98_v48  ;;  %v448_v9 = vld [vmem:[#allocation2 + $0x150] sm:$0xff]  ;;  %v7583_v12 = vpack.c.bf16 %v452_v6, %v449_v5  ;;  %v438_v14 = vld [vmem:[#allocation2 + $0x100] sm:$0xff]  ;;  %v441_v16 = vld [vmem:[#allocation2 + $0x118] sm:$0xff] }
  0x5d   :  { %5677 = vmatpush1.bf16.msra.mxu0 %v7523_v39  ;;  %5700 = vmatprep.subr.bf16.mxu1 %v8770_v34  ;;  %8886 = vst [vmem:[#allocation19_spill] sm:$0xff] %v7577_v8  ;;  %8887 = vst [vmem:[#allocation20_spill] sm:$0xff] %v7580_v11  ;;  %v7591_v17 = vpack.c.bf16 %v451_v13, %v448_v9  ;;  %v7594_v20 = vpack.c.bf16 %v441_v16, %v438_v14  ;;  %v444_v21 = vld [vmem:[#allocation2 + $0x130] sm:$0xff]  ;;  %v447_v22 = vld [vmem:[#allocation2 + $0x148] sm:$0xff] }
  0x5e   :  { %5679 = vmatprep.subr.bf16.mxu0 %v7529_v42  ;;  %4323 = vmatmul.mubr.msk.f32.gmra.mrb[8].mxu0 %vm122_vm1, %v98_v48  ;;  %8888 = vst [vmem:[#allocation21_spill] sm:$0xff] %v7583_v12  ;;  %v7602_v23 = vpack.c.bf16 %v447_v22, %v444_v21  ;;  %v450_v24 = vld [vmem:[#allocation2 + $0x160] sm:$0xff]  ;;  %v453_v25 = vld [vmem:[#allocation2 + $0x178] sm:$0xff]  ;;  %v613_v29 = vld [vmem:[#allocation5 + $0x8] sm:$0xff] }
  0x5f   :  { %251 = vmatprep.mubr.f32.mxu0 %v8768_v0  ;;  %4782 = vmatmul.mubr.msk.f32.gmra.mrb[4].mxu1 %vm122_vm1, %v99_v56  ;;  %8889 = vst [vmem:[#allocation22_spill] sm:$0xff] %v7591_v17  ;;  %8890 = vst [vmem:[#allocation23_spill] sm:$0xff] %v7594_v20  ;;  %v7606_v27 = vpack.c.bf16 %v453_v25, %v450_v24  ;;  %v616_v30 = vld [vmem:[#allocation5 + $0x20] sm:$0xff]  ;;  %v615_v33 = vld [vmem:[#allocation5 + $0x18] sm:$0xff] }
  0x60   :  { %5702 = vmatpush3.bf16.msra.mxu1 %v7543_v51  ;;  %4784 = vmatprep.mubr.msk.f32.mxu1 %vm122_vm1, %v100_v59  ;;  %8891 = vst [vmem:[#allocation24_spill] sm:$0xff] %v7602_v23  ;;  %v7616_v31 = vpack.c.bf16 %v616_v30, %v613_v29  ;;  %v612_v32 = vld [vmem:[#allocation5] sm:$0xff]  ;;  %v614_v36 = vld [vmem:[#allocation5 + $0x10] sm:$0xff]  ;;  %v617_v38 = vld [vmem:[#allocation5 + $0x28] sm:$0xff] }
  0x61   :  { %5681 = vmatpush1.bf16.msra.mxu0 %v7540_v49  ;;  %5703 = vmatprep.subr.bf16.mxu1 %v8770_v34  ;;  %8892 = vst [vmem:[#allocation25_spill] sm:$0xff] %v7606_v27  ;;  %v7618_v37 = vpack.c.bf16 %v615_v33, %v612_v32  ;;  %v7621_v40 = vpack.c.bf16 %v617_v38, %v614_v36  ;;  %v619_v43 = vld [vmem:[#allocation5 + $0x38] sm:$0xff]  ;;  %v622_v44 = vld [vmem:[#allocation5 + $0x50] sm:$0xff]  ;;  %v621_v47 = vld [vmem:[#allocation5 + $0x48] sm:$0xff] }
  0x62   :  { %5683 = vmatprep.subr.bf16.mxu0 %v7546_v52  ;;  %4324 = vmatmul.mubr.msk.f32.gmra.mrb[10].mxu0 %vm122_vm1, %v99_v56  ;;  %8893 = vst [vmem:[#allocation26_spill] sm:$0xff] %v7616_v31  ;;  %v7625_v45 = vpack.c.bf16 %v622_v44, %v619_v43  ;;  %v618_v46 = vld [vmem:[#allocation5 + $0x30] sm:$0xff]  ;;  %v620_v48 = vld [vmem:[#allocation5 + $0x40] sm:$0xff]  ;;  %v623_v53 = vld [vmem:[#allocation5 + $0x58] sm:$0xff] }
  0x63   :  { %257 = vmatprep.mubr.f32.mxu0 %v8768_v0  ;;  %4785 = vmatmul.mubr.msk.f32.gmra.mrb[6].mxu1 %vm122_vm1, %v101_v4  ;;  %8894 = vst [vmem:[#allocation27_spill] sm:$0xff] %v7618_v37  ;;  %8895 = vst [vmem:[#allocation28_spill] sm:$0xff] %v7621_v40  ;;  %v7628_v50 = vpack.c.bf16 %v621_v47, %v618_v46  ;;  %v7631_v54 = vpack.c.bf16 %v623_v53, %v620_v48  ;;  %v625_v55 = vld [vmem:[#allocation5 + $0x68] sm:$0xff]  ;;  %v628_v56 = vld [vmem:[#allocation5 + $0x80] sm:$0xff] }
  0x64   :  { %5705 = vmatpush3.bf16.msra.mxu1 %v7563_v62  ;;  %4819 = vmatprep.mubr.msk.f32.mxu1 %vm7333_vm2, %v8768_v0  ;;  %8896 = vst [vmem:[#allocation29_spill] sm:$0xff] %v7625_v45  ;;  %v7635_v57 = vpack.c.bf16 %v628_v56, %v625_v55  ;;  %v624_v58 = vld [vmem:[#allocation5 + $0x60] sm:$0xff]  ;;  %v626_v61 = vld [vmem:[#allocation5 + $0x70] sm:$0xff]  ;;  %v629_v2 = vld [vmem:[#allocation5 + $0x88] sm:$0xff] }
  0x65   :  { %5685 = vmatpush1.bf16.msra.mxu0 %v7560_v60  ;;  %5706 = vmatprep.subr.bf16.mxu1 %v8770_v34  ;;  %8897 = vst [vmem:[#allocation30_spill] sm:$0xff] %v7628_v50  ;;  %8898 = vst [vmem:[#allocation31_spill] sm:$0xff] %v7631_v54  ;;  %v7641_v3 = vpack.c.bf16 %v629_v2, %v626_v61  ;;  %v634_v5 = vld [vmem:[#allocation5 + $0xb0] sm:$0xff]  ;;  %v633_v13 = vld [vmem:[#allocation5 + $0xa8] sm:$0xff] }
  0x66   :  { %5687 = vmatprep.subr.bf16.mxu0 %v7566_v63  ;;  %4325 = vmatmul.mubr.msk.f32.gmra.mrb[12].mxu0 %vm122_vm1, %v100_v59  ;;  %8899 = vst [vmem:[#allocation32_spill] sm:$0xff] %v7635_v57  ;;  %v627_v59 = vld [vmem:[#allocation5 + $0x78] sm:$0xff]  ;;  %v630_v9 = vld [vmem:[#allocation5 + $0x90] sm:$0xff]  ;;  %v632_v14 = vld [vmem:[#allocation5 + $0xa0] sm:$0xff] }
  0x67   :  { %263 = vmatprep.mubr.f32.mxu0 %v8768_v0  ;;  %v7638_v1 = vpack.c.bf16 %v627_v59, %v624_v58  ;;  %8901 = vst [vmem:[#allocation34_spill] sm:$0xff] %v7641_v3  ;;  %v7648_v16 = vpack.c.bf16 %v633_v13, %v630_v9  ;;  %v635_v21 = vld [vmem:[#allocation5 + $0xb8] sm:$0xff]  ;;  %v637_v24 = vld [vmem:[#allocation5 + $0xc8] sm:$0xff]  ;;  %v640_v25 = vld [vmem:[#allocation5 + $0xe0] sm:$0xff] }
  0x68   :  { %5708 = vmatpush3.bf16.msra.mxu1 %v7580_v11  ;;  %v7651_v22 = vpack.c.bf16 %v635_v21, %v632_v14  ;;  %v7655_v29 = vpack.c.bf16 %v640_v25, %v637_v24  ;;  %v636_v30 = vld [vmem:[#allocation5 + $0xc0] sm:$0xff]  ;;  %v639_v32 = vld [vmem:[#allocation5 + $0xd8] sm:$0xff]  ;;  %v638_v33 = vld [vmem:[#allocation5 + $0xd0] sm:$0xff] }
  0x69   :  { %5689 = vmatpush1.bf16.msra.mxu0 %v7577_v8  ;;  %5709 = vmatprep.subr.bf16.mxu1 %v8770_v34  ;;  %8900 = vst [vmem:[#allocation33_spill] sm:$0xff] %v7638_v1  ;;  %8903 = vst [vmem:[#allocation36_spill] sm:$0xff] %v7648_v16  ;;  %v7658_v36 = vpack.c.bf16 %v639_v32, %v636_v30  ;;  %v641_v38 = vld [vmem:[#allocation5 + $0xe8] sm:$0xff]  ;;  %v643_v44 = vld [vmem:[#allocation5 + $0xf8] sm:$0xff] }
  0x6a   :  { %5691 = vmatprep.subr.bf16.mxu0 %v7583_v12  ;;  %4326 = vmatmul.mubr.msk.f32.gmra.mrb[14].mxu0 %vm122_vm1, %v101_v4  ;;  %v631_v4 = vld [vmem:[#allocation5 + $0x98] sm:$0xff]  ;;  %8904 = vst [vmem:[#allocation37_spill] sm:$0xff] %v7651_v22  ;;  %8905 = vst [vmem:[#allocation38_spill] sm:$0xff] %v7655_v29  ;;  %v7661_v43 = vpack.c.bf16 %v641_v38, %v638_v33  ;;  %v646_v46 = vld [vmem:[#allocation5 + $0x110] sm:$0xff] }
  0x6b   :  { %518 = vmatprep.mubr.f32.mxu0 %v8768_v0  ;;  %v7645_v6 = vpack.c.bf16 %v634_v5, %v631_v4  ;;  %8906 = vst [vmem:[#allocation39_spill] sm:$0xff] %v7658_v36  ;;  %v642_v47 = vld [vmem:[#allocation5 + $0xf0] sm:$0xff]  ;;  %v7664_v48 = vpack.c.bf16 %v646_v46, %v643_v44  ;;  %v645_v53 = vld [vmem:[#allocation5 + $0x108] sm:$0xff]  ;;  %v644_v55 = vld [vmem:[#allocation5 + $0x100] sm:$0xff] }
  0x6c   :  { %5711 = vmatpush3.bf16.msra.mxu1 %v7594_v20  ;;  %8907 = vst [vmem:[#allocation40_spill] sm:$0xff] %v7661_v43  ;;  %v647_v56 = vld [vmem:[#allocation5 + $0x118] sm:$0xff]  ;;  %v7667_v58 = vpack.c.bf16 %v645_v53, %v642_v47  ;;  %v649_v61 = vld [vmem:[#allocation5 + $0x128] sm:$0xff]  ;;  %v652_v2 = vld [vmem:[#allocation5 + $0x140] sm:$0xff] }
  0x6d   :  { %5693 = vmatpush1.bf16.msra.mxu0 %v7591_v17  ;;  %5712 = vmatprep.subr.bf16.mxu1 %v8770_v34  ;;  %8902 = vst [vmem:[#allocation35_spill] sm:$0xff] %v7645_v6  ;;  %8908 = vst [vmem:[#allocation41_spill] sm:$0xff] %v7664_v48  ;;  %v7669_v59 = vpack.c.bf16 %v647_v56, %v644_v55  ;;  %v648_v4 = vld [vmem:[#allocation5 + $0x120] sm:$0xff]  ;;  %v7673_v5 = vpack.c.bf16 %v652_v2, %v649_v61  ;;  %v651_v9 = vld [vmem:[#allocation5 + $0x138] sm:$0xff]  ;;  %v107_v2 = vlaneseq }
  0x6e   :  { %5719 = vmatprep.subr.bf16.mxu0 %v7616_v31  ;;  %8909 = vst [vmem:[#allocation42_spill] sm:$0xff] %v7667_v58  ;;  %v650_v13 = vld [vmem:[#allocation5 + $0x130] sm:$0xff]  ;;  %v653_v14 = vld [vmem:[#allocation5 + $0x148] sm:$0xff]  ;;  %v655_v21 = vld [vmem:[#allocation5 + $0x158] sm:$0xff]  ;;  %v7676_v25 = vpack.c.bf16 %v651_v9, %v648_v4 }
  0x6f   :  { %8910 = vst [vmem:[#allocation43_spill] sm:$0xff] %v7669_v59  ;;  %8911 = vst [vmem:[#allocation44_spill] sm:$0xff] %v7673_v5  ;;  %v658_v24 = vld [vmem:[#allocation5 + $0x170] sm:$0xff]  ;;  %v7680_v30 = vpack.c.bf16 %v653_v14, %v650_v13  ;;  %v657_v38 = vld [vmem:[#allocation5 + $0x168] sm:$0xff]  ;;  %v7699_v4 = vshrl.u32 %v107_v2, 7 }
  0x70   :  { %5714 = vmatpush3.bf16.msra.mxu1 %v7602_v23  ;;  %8912 = vst [vmem:[#allocation45_spill] sm:$0xff] %v7676_v25  ;;  %v7682_v32 = vpack.c.bf16 %v658_v24, %v655_v21  ;;  %v654_v33 = vld [vmem:[#allocation5 + $0x150] sm:$0xff]  ;;  %v656_v44 = vld [vmem:[#allocation5 + $0x160] sm:$0xff]  ;;  %v659_v46 = vld [vmem:[#allocation5 + $0x178] sm:$0xff] }
  0x71   :  { %5715 = vmatprep.subr.bf16.mxu1 %v8770_v34  ;;  %8913 = vst [vmem:[#allocation46_spill] sm:$0xff] %v7680_v30  ;;  %v802_v47 = vld [vmem:[#allocation7 + $0x8] sm:$0xff]  ;;  %v805_v53 = vld [vmem:[#allocation7 + $0x20] sm:$0xff]  ;;  %v7686_v55 = vpack.c.bf16 %v657_v38, %v654_v33  ;;  %v7690_v56 = vpack.c.bf16 %v659_v46, %v656_v44  ;;  %8918 = vst [vmem:[#allocation51_spill] sm:$0xff] %v7699_v4  ;;  %v8776_v9 = vsub.s32 2, %v7699_v4 }
  0x72   :  { %519 = vmatmul.mubr.f32.vlgmr.msra.gmra.mrb[14].mxu0 %v8768_v0  ;;  %8914 = vst [vmem:[#allocation47_spill] sm:$0xff] %v7682_v32  ;;  %v7692_v61 = vpack.c.bf16 %v805_v53, %v802_v47  ;;  %v105_v13 = vld [vmem:[%s8758_s2] sm:$0x7] }
  0x73   :  { %724 = vmatprep.mubr.f32.mxu0 %v8768_v0  ;;  %5721 = vmatpush1.bf16.msra.mxu0 %v7618_v37  ;;  %8915 = vst [vmem:[#allocation48_spill] sm:$0xff] %v7686_v55  ;;  %8916 = vst [vmem:[#allocation49_spill] sm:$0xff] %v7690_v56  ;;  %v118_v14 = vrot.slane %v105_v13, %v8776_v9 }
  0x74   :  { %5717 = vmatpush3.bf16.msra.mxu1 %v7606_v27  ;;  %5723 = vmatprep.subr.bf16.mxu0 %v7625_v45  ;;  %8917 = vst [vmem:[#allocation50_spill] sm:$0xff] %v7692_v61 }
  0x75   :  { %5750 = vmatprep.subr.bf16.mxu1 %v8770_v34 }
  0x77   :  { %4820 = vmatmul.mubr.f32.vlgmr.msra.gmra.mrb[8].mxu1 %v8768_v0  ;;  %5725 = vmatpush1.bf16.msra.mxu0 %v7628_v50 }
  0x78   :  { %4854 = vmatprep.mubr.msk.f32.mxu1 %vm7333_vm2, %v8768_v0  ;;  %5752 = vmatpush3.bf16.msra.mxu1 %v7621_v40 }
  0x79   :  { %5753 = vmatprep.subr.bf16.mxu1 %v8770_v34  ;;  %5727 = vmatprep.subr.bf16.mxu0 %v7635_v57 }
  0x7b   :  { %5729 = vmatpush1.bf16.msra.mxu0 %v7638_v1 }
  0x7c   :  { %5755 = vmatpush3.bf16.msra.mxu1 %v7631_v54  ;;  %5731 = vmatprep.subr.bf16.mxu0 %v7645_v6 }
  0x7d   :  { %5756 = vmatprep.subr.bf16.mxu1 %v8770_v34 }
  0x7f   :  { %5733 = vmatpush1.bf16.msra.mxu0 %v7648_v16 }
  0x80   :  { %5758 = vmatpush3.bf16.msra.mxu1 %v7641_v3  ;;  %5735 = vmatprep.subr.bf16.mxu0 %v7655_v29 }
  0x81   :  { %5759 = vmatprep.subr.bf16.mxu1 %v8770_v34 }
  0x83   :  { %5737 = vmatpush1.bf16.msra.mxu0 %v7658_v36 }
  0x84   :  { %5761 = vmatpush3.bf16.msra.mxu1 %v7651_v22  ;;  %5739 = vmatprep.subr.bf16.mxu0 %v7664_v48 }
  0x85   :  { %5762 = vmatprep.subr.bf16.mxu1 %v8770_v34 }
  0x87   :  { %5741 = vmatpush1.bf16.msra.mxu0 %v7667_v58 }
  0x88   :  { %5764 = vmatpush3.bf16.msra.mxu1 %v7661_v43  ;;  %5743 = vmatprep.subr.bf16.mxu0 %v7673_v5  ;;  %v806_v5 = vld [vmem:[#allocation7 + $0x28] sm:$0xff] }
  0x89   :  { %5765 = vmatprep.subr.bf16.mxu1 %v8770_v34 }
  0x8b   :  { %5745 = vmatpush1.bf16.msra.mxu0 %v7676_v25  ;;  %v803_v25 = vld [vmem:[#allocation7 + $0x10] sm:$0xff] }
  0x8c   :  { %5767 = vmatpush3.bf16.msra.mxu1 %v7669_v59  ;;  %5747 = vmatprep.subr.bf16.mxu0 %v7682_v32  ;;  %v811_v59 = vld [vmem:[#allocation7 + $0x50] sm:$0xff] }
  0x8d   :  { %5768 = vmatprep.subr.bf16.mxu1 %v8770_v34 }
  0x8f   :  { %5749 = vmatpush1.bf16.msra.mxu0 %v7686_v55 }
  0x90   :  { %5770 = vmatpush3.bf16.msra.mxu1 %v7680_v30  ;;  %5775 = vmatprep.subr.bf16.mxu0 %v7692_v61  ;;  %v804_v30 = vld [vmem:[#allocation7 + $0x18] sm:$0xff] }
  0x91   :  { %5771 = vmatprep.subr.bf16.mxu1 %v8770_v34 }
  0x94   :  { %5773 = vmatpush3.bf16.msra.mxu1 %v7690_v56 }
  0x95   :  { %5806 = vmatprep.subr.bf16.mxu1 %v8770_v34 }
 0x12a   :  { %v4777_v21 = vpop.f32.mrb[0].mxu1 }
 0x12b   :  { %v7707_v24 = vadd.f32 %v4777_v21, %v118_v14  ;;  %v336_v33 = vpop.f32.mrb[1].mxu1  ;;  %v8779_v21 = vsub.s32 0, %v7699_v4 }
 0x12c   :  { %v7709_v38 = vadd.f32 %v336_v33, %v118_v14 }
 0x12d   :  { %8919 = vst [vmem:[#allocation52_spill] sm:$0xff] %v7707_v24  ;;  %v7724_v33 = vrot.slane %v105_v13, %v8779_v21  ;;  %v7736_v21 = vld [vmem:[%s8760_s4] ss:$0 sm:$0xff] }
 0x12e   :  { %8920 = vst [vmem:[#allocation53_spill] sm:$0xff] %v7709_v38  ;;  %v4780_v44 = vpop.f32.mrb[2].mxu1 }
 0x12f   :  { %v7711_v46 = vadd.f32 %v4780_v44, %v118_v14  ;;  %v346_v47 = vpop.f32.mrb[3].mxu1  ;;  %8926 = vst [vmem:[#allocation59_spill] sm:$0xff] %v7724_v33 }
 0x130   :  { %v7713_v53 = vadd.f32 %v346_v47, %v118_v14 }
 0x131   :  { %8921 = vst [vmem:[#allocation54_spill] sm:$0xff] %v7711_v46 }
 0x132   :  { %8922 = vst [vmem:[#allocation55_spill] sm:$0xff] %v7713_v53  ;;  %v4783_v2 = vpop.f32.mrb[4].mxu1 }
 0x133   :  { %v7715_v0 = vadd.f32 %v4783_v2, %v118_v14  ;;  %v356_v34 = vpop.f32.mrb[5].mxu1  ;;  %v8784_v2 = vsub.s32 1, %v7699_v4 }
 0x134   :  { %v7717_v61 = vadd.f32 %v356_v34, %v118_v14 }
 0x135   :  { %8923 = vst [vmem:[#allocation56_spill] sm:$0xff] %v7715_v0  ;;  %v7730_v53 = vrot.slane %v105_v13, %v8784_v2 }
 0x136   :  { %8924 = vst [vmem:[#allocation57_spill] sm:$0xff] %v7717_v61  ;;  %v4786_v56 = vpop.f32.mrb[6].mxu1 }
 0x137   :  { %v366_v9 = vpop.f32.mrb[7].mxu1  ;;  %8927 = vst [vmem:[#allocation60_spill] sm:$0xff] %v7730_v53 }
 0x138   :  { %v7719_v55 = vadd.f32 %v366_v9, %v118_v14 }
 0x13a   :  { %8925 = vst [vmem:[#allocation58_spill] sm:$0xff] %v7719_v55 }
 0x145   :  { %v520_v44 = vpop.f32.mrb[14].mxu0 }
 0x146   :  { %v7044_v47 = vadd.f32 %v520_v44, %v7724_v33  ;;  %v522_v38 = vpop.f32.mrb[15].mxu0 }
 0x147   :  { %v7045_v46 = vadd.f32 %v522_v38, %v7730_v53  ;;  %v801_v38 = vld [vmem:[#allocation7] sm:$0xff] }
 0x148   :  { %v596_v24 = vmul.f32 0.5, %v7044_v47  ;;  %v372_v47 = vadd.f32 %v4786_v56, %v118_v14  ;;  %v7739_v58 = vpack.c.bf16 %v804_v30, %v801_v38  ;;  %v809_v14 = vld [vmem:[#allocation7 + $0x40] sm:$0xff]  ;;  %v8933_v38 = vmov 0.0  }
 0x149   :  { %v601_v61 = vmul.f32 0.5, %v7045_v46  ;;  %v808_v46 = vld [vmem:[#allocation7 + $0x38] sm:$0xff]  ;;  %v813_v30 = vld [vmem:[#allocation7 + $0x60] sm:$0xff] }
 0x14a   :  { %7106 = vtanh.f32 %v596_v24  ;;  %v591_v34 = vpop.f32.mrb[8].mxu1  ;;  %v7745_v56 = vpack.c.bf16 %v811_v59, %v808_v46  ;;  %v8931_v59 = vmov 0.0|0.0  }
 0x14b   :  { %v4821_v9 = vpop.f32.mrb[9].mxu1  ;;  %v605_v55 = vadd.f32 %v7736_v21, %v591_v34  ;;  %7108 = vtanh.f32 %v601_v61  ;;  %v7741_v61 = vpack.c.bf16 %v806_v5, %v803_v25  ;;  %v814_v34 = vld [vmem:[#allocation7 + $0x68] sm:$0xff] }
 0x14c   :  { %8928 = vst [vmem:[#allocation61_spill] sm:$0xff] %v7745_v56 }
 0x154   :  { %v7107_v44 = vpop.eup %7106 }
 0x155   :  { %v598_v0 = vmul.f32 0.5, %v7107_v44  ;;  %v7109_v13 = vpop.eup %7108 }
 0x156   :  { %v603_v9 = vmul.f32 0.5, %v7109_v13  ;;  %v820_v13 = vld [vmem:[#allocation7 + $0x98] sm:$0xff] }
 0x157   :  { %v599_v24 = vadd.f32 0.5, %v598_v0  ;;  %v807_v0 = vld [vmem:[#allocation7 + $0x30] sm:$0xff] }
 0x158   :  { %v604_v53 = vadd.f32 0.5, %v603_v9  ;;  %v823_v9 = vld [vmem:[#allocation7 + $0xb0] sm:$0xff] }
 0x159   :  { %v606_v33 = vmul.f32 %v605_v55, %v599_v24  ;;  %v817_v24 = vld [vmem:[#allocation7 + $0x80] sm:$0xff] }
 0x15b   :  { %v607_v4 = vadd.f32 %v606_v33, %v372_v47  ;;  %v812_v33 = vld [vmem:[#allocation7 + $0x58] sm:$0xff]  ;;  %v818_v47 = vld [vmem:[#allocation7 + $0x88] sm:$0xff] }
 0x15c   :  { %v7753_v25 = vpack.c.bf16 %v812_v33, %v809_v14  ;;  %v822_v14 = vld [vmem:[#allocation7 + $0xa8] sm:$0xff]  ;;  %v821_v33 = vld [vmem:[#allocation7 + $0xa0] sm:$0xff] }
 0x15d   :  { %7110 = vtanh.f32 %v607_v4  ;;  %v810_v4 = vld [vmem:[#allocation7 + $0x48] sm:$0xff] }
 0x15e   :  { %v7751_v5 = vpack.c.bf16 %v810_v4, %v807_v0  ;;  %8930 = vst [vmem:[#allocation63_spill] sm:$0xff] %v7753_v25  ;;  %v819_v0 = vld [vmem:[#allocation7 + $0x90] sm:$0xff]  ;;  %v7770_v4 = vpack.c.bf16 %v823_v9, %v820_v13  ;;  %v828_v13 = vld [vmem:[#allocation7 + $0xd8] sm:$0xff] }
 0x15f   :  { %v827_v9 = vld [vmem:[#allocation7 + $0xd0] sm:$0xff] }
 0x160   :  { %8929 = vst [vmem:[#allocation62_spill] sm:$0xff] %v7751_v5  ;;  %8936 = vst [vmem:[#allocation67_spill] sm:$0xff] %v7770_v4 }
 0x167   :  { %v7111_v2 = vpop.eup %7110 }
 0x168   :  { %v609_v32 = vsub.f32 0.0, %v7111_v2 }
 0x16a   :  { %v610_v44 = vmul.f32 %v609_v32, %v604_v53  ;;  %v7757_v32 = vpack.c.bf16 %v817_v24, %v814_v34  ;;  %v816_v53 = vld [vmem:[#allocation7 + $0x78] sm:$0xff]  ;;  %v826_v24 = vld [vmem:[#allocation7 + $0xc8] sm:$0xff] }
 0x16b   :  { %v7764_v46 = vpack.c.bf16 %v816_v53, %v813_v30  ;;  %v824_v34 = vld [vmem:[#allocation7 + $0xb8] sm:$0xff]  ;;  %v7774_v30 = vpack.c.bf16 %v822_v14, %v819_v0 }
 0x16c   :  { %v7743_v55 = vadd.f32 %v7111_v2, %v610_v44  ;;  %8932 = vst [vmem:[#allocation64_spill] sm:$0xff] %v7757_v32  ;;  %v815_v2 = vld [vmem:[#allocation7 + $0x70] sm:$0xff]  ;;  %v7776_v53 = vpack.c.bf16 %v824_v34, %v821_v33  ;;  %v834_v34 = vld [vmem:[#allocation7 + $0x108] sm:$0xff] }
 0x16d   :  { %8934 = vst [vmem:[#allocation65_spill] sm:$0xff] %v7764_v46  ;;  %v7766_v44 = vpack.c.bf16 %v818_v47, %v815_v2  ;;  %8937 = vst [vmem:[#allocation68_spill] sm:$0xff] %v7774_v30  ;;  %v825_v2 = vld [vmem:[#allocation7 + $0xc0] sm:$0xff]  ;;  %v831_v33 = vld [vmem:[#allocation7 + $0xf0] sm:$0xff] }
 0x16e   :  { %725 = vmatmul.mubr.f32.vlgmr.msra.gmra.mrb[16].mxu0 %v7743_v55  ;;  %4855 = vmatmul.mubr.f32.vlgmr.msra.gmra.mrb[10].mxu1 %v7743_v55  ;;  %8938 = vst [vmem:[#allocation69_spill] sm:$0xff] %v7776_v53  ;;  %v7784_v0 = vpack.c.bf16 %v828_v13, %v825_v2  ;;  %v7794_v2 = vpack.c.bf16 %v834_v34, %v831_v33  ;;  %v837_v13 = vld [vmem:[#allocation7 + $0x120] sm:$0xff]  ;;  %v843_v34 = vld [vmem:[#allocation7 + $0x150] sm:$0xff] }
 0x16f   :  { %5777 = vmatpush1.bf16.msra.mxu0 %v7739_v58  ;;  %5808 = vmatpush3.bf16.msra.mxu1 %v7741_v61  ;;  %8935 = vst [vmem:[#allocation66_spill] sm:$0xff] %v7766_v44 }
 0x170   :  { %5779 = vmatprep.subr.bf16.mxu0 %v7745_v56  ;;  %5809 = vmatprep.subr.bf16.mxu1 %v8931_v59  ;;  %v829_v56 = vld [vmem:[#allocation7 + $0xe0] sm:$0xff]  ;;  %8941 = vst [vmem:[#allocation72_spill] sm:$0xff] %v7794_v2 }
 0x171   :  { %913 = vmatprep.mubr.f32.mxu0 %v8933_v38  ;;  %4889 = vmatprep.mubr.msk.f32.mxu1 %vm7333_vm2, %v8933_v38  ;;  %v7780_v47 = vpack.c.bf16 %v829_v56, %v826_v24  ;;  %v833_v24 = vld [vmem:[#allocation7 + $0x100] sm:$0xff] }
 0x173   :  { %5781 = vmatpush1.bf16.msra.mxu0 %v7751_v5  ;;  %5811 = vmatpush3.bf16.msra.mxu1 %v7753_v25  ;;  %8939 = vst [vmem:[#allocation70_spill] sm:$0xff] %v7780_v47  ;;  %v832_v25 = vld [vmem:[#allocation7 + $0xf8] sm:$0xff]  ;;  %v835_v5 = vld [vmem:[#allocation7 + $0x110] sm:$0xff] }
 0x174   :  { %5783 = vmatprep.subr.bf16.mxu0 %v7757_v32  ;;  %5812 = vmatprep.subr.bf16.mxu1 %v8931_v59  ;;  %v830_v32 = vld [vmem:[#allocation7 + $0xe8] sm:$0xff]  ;;  %v7790_v56 = vpack.c.bf16 %v835_v5, %v832_v25  ;;  %v840_v25 = vld [vmem:[#allocation7 + $0x138] sm:$0xff] }
 0x175   :  { %v7786_v14 = vpack.c.bf16 %v830_v32, %v827_v9  ;;  %v839_v9 = vld [vmem:[#allocation7 + $0x130] sm:$0xff]  ;;  %v7804_v33 = vpack.c.bf16 %v840_v25, %v837_v13  ;;  %v8946_v25 = vld [vmem:[#allocation46_spill] sm:$0xff] }
 0x176   :  { %8940 = vst [vmem:[#allocation71_spill] sm:$0xff] %v7790_v56 }
 0x177   :  { %5785 = vmatpush1.bf16.msra.mxu0 %v7764_v46  ;;  %5814 = vmatpush3.bf16.msra.mxu1 %v7766_v44  ;;  %v838_v44 = vld [vmem:[#allocation7 + $0x128] sm:$0xff]  ;;  %v841_v46 = vld [vmem:[#allocation7 + $0x140] sm:$0xff] }
 0x178   :  { %5787 = vmatprep.subr.bf16.mxu0 %v7770_v4  ;;  %5815 = vmatprep.subr.bf16.mxu1 %v8931_v59  ;;  %v836_v4 = vld [vmem:[#allocation7 + $0x118] sm:$0xff]  ;;  %v7800_v5 = vpack.c.bf16 %v841_v46, %v838_v44  ;;  %v846_v44 = vld [vmem:[#allocation7 + $0x168] sm:$0xff] }
 0x179   :  { %v7796_v32 = vpack.c.bf16 %v836_v4, %v833_v24  ;;  %v845_v24 = vld [vmem:[#allocation7 + $0x160] sm:$0xff] }
 0x17b   :  { %5789 = vmatpush1.bf16.msra.mxu0 %v7774_v30  ;;  %5817 = vmatpush3.bf16.msra.mxu1 %v7776_v53  ;;  %v844_v53 = vld [vmem:[#allocation7 + $0x158] sm:$0xff]  ;;  %v847_v30 = vld [vmem:[#allocation7 + $0x170] sm:$0xff] }
 0x17c   :  { %5791 = vmatprep.subr.bf16.mxu0 %v7780_v47  ;;  %5818 = vmatprep.subr.bf16.mxu1 %v8931_v59  ;;  %v842_v47 = vld [vmem:[#allocation7 + $0x148] sm:$0xff]  ;;  %v7810_v46 = vpack.c.bf16 %v847_v30, %v844_v53  ;;  %v8942_v30 = vld [vmem:[#allocation42_spill] sm:$0xff] }
 0x17d   :  { %v7806_v4 = vpack.c.bf16 %v842_v47, %v839_v9  ;;  %v8943_v53 = vld [vmem:[#allocation43_spill] sm:$0xff]  ;;  %v8944_v47 = vld [vmem:[#allocation44_spill] sm:$0xff] }
 0x17e   :  { %v8947_v9 = vld [vmem:[#allocation47_spill] sm:$0xff] }
 0x17f   :  { %5793 = vmatpush1.bf16.msra.mxu0 %v7784_v0  ;;  %5820 = vmatpush3.bf16.msra.mxu1 %v7786_v14 }
 0x180   :  { %5795 = vmatprep.subr.bf16.mxu0 %v7790_v56  ;;  %5821 = vmatprep.subr.bf16.mxu1 %v8931_v59  ;;  %v848_v56 = vld [vmem:[#allocation7 + $0x178] sm:$0xff] }
 0x181   :  { %v7816_v13 = vpack.c.bf16 %v848_v56, %v845_v24  ;;  %v8945_v56 = vld [vmem:[#allocation45_spill] sm:$0xff]  ;;  %v8950_v24 = vld [vmem:[#allocation50_spill] sm:$0xff] }
 0x183   :  { %5797 = vmatpush1.bf16.msra.mxu0 %v7794_v2  ;;  %5823 = vmatpush3.bf16.msra.mxu1 %v7796_v32  ;;  %v7814_v2 = vpack.c.bf16 %v846_v44, %v843_v34  ;;  %v8948_v34 = vld [vmem:[#allocation48_spill] sm:$0xff]  ;;  %v8949_v44 = vld [vmem:[#allocation49_spill] sm:$0xff] }
 0x184   :  { %5799 = vmatprep.subr.bf16.mxu0 %v7800_v5  ;;  %5824 = vmatprep.subr.bf16.mxu1 %v8931_v59 }
 0x187   :  { %5801 = vmatpush1.bf16.msra.mxu0 %v7804_v33  ;;  %5826 = vmatpush3.bf16.msra.mxu1 %v7806_v4 }
 0x188   :  { %5803 = vmatprep.subr.bf16.mxu0 %v7810_v46  ;;  %5827 = vmatprep.subr.bf16.mxu1 %v8931_v59 }
 0x18b   :  { %5805 = vmatpush1.bf16.msra.mxu0 %v7814_v2  ;;  %5829 = vmatpush3.bf16.msra.mxu1 %v7816_v13 }
 0x18c   :  { %5831 = vmatprep.subr.bf16.mxu0 %v7479_v7  ;;  %5862 = vmatprep.subr.bf16.mxu1 %v8931_v59 }
 0x18e   :  { %914 = vmatmul.mubr.f32.vlgmr.msra.gmra.mrb[16].mxu0 %v8933_v38  ;;  %4890 = vmatmul.mubr.f32.vlgmr.msra.gmra.mrb[12].mxu1 %v8933_v38 }
 0x18f   :  { %5833 = vmatpush1.bf16.msra.mxu0 %v7482_v10  ;;  %5864 = vmatpush3.bf16.msra.mxu1 %v7515_v35 }
 0x190   :  { %5835 = vmatprep.subr.bf16.mxu0 %v7489_v15  ;;  %5865 = vmatprep.subr.bf16.mxu1 %v8931_v59 }
 0x191   :  { %1071 = vmatprep.mubr.f32.mxu0 %v8933_v38  ;;  %4924 = vmatprep.mubr.msk.f32.mxu1 %vm7333_vm2, %v8933_v38 }
 0x193   :  { %5837 = vmatpush1.bf16.msra.mxu0 %v7492_v18  ;;  %5867 = vmatpush3.bf16.msra.mxu1 %v7526_v41 }
 0x194   :  { %5839 = vmatprep.subr.bf16.mxu0 %v7495_v19  ;;  %5868 = vmatprep.subr.bf16.mxu1 %v8931_v59 }
 0x197   :  { %5841 = vmatpush1.bf16.msra.mxu0 %v7506_v26  ;;  %5870 = vmatpush3.bf16.msra.mxu1 %v7543_v51 }
 0x198   :  { %5843 = vmatprep.subr.bf16.mxu0 %v7510_v28  ;;  %5871 = vmatprep.subr.bf16.mxu1 %v8931_v59 }
 0x19b   :  { %5845 = vmatpush1.bf16.msra.mxu0 %v7523_v39  ;;  %5873 = vmatpush3.bf16.msra.mxu1 %v7563_v62 }
 0x19c   :  { %5847 = vmatprep.subr.bf16.mxu0 %v7529_v42  ;;  %5874 = vmatprep.subr.bf16.mxu1 %v8931_v59 }
 0x19f   :  { %5849 = vmatpush1.bf16.msra.mxu0 %v7540_v49  ;;  %5876 = vmatpush3.bf16.msra.mxu1 %v7580_v11 }
 0x1a0   :  { %5851 = vmatprep.subr.bf16.mxu0 %v7546_v52  ;;  %5877 = vmatprep.subr.bf16.mxu1 %v8931_v59 }
 0x1a3   :  { %5853 = vmatpush1.bf16.msra.mxu0 %v7560_v60  ;;  %5879 = vmatpush3.bf16.msra.mxu1 %v7594_v20 }
 0x1a4   :  { %5855 = vmatprep.subr.bf16.mxu0 %v7566_v63  ;;  %5880 = vmatprep.subr.bf16.mxu1 %v8931_v59 }
 0x1a7   :  { %5857 = vmatpush1.bf16.msra.mxu0 %v7577_v8  ;;  %5882 = vmatpush3.bf16.msra.mxu1 %v7602_v23 }
 0x1a8   :  { %5859 = vmatprep.subr.bf16.mxu0 %v7583_v12  ;;  %5883 = vmatprep.subr.bf16.mxu1 %v8931_v59 }
 0x1ab   :  { %5861 = vmatpush1.bf16.msra.mxu0 %v7591_v17  ;;  %5885 = vmatpush3.bf16.msra.mxu1 %v7606_v27 }
 0x1ac   :  { %5887 = vmatprep.subr.bf16.mxu0 %v7616_v31  ;;  %5918 = vmatprep.subr.bf16.mxu1 %v8931_v59 }
 0x1ae   :  { %1072 = vmatmul.mubr.f32.vlgmr.msra.gmra.mrb[12].mxu0 %v7743_v55  ;;  %4925 = vmatmul.mubr.f32.vlgmr.msra.gmra.mrb[14].mxu1 %v7743_v55 }
 0x1af   :  { %5889 = vmatpush1.bf16.msra.mxu0 %v7618_v37  ;;  %5920 = vmatpush3.bf16.msra.mxu1 %v7621_v40 }
 0x1b0   :  { %5891 = vmatprep.subr.bf16.mxu0 %v7625_v45  ;;  %5921 = vmatprep.subr.bf16.mxu1 %v8931_v59 }
 0x1b1   :  { %1229 = vmatprep.mubr.f32.mxu0 %v8933_v38  ;;  %4959 = vmatprep.mubr.msk.f32.mxu1 %vm7333_vm2, %v8933_v38 }
 0x1b3   :  { %5893 = vmatpush1.bf16.msra.mxu0 %v7628_v50  ;;  %5923 = vmatpush3.bf16.msra.mxu1 %v7631_v54 }
 0x1b4   :  { %5895 = vmatprep.subr.bf16.mxu0 %v7635_v57  ;;  %5924 = vmatprep.subr.bf16.mxu1 %v8931_v59 }
 0x1b7   :  { %5897 = vmatpush1.bf16.msra.mxu0 %v7638_v1  ;;  %5926 = vmatpush3.bf16.msra.mxu1 %v7641_v3 }
 0x1b8   :  { %5899 = vmatprep.subr.bf16.mxu0 %v7645_v6  ;;  %5927 = vmatprep.subr.bf16.mxu1 %v8931_v59 }
 0x1bb   :  { %5901 = vmatpush1.bf16.msra.mxu0 %v7648_v16  ;;  %5929 = vmatpush3.bf16.msra.mxu1 %v7651_v22  ;;  %v7914_v16 = vld [vmem:[%s8764_s8] ss:$0 sm:$0xff] }
 0x1bc   :  { %5903 = vmatprep.subr.bf16.mxu0 %v7655_v29  ;;  %5930 = vmatprep.subr.bf16.mxu1 %v8931_v59 }
 0x1bf   :  { %5905 = vmatpush1.bf16.msra.mxu0 %v7658_v36  ;;  %5932 = vmatpush3.bf16.msra.mxu1 %v7661_v43 }
 0x1c0   :  { %5907 = vmatprep.subr.bf16.mxu0 %v7664_v48  ;;  %5933 = vmatprep.subr.bf16.mxu1 %v8931_v59 }
 0x1c3   :  { %5909 = vmatpush1.bf16.msra.mxu0 %v8942_v30  ;;  %5935 = vmatpush3.bf16.msra.mxu1 %v8943_v53  ;;  %v8951_v30 = vld [vmem:[#allocation51_spill] sm:$0xff] }
 0x1c4   :  { %5911 = vmatprep.subr.bf16.mxu0 %v8944_v47  ;;  %5936 = vmatprep.subr.bf16.mxu1 %v8931_v59  ;;  %v8956_v3 = vsub.s32 2, %v8951_v30 }
 0x1c7   :  { %5913 = vmatpush1.bf16.msra.mxu0 %v8945_v56  ;;  %5938 = vmatpush3.bf16.msra.mxu1 %v8946_v25  ;;  %v382_v56 = vld [vmem:[%s8763_s7] sm:$0x7]  ;;  %v8952_v25 = vsub.s32 0, %v8951_v30 }
 0x1c8   :  { %5915 = vmatprep.subr.bf16.mxu0 %v8947_v9  ;;  %5939 = vmatprep.subr.bf16.mxu1 %v8931_v59 }
 0x1c9   :  { %v7903_v48 = vrot.slane %v382_v56, %v8952_v25 }
 0x1cb   :  { %5917 = vmatpush1.bf16.msra.mxu0 %v8948_v34  ;;  %5941 = vmatpush3.bf16.msra.mxu1 %v8949_v44  ;;  %8953 = vst [vmem:[#allocation51_spill] sm:$0xff] %v7903_v48 }
 0x1cc   :  { %5943 = vmatprep.subr.bf16.mxu0 %v8950_v24  ;;  %5974 = vmatprep.subr.bf16.mxu1 %v8931_v59  ;;  %v8954_v24 = vsub.s32 1, %v8951_v30 }
 0x1ce   :  { %v7908_v22 = vrot.slane %v382_v56, %v8954_v24 }
 0x1d0   :  { %8955 = vst [vmem:[#allocation73_spill] sm:$0xff] %v7908_v22 }
 0x241   :  { %v797_v53 = vpop.f32.mrb[10].mxu1 }
 0x242   :  { %v4856_v47 = vpop.f32.mrb[11].mxu1 }
 0x261   :  { %v915_v9 = vpop.f32.mrb[16].mxu0  ;;  %v986_v43 = vpop.f32.mrb[12].mxu1 }
 0x262   :  { %v7046_v34 = vadd.f32 %v915_v9, %v7903_v48  ;;  %v917_v36 = vpop.f32.mrb[17].mxu0  ;;  %v4891_v44 = vpop.f32.mrb[13].mxu1  ;;  %v7918_v9 = vrot.slane %v382_v56, %v8956_v3 }
 0x263   :  { %v7047_v47 = vadd.f32 %v917_v36, %v7908_v22 }
 0x264   :  { %v991_v29 = vmul.f32 0.5, %v7046_v34  ;;  %v798_v24 = vadd.f32 %v797_v53, %v7918_v9  ;;  %v8958_v53 = vld [vmem:[#allocation60_spill] sm:$0xff] }
 0x265   :  { %v996_v25 = vmul.f32 0.5, %v7047_v47  ;;  %v8957_v47 = vld [vmem:[#allocation59_spill] sm:$0xff] }
 0x266   :  { %7112 = vtanh.f32 %v991_v29  ;;  %v1000_v29 = vadd.f32 %v7914_v16, %v986_v43 }
 0x267   :  { %7114 = vtanh.f32 %v996_v25 }
 0x270   :  { %v7113_v6 = vpop.eup %7112 }
 0x271   :  { %v993_v44 = vmul.f32 0.5, %v7113_v6  ;;  %v7115_v22 = vpop.eup %7114 }
 0x272   :  { %v998_v1 = vmul.f32 0.5, %v7115_v22 }
 0x273   :  { %v994_v34 = vadd.f32 0.5, %v993_v44 }
 0x274   :  { %v999_v56 = vadd.f32 0.5, %v998_v1 }
 0x275   :  { %v1001_v48 = vmul.f32 %v1000_v29, %v994_v34 }
 0x277   :  { %v1002_v36 = vadd.f32 %v1001_v48, %v798_v24 }
 0x279   :  { %7116 = vtanh.f32 %v1002_v36  ;;  %v8959_v36 = vld [vmem:[#allocation58_spill] sm:$0xff] }
 0x281   :  { %v1073_v57 = vpop.f32.mrb[12].mxu0  ;;  %v1144_v54 = vpop.f32.mrb[14].mxu1 }
 0x282   :  { %v7042_v50 = vadd.f32 %v1073_v57, %v8957_v47  ;;  %v1075_v45 = vpop.f32.mrb[13].mxu0  ;;  %v4926_v30 = vpop.f32.mrb[15].mxu1  ;;  %v1158_v24 = vadd.f32 %v7736_v21, %v1144_v54  ;;  %v8961_v54 = vld [vmem:[#allocation62_spill] sm:$0xff] }
 0x283   :  { %v7117_v3 = vpop.eup %7116  ;;  %v7043_v44 = vadd.f32 %v1075_v45, %v8958_v53  ;;  %v8960_v45 = vld [vmem:[#allocation61_spill] sm:$0xff] }
 0x284   :  { %v1149_v6 = vmul.f32 0.5, %v7042_v50  ;;  %v1004_v40 = vsub.f32 0.0, %v7117_v3 }
 0x285   :  { %v1154_v48 = vmul.f32 0.5, %v7043_v44  ;;  %v8965_v44 = vld [vmem:[#allocation66_spill] sm:$0xff] }
 0x286   :  { %7118 = vtanh.f32 %v1149_v6  ;;  %v1005_v43 = vmul.f32 %v1004_v40, %v999_v56 }
 0x287   :  { %7120 = vtanh.f32 %v1154_v48  ;;  %v8966_v48 = vld [vmem:[#allocation67_spill] sm:$0xff] }
 0x288   :  { %v7923_v25 = vadd.f32 %v7117_v3, %v1005_v43  ;;  %v8964_v43 = vld [vmem:[#allocation65_spill] sm:$0xff] }
 0x290   :  { %v7119_v29 = vpop.eup %7118 }
 0x291   :  { %v1151_v34 = vmul.f32 0.5, %v7119_v29  ;;  %v7121_v1 = vpop.eup %7120  ;;  %v8967_v29 = vld [vmem:[#allocation68_spill] sm:$0xff] }
 0x292   :  { %v1156_v50 = vmul.f32 0.5, %v7121_v1  ;;  %v8974_v1 = vld [vmem:[#allocation30_spill] sm:$0xff] }
 0x293   :  { %v1152_v22 = vadd.f32 0.5, %v1151_v34  ;;  %v8968_v34 = vld [vmem:[#allocation69_spill] sm:$0xff] }
 0x294   :  { %v1157_v6 = vadd.f32 0.5, %v1156_v50  ;;  %v8975_v50 = vld [vmem:[#allocation31_spill] sm:$0xff] }
 0x295   :  { %v1159_v57 = vmul.f32 %v1158_v24, %v1152_v22  ;;  %v8969_v22 = vld [vmem:[#allocation70_spill] sm:$0xff]  ;;  %v8970_v24 = vld [vmem:[#allocation71_spill] sm:$0xff] }
 0x297   :  { %v1160_v30 = vadd.f32 %v1159_v57, %v8959_v36  ;;  %v8971_v57 = vld [vmem:[#allocation72_spill] sm:$0xff] }
 0x298   :  { %v8972_v36 = vld [vmem:[#allocation28_spill] sm:$0xff] }
 0x299   :  { %7122 = vtanh.f32 %v1160_v30  ;;  %v8973_v30 = vld [vmem:[#allocation29_spill] sm:$0xff] }
 0x2a3   :  { %v7123_v47 = vpop.eup %7122 }
 0x2a4   :  { %v1162_v40 = vsub.f32 %v7743_v55, %v7123_v47  ;;  %v8962_v55 = vld [vmem:[#allocation63_spill] sm:$0xff] }
 0x2a6   :  { %v1163_v3 = vmul.f32 %v1162_v40, %v1157_v6  ;;  %v8976_v6 = vld [vmem:[#allocation32_spill] sm:$0xff]  ;;  %v8977_v40 = vld [vmem:[#allocation33_spill] sm:$0xff] }
 0x2a8   :  { %v7929_v56 = vadd.f32 %v7123_v47, %v1163_v3  ;;  %v8963_v47 = vld [vmem:[#allocation64_spill] sm:$0xff]  ;;  %v8978_v3 = vld [vmem:[#allocation34_spill] sm:$0xff] }
 0x2aa   :  { %1230 = vmatmul.mubr.f32.vlgmr.msra.gmra.mrb[18].mxu0 %v7929_v56  ;;  %4960 = vmatmul.mubr.f32.vlgmr.msra.gmra.mrb[16].mxu1 %v7929_v56 }
 0x2ab   :  { %5945 = vmatpush1.bf16.msra.mxu0 %v7739_v58  ;;  %5976 = vmatpush3.bf16.msra.mxu1 %v7741_v61 }
 0x2ac   :  { %5947 = vmatprep.subr.bf16.mxu0 %v8960_v45  ;;  %5977 = vmatprep.subr.bf16.mxu1 %v8931_v59 }
 0x2ad   :  { %1370 = vmatprep.mubr.f32.mxu0 %v8933_v38  ;;  %4994 = vmatprep.mubr.msk.f32.mxu1 %vm7333_vm2, %v8933_v38 }
 0x2af   :  { %5949 = vmatpush1.bf16.msra.mxu0 %v8961_v54  ;;  %5979 = vmatpush3.bf16.msra.mxu1 %v8962_v55 }
 0x2b0   :  { %5951 = vmatprep.subr.bf16.mxu0 %v8963_v47  ;;  %5980 = vmatprep.subr.bf16.mxu1 %v8931_v59 }
 0x2b3   :  { %5953 = vmatpush1.bf16.msra.mxu0 %v8964_v43  ;;  %5982 = vmatpush3.bf16.msra.mxu1 %v8965_v44 }
 0x2b4   :  { %5955 = vmatprep.subr.bf16.mxu0 %v8966_v48  ;;  %5983 = vmatprep.subr.bf16.mxu1 %v8931_v59 }
 0x2b7   :  { %5957 = vmatpush1.bf16.msra.mxu0 %v8967_v29  ;;  %5985 = vmatpush3.bf16.msra.mxu1 %v8968_v34 }
 0x2b8   :  { %5959 = vmatprep.subr.bf16.mxu0 %v8969_v22  ;;  %5986 = vmatprep.subr.bf16.mxu1 %v8931_v59 }
 0x2bb   :  { %5961 = vmatpush1.bf16.msra.mxu0 %v7784_v0  ;;  %5988 = vmatpush3.bf16.msra.mxu1 %v7786_v14 }
 0x2bc   :  { %5963 = vmatprep.subr.bf16.mxu0 %v8970_v24  ;;  %5989 = vmatprep.subr.bf16.mxu1 %v8931_v59 }
 0x2bf   :  { %5965 = vmatpush1.bf16.msra.mxu0 %v8971_v57  ;;  %5991 = vmatpush3.bf16.msra.mxu1 %v7796_v32 }
 0x2c0   :  { %5967 = vmatprep.subr.bf16.mxu0 %v7800_v5  ;;  %5992 = vmatprep.subr.bf16.mxu1 %v8931_v59 }
 0x2c3   :  { %5969 = vmatpush1.bf16.msra.mxu0 %v7804_v33  ;;  %5994 = vmatpush3.bf16.msra.mxu1 %v7806_v4 }
 0x2c4   :  { %5971 = vmatprep.subr.bf16.mxu0 %v7810_v46  ;;  %5995 = vmatprep.subr.bf16.mxu1 %v8931_v59 }
 0x2c7   :  { %5973 = vmatpush1.bf16.msra.mxu0 %v7814_v2  ;;  %5997 = vmatpush3.bf16.msra.mxu1 %v7816_v13 }
 0x2c8   :  { %5999 = vmatprep.subr.bf16.mxu0 %v7479_v7  ;;  %6030 = vmatprep.subr.bf16.mxu1 %v8931_v59 }
 0x2ca   :  { %1371 = vmatmul.mubr.f32.vlgmr.msra.gmra.mrb[18].mxu0 %v7923_v25  ;;  %4995 = vmatmul.mubr.f32.vlgmr.msra.gmra.mrb[18].mxu1 %v7923_v25 }
 0x2cb   :  { %6001 = vmatpush1.bf16.msra.mxu0 %v7482_v10  ;;  %6032 = vmatpush3.bf16.msra.mxu1 %v7515_v35 }
 0x2cc   :  { %6003 = vmatprep.subr.bf16.mxu0 %v7489_v15  ;;  %6033 = vmatprep.subr.bf16.mxu1 %v8931_v59 }
 0x2cd   :  { %1528 = vmatprep.mubr.f32.mxu0 %v8933_v38  ;;  %5029 = vmatprep.mubr.msk.f32.mxu1 %vm7333_vm2, %v8933_v38 }
 0x2cf   :  { %6005 = vmatpush1.bf16.msra.mxu0 %v7492_v18  ;;  %6035 = vmatpush3.bf16.msra.mxu1 %v7526_v41 }
 0x2d0   :  { %6007 = vmatprep.subr.bf16.mxu0 %v7495_v19  ;;  %6036 = vmatprep.subr.bf16.mxu1 %v8931_v59 }
 0x2d3   :  { %6009 = vmatpush1.bf16.msra.mxu0 %v7506_v26  ;;  %6038 = vmatpush3.bf16.msra.mxu1 %v7543_v51 }
 0x2d4   :  { %6011 = vmatprep.subr.bf16.mxu0 %v7510_v28  ;;  %6039 = vmatprep.subr.bf16.mxu1 %v8931_v59 }
 0x2d7   :  { %6013 = vmatpush1.bf16.msra.mxu0 %v7523_v39  ;;  %6041 = vmatpush3.bf16.msra.mxu1 %v7563_v62 }
 0x2d8   :  { %6015 = vmatprep.subr.bf16.mxu0 %v7529_v42  ;;  %6042 = vmatprep.subr.bf16.mxu1 %v8931_v59 }
 0x2db   :  { %6017 = vmatpush1.bf16.msra.mxu0 %v7540_v49  ;;  %6044 = vmatpush3.bf16.msra.mxu1 %v7580_v11 }
 0x2dc   :  { %6019 = vmatprep.subr.bf16.mxu0 %v7546_v52  ;;  %6045 = vmatprep.subr.bf16.mxu1 %v8931_v59 }
 0x2df   :  { %6021 = vmatpush1.bf16.msra.mxu0 %v7560_v60  ;;  %6047 = vmatpush3.bf16.msra.mxu1 %v7594_v20 }
 0x2e0   :  { %6023 = vmatprep.subr.bf16.mxu0 %v7566_v63  ;;  %6048 = vmatprep.subr.bf16.mxu1 %v8931_v59 }
 0x2e3   :  { %6025 = vmatpush1.bf16.msra.mxu0 %v7577_v8  ;;  %6050 = vmatpush3.bf16.msra.mxu1 %v7602_v23 }
 0x2e4   :  { %6027 = vmatprep.subr.bf16.mxu0 %v7583_v12  ;;  %6051 = vmatprep.subr.bf16.mxu1 %v8931_v59 }
 0x2e7   :  { %6029 = vmatpush1.bf16.msra.mxu0 %v7591_v17  ;;  %6053 = vmatpush3.bf16.msra.mxu1 %v7606_v27  ;;  %v8995_v17 = vld [vmem:[#allocation51_spill] sm:$0xff] }
 0x2e8   :  { %6055 = vmatprep.subr.bf16.mxu0 %v7616_v31  ;;  %6086 = vmatprep.subr.bf16.mxu1 %v8931_v59  ;;  %v8982_v31 = vld [vmem:[#allocation38_spill] sm:$0xff] }
 0x2ea   :  { %1529 = vmatmul.mubr.f32.vlgmr.msra.gmra.mrb[10].mxu0 %v7929_v56  ;;  %5030 = vmatmul.mubr.f32.vlgmr.msra.gmra.mrb[20].mxu1 %v7929_v56 }
 0x2eb   :  { %6057 = vmatpush1.bf16.msra.mxu0 %v7618_v37  ;;  %6088 = vmatpush3.bf16.msra.mxu1 %v8972_v36  ;;  %v8980_v36 = vld [vmem:[#allocation36_spill] sm:$0xff]  ;;  %v8981_v37 = vld [vmem:[#allocation37_spill] sm:$0xff] }
 0x2ec   :  { %6059 = vmatprep.subr.bf16.mxu0 %v8973_v30  ;;  %6089 = vmatprep.subr.bf16.mxu1 %v8931_v59  ;;  %v8979_v30 = vld [vmem:[#allocation35_spill] sm:$0xff] }
 0x2ed   :  { %1686 = vmatprep.mubr.f32.mxu0 %v8933_v38  ;;  %5064 = vmatprep.mubr.msk.f32.mxu1 %vm7333_vm2, %v8933_v38 }
 0x2ef   :  { %6061 = vmatpush1.bf16.msra.mxu0 %v8974_v1  ;;  %6091 = vmatpush3.bf16.msra.mxu1 %v8975_v50  ;;  %v8983_v50 = vld [vmem:[#allocation39_spill] sm:$0xff]  ;;  %v8985_v1 = vld [vmem:[#allocation41_spill] sm:$0xff] }
 0x2f0   :  { %6063 = vmatprep.subr.bf16.mxu0 %v8976_v6  ;;  %6092 = vmatprep.subr.bf16.mxu1 %v8931_v59  ;;  %v8984_v6 = vld [vmem:[#allocation40_spill] sm:$0xff] }
 0x2f3   :  { %6065 = vmatpush1.bf16.msra.mxu0 %v8977_v40  ;;  %6094 = vmatpush3.bf16.msra.mxu1 %v8978_v3  ;;  %v8986_v3 = vld [vmem:[#allocation42_spill] sm:$0xff]  ;;  %v8988_v40 = vld [vmem:[#allocation44_spill] sm:$0xff] }
 0x2f4   :  { %6067 = vmatprep.subr.bf16.mxu0 %v8979_v30  ;;  %6095 = vmatprep.subr.bf16.mxu1 %v8931_v59  ;;  %v8987_v30 = vld [vmem:[#allocation43_spill] sm:$0xff] }
 0x2f7   :  { %6069 = vmatpush1.bf16.msra.mxu0 %v8980_v36  ;;  %6097 = vmatpush3.bf16.msra.mxu1 %v8981_v37  ;;  %v8989_v37 = vld [vmem:[#allocation45_spill] sm:$0xff]  ;;  %v8991_v36 = vld [vmem:[#allocation47_spill] sm:$0xff] }
 0x2f8   :  { %6071 = vmatprep.subr.bf16.mxu0 %v8982_v31  ;;  %6098 = vmatprep.subr.bf16.mxu1 %v8931_v59  ;;  %v8990_v31 = vld [vmem:[#allocation46_spill] sm:$0xff] }
 0x2fb   :  { %6073 = vmatpush1.bf16.msra.mxu0 %v8983_v50  ;;  %6100 = vmatpush3.bf16.msra.mxu1 %v8984_v6  ;;  %v8992_v6 = vld [vmem:[#allocation48_spill] sm:$0xff]  ;;  %v8994_v50 = vld [vmem:[#allocation50_spill] sm:$0xff] }
 0x2fc   :  { %6075 = vmatprep.subr.bf16.mxu0 %v8985_v1  ;;  %6101 = vmatprep.subr.bf16.mxu1 %v8931_v59  ;;  %v8993_v1 = vld [vmem:[#allocation49_spill] sm:$0xff] }
 0x2ff   :  { %6077 = vmatpush1.bf16.msra.mxu0 %v8986_v3  ;;  %6103 = vmatpush3.bf16.msra.mxu1 %v8987_v30 }
 0x300   :  { %6079 = vmatprep.subr.bf16.mxu0 %v8988_v40  ;;  %6104 = vmatprep.subr.bf16.mxu1 %v8931_v59 }
 0x303   :  { %6081 = vmatpush1.bf16.msra.mxu0 %v8989_v37  ;;  %6106 = vmatpush3.bf16.msra.mxu1 %v8990_v31 }
 0x304   :  { %6083 = vmatprep.subr.bf16.mxu0 %v8991_v36  ;;  %6107 = vmatprep.subr.bf16.mxu1 %v8931_v59  ;;  %v8996_v36 = vld [vmem:[#allocation73_spill] sm:$0xff] }
 0x307   :  { %6085 = vmatpush1.bf16.msra.mxu0 %v8992_v6  ;;  %6109 = vmatpush3.bf16.msra.mxu1 %v8993_v1 }
 0x308   :  { %6111 = vmatprep.subr.bf16.mxu0 %v8994_v50  ;;  %6142 = vmatprep.subr.bf16.mxu1 %v8931_v59 }
 0x37d   :  { %v1302_v30 = vpop.f32.mrb[16].mxu1 }
 0x37e   :  { %v4961_v40 = vpop.f32.mrb[17].mxu1  ;;  %v1303_v60 = vadd.f32 %v1302_v30, %v7918_v9 }
 0x39d   :  { %v1372_v3 = vpop.f32.mrb[18].mxu0  ;;  %v1443_v27 = vpop.f32.mrb[18].mxu1 }
 0x39e   :  { %v7048_v37 = vadd.f32 %v1372_v3, %v8995_v17  ;;  %v1374_v12 = vpop.f32.mrb[19].mxu0  ;;  %v4996_v31 = vpop.f32.mrb[19].mxu1  ;;  %v1457_v50 = vadd.f32 %v7914_v16, %v1443_v27 }
 0x39f   :  { %v7049_v8 = vadd.f32 %v1374_v12, %v8996_v36 }
 0x3a0   :  { %v1448_v23 = vmul.f32 0.5, %v7048_v37  ;;  %v8997_v37 = vld [vmem:[#allocation59_spill] sm:$0xff] }
 0x3a1   :  { %v1453_v63 = vmul.f32 0.5, %v7049_v8 }
 0x3a2   :  { %7124 = vtanh.f32 %v1448_v23 }
 0x3a3   :  { %7126 = vtanh.f32 %v1453_v63 }
 0x3ac   :  { %v7125_v6 = vpop.eup %7124 }
 0x3ad   :  { %v1450_v20 = vmul.f32 0.5, %v7125_v6  ;;  %v7127_v11 = vpop.eup %7126 }
 0x3ae   :  { %v1455_v3 = vmul.f32 0.5, %v7127_v11 }
 0x3af   :  { %v1451_v1 = vadd.f32 0.5, %v1450_v20 }
 0x3b0   :  { %v1456_v36 = vadd.f32 0.5, %v1455_v3 }
 0x3b1   :  { %v1458_v40 = vmul.f32 %v1457_v50, %v1451_v1 }
 0x3b3   :  { %v1459_v52 = vadd.f32 %v1458_v40, %v1303_v60  ;;  %v8998_v40 = vld [vmem:[#allocation56_spill] sm:$0xff] }
 0x3b5   :  { %7128 = vtanh.f32 %v1459_v52 }
 0x3bd   :  { %v1530_v17 = vpop.f32.mrb[10].mxu0  ;;  %v1601_v31 = vpop.f32.mrb[20].mxu1 }
 0x3be   :  { %v7040_v23 = vadd.f32 %v1530_v17, %v8997_v37  ;;  %v1532_v49 = vpop.f32.mrb[11].mxu0  ;;  %v5031_v12 = vpop.f32.mrb[21].mxu1  ;;  %v1615_v50 = vadd.f32 %v7736_v21, %v1601_v31  ;;  %v9000_v21 = vld [vmem:[#allocation20_spill] sm:$0xff]  ;;  %v9002_v31 = vld [vmem:[#allocation17_spill] sm:$0xff] }
 0x3bf   :  { %v7129_v8 = vpop.eup %7128  ;;  %v7041_v60 = vadd.f32 %v1532_v49, %v8958_v53  ;;  %v8999_v49 = vld [vmem:[#allocation15_spill] sm:$0xff] }
 0x3c0   :  { %v1461_v20 = vsub.f32 %v7923_v25, %v7129_v8  ;;  %v1606_v6 = vmul.f32 0.5, %v7040_v23 }
 0x3c1   :  { %v1611_v52 = vmul.f32 0.5, %v7041_v60  ;;  %v9004_v60 = vld [vmem:[#allocation18_spill] sm:$0xff] }
 0x3c2   :  { %v1462_v27 = vmul.f32 %v1461_v20, %v1456_v36  ;;  %7130 = vtanh.f32 %v1606_v6 }
 0x3c3   :  { %7132 = vtanh.f32 %v1611_v52  ;;  %v9005_v52 = vld [vmem:[#allocation19_spill] sm:$0xff] }
 0x3c4   :  { %v8048_v63 = vadd.f32 %v7129_v8, %v1462_v27  ;;  %v9003_v27 = vld [vmem:[#allocation23_spill] sm:$0xff] }
 0x3cc   :  { %v7131_v30 = vpop.eup %7130 }
 0x3cd   :  { %v1608_v11 = vmul.f32 0.5, %v7131_v30  ;;  %v7133_v3 = vpop.eup %7132  ;;  %v9006_v30 = vld [vmem:[#allocation24_spill] sm:$0xff] }
 0x3ce   :  { %v1613_v25 = vmul.f32 0.5, %v7133_v3  ;;  %v9013_v3 = vld [vmem:[#allocation29_spill] sm:$0xff] }
 0x3cf   :  { %v1609_v1 = vadd.f32 0.5, %v1608_v11  ;;  %v9007_v11 = vld [vmem:[#allocation21_spill] sm:$0xff] }
 0x3d0   :  { %v1614_v36 = vadd.f32 0.5, %v1613_v25  ;;  %v9014_v25 = vld [vmem:[#allocation30_spill] sm:$0xff] }
 0x3d1   :  { %v1616_v17 = vmul.f32 %v1615_v50, %v1609_v1  ;;  %v9008_v1 = vld [vmem:[#allocation22_spill] sm:$0xff]  ;;  %v9009_v50 = vld [vmem:[#allocation25_spill] sm:$0xff] }
 0x3d3   :  { %v1617_v12 = vadd.f32 %v1616_v17, %v8998_v40  ;;  %v9010_v17 = vld [vmem:[#allocation26_spill] sm:$0xff]  ;;  %v9011_v40 = vld [vmem:[#allocation27_spill] sm:$0xff] }
 0x3d5   :  { %7134 = vtanh.f32 %v1617_v12  ;;  %v9012_v12 = vld [vmem:[#allocation28_spill] sm:$0xff] }
 0x3df   :  { %v7135_v23 = vpop.eup %7134 }
 0x3e0   :  { %v1619_v8 = vsub.f32 %v7929_v56, %v7135_v23  ;;  %v9001_v56 = vld [vmem:[#allocation16_spill] sm:$0xff] }
 0x3e2   :  { %v1620_v20 = vmul.f32 %v1619_v8, %v1614_v36  ;;  %v9016_v36 = vld [vmem:[#allocation32_spill] sm:$0xff]  ;;  %v9017_v8 = vld [vmem:[#allocation33_spill] sm:$0xff] }
 0x3e4   :  { %v8054_v6 = vadd.f32 %v7135_v23, %v1620_v20  ;;  %v9015_v23 = vld [vmem:[#allocation31_spill] sm:$0xff]  ;;  %v9018_v20 = vld [vmem:[#allocation34_spill] sm:$0xff] }
 0x3e6   :  { %1687 = vmatmul.mubr.f32.vlgmr.msra.gmra.mrb[20].mxu0 %v8054_v6  ;;  %5065 = vmatmul.mubr.f32.vlgmr.msra.gmra.mrb[22].mxu1 %v8054_v6 }
 0x3e7   :  { %6113 = vmatpush1.bf16.msra.mxu0 %v7739_v58  ;;  %6144 = vmatpush3.bf16.msra.mxu1 %v7741_v61 }
 0x3e8   :  { %6115 = vmatprep.subr.bf16.mxu0 %v8960_v45  ;;  %6145 = vmatprep.subr.bf16.mxu1 %v8931_v59 }
 0x3e9   :  { %1827 = vmatprep.mubr.f32.mxu0 %v8933_v38  ;;  %5099 = vmatprep.mubr.msk.f32.mxu1 %vm7333_vm2, %v8933_v38 }
 0x3eb   :  { %6117 = vmatpush1.bf16.msra.mxu0 %v8961_v54  ;;  %6147 = vmatpush3.bf16.msra.mxu1 %v8962_v55 }
 0x3ec   :  { %6119 = vmatprep.subr.bf16.mxu0 %v8963_v47  ;;  %6148 = vmatprep.subr.bf16.mxu1 %v8931_v59 }
 0x3ef   :  { %6121 = vmatpush1.bf16.msra.mxu0 %v8964_v43  ;;  %6150 = vmatpush3.bf16.msra.mxu1 %v8965_v44 }
 0x3f0   :  { %6123 = vmatprep.subr.bf16.mxu0 %v8966_v48  ;;  %6151 = vmatprep.subr.bf16.mxu1 %v8931_v59 }
 0x3f3   :  { %6125 = vmatpush1.bf16.msra.mxu0 %v8967_v29  ;;  %6153 = vmatpush3.bf16.msra.mxu1 %v8968_v34 }
 0x3f4   :  { %6127 = vmatprep.subr.bf16.mxu0 %v8969_v22  ;;  %6154 = vmatprep.subr.bf16.mxu1 %v8931_v59 }
 0x3f7   :  { %6129 = vmatpush1.bf16.msra.mxu0 %v7784_v0  ;;  %6156 = vmatpush3.bf16.msra.mxu1 %v7786_v14 }
 0x3f8   :  { %6131 = vmatprep.subr.bf16.mxu0 %v8970_v24  ;;  %6157 = vmatprep.subr.bf16.mxu1 %v8931_v59 }
 0x3fb   :  { %6133 = vmatpush1.bf16.msra.mxu0 %v8971_v57  ;;  %6159 = vmatpush3.bf16.msra.mxu1 %v7796_v32 }
 0x3fc   :  { %6135 = vmatprep.subr.bf16.mxu0 %v7800_v5  ;;  %6160 = vmatprep.subr.bf16.mxu1 %v8931_v59 }
 0x3ff   :  { %6137 = vmatpush1.bf16.msra.mxu0 %v7804_v33  ;;  %6162 = vmatpush3.bf16.msra.mxu1 %v7806_v4 }
 0x400   :  { %6139 = vmatprep.subr.bf16.mxu0 %v7810_v46  ;;  %6163 = vmatprep.subr.bf16.mxu1 %v8931_v59 }
 0x403   :  { %6141 = vmatpush1.bf16.msra.mxu0 %v7814_v2  ;;  %6165 = vmatpush3.bf16.msra.mxu1 %v7816_v13 }
 0x404   :  { %6167 = vmatprep.subr.bf16.mxu0 %v7479_v7  ;;  %6198 = vmatprep.subr.bf16.mxu1 %v8931_v59 }
 0x406   :  { %1828 = vmatmul.mubr.f32.vlgmr.msra.gmra.mrb[20].mxu0 %v8048_v63  ;;  %5100 = vmatmul.mubr.f32.vlgmr.msra.gmra.mrb[24].mxu1 %v8048_v63 }
 0x407   :  { %6169 = vmatpush1.bf16.msra.mxu0 %v7482_v10  ;;  %6200 = vmatpush3.bf16.msra.mxu1 %v7515_v35 }
 0x408   :  { %6171 = vmatprep.subr.bf16.mxu0 %v7489_v15  ;;  %6201 = vmatprep.subr.bf16.mxu1 %v8931_v59 }
 0x409   :  { %1985 = vmatprep.mubr.f32.mxu0 %v8933_v38  ;;  %5134 = vmatprep.mubr.msk.f32.mxu1 %vm7333_vm2, %v8933_v38 }
 0x40b   :  { %6173 = vmatpush1.bf16.msra.mxu0 %v7492_v18  ;;  %6203 = vmatpush3.bf16.msra.mxu1 %v7526_v41 }
 0x40c   :  { %6175 = vmatprep.subr.bf16.mxu0 %v7495_v19  ;;  %6204 = vmatprep.subr.bf16.mxu1 %v8931_v59 }
 0x40f   :  { %6177 = vmatpush1.bf16.msra.mxu0 %v7506_v26  ;;  %6206 = vmatpush3.bf16.msra.mxu1 %v7543_v51 }
 0x410   :  { %6179 = vmatprep.subr.bf16.mxu0 %v7510_v28  ;;  %6207 = vmatprep.subr.bf16.mxu1 %v8931_v59 }
 0x413   :  { %6181 = vmatpush1.bf16.msra.mxu0 %v7523_v39  ;;  %6209 = vmatpush3.bf16.msra.mxu1 %v7563_v62 }
 0x414   :  { %6183 = vmatprep.subr.bf16.mxu0 %v7529_v42  ;;  %6210 = vmatprep.subr.bf16.mxu1 %v8931_v59 }
 0x417   :  { %6185 = vmatpush1.bf16.msra.mxu0 %v8999_v49  ;;  %6212 = vmatpush3.bf16.msra.mxu1 %v9000_v21 }
 0x418   :  { %6187 = vmatprep.subr.bf16.mxu0 %v9001_v56  ;;  %6213 = vmatprep.subr.bf16.mxu1 %v8931_v59 }
 0x41b   :  { %6189 = vmatpush1.bf16.msra.mxu0 %v9002_v31  ;;  %6215 = vmatpush3.bf16.msra.mxu1 %v9003_v27 }
 0x41c   :  { %6191 = vmatprep.subr.bf16.mxu0 %v9004_v60  ;;  %6216 = vmatprep.subr.bf16.mxu1 %v8931_v59 }
 0x41f   :  { %6193 = vmatpush1.bf16.msra.mxu0 %v9005_v52  ;;  %6218 = vmatpush3.bf16.msra.mxu1 %v9006_v30 }
 0x420   :  { %6195 = vmatprep.subr.bf16.mxu0 %v9007_v11  ;;  %6219 = vmatprep.subr.bf16.mxu1 %v8931_v59 }
 0x423   :  { %6197 = vmatpush1.bf16.msra.mxu0 %v9008_v1  ;;  %6221 = vmatpush3.bf16.msra.mxu1 %v9009_v50  ;;  %v9035_v1 = vld [vmem:[#allocation51_spill] sm:$0xff] }
 0x424   :  { %6223 = vmatprep.subr.bf16.mxu0 %v9010_v17  ;;  %6254 = vmatprep.subr.bf16.mxu1 %v8931_v59  ;;  %v9022_v17 = vld [vmem:[#allocation38_spill] sm:$0xff] }
 0x426   :  { %1986 = vmatmul.mubr.f32.vlgmr.msra.gmra.mrb[8].mxu0 %v8054_v6  ;;  %5135 = vmatmul.mubr.f32.vlgmr.msra.gmra.mrb[26].mxu1 %v8054_v6 }
 0x427   :  { %6225 = vmatpush1.bf16.msra.mxu0 %v9011_v40  ;;  %6256 = vmatpush3.bf16.msra.mxu1 %v9012_v12  ;;  %v9020_v12 = vld [vmem:[#allocation36_spill] sm:$0xff]  ;;  %v9021_v40 = vld [vmem:[#allocation37_spill] sm:$0xff] }
 0x428   :  { %6227 = vmatprep.subr.bf16.mxu0 %v9013_v3  ;;  %6257 = vmatprep.subr.bf16.mxu1 %v8931_v59  ;;  %v9019_v3 = vld [vmem:[#allocation35_spill] sm:$0xff] }
 0x429   :  { %2143 = vmatprep.mubr.f32.mxu0 %v8933_v38  ;;  %5169 = vmatprep.mubr.msk.f32.mxu1 %vm7333_vm2, %v8933_v38 }
 0x42b   :  { %6229 = vmatpush1.bf16.msra.mxu0 %v9014_v25  ;;  %6259 = vmatpush3.bf16.msra.mxu1 %v9015_v23  ;;  %v9023_v23 = vld [vmem:[#allocation39_spill] sm:$0xff]  ;;  %v9025_v25 = vld [vmem:[#allocation41_spill] sm:$0xff] }
 0x42c   :  { %6231 = vmatprep.subr.bf16.mxu0 %v9016_v36  ;;  %6260 = vmatprep.subr.bf16.mxu1 %v8931_v59  ;;  %v9024_v36 = vld [vmem:[#allocation40_spill] sm:$0xff] }
 0x42f   :  { %6233 = vmatpush1.bf16.msra.mxu0 %v9017_v8  ;;  %6262 = vmatpush3.bf16.msra.mxu1 %v9018_v20  ;;  %v9026_v20 = vld [vmem:[#allocation42_spill] sm:$0xff]  ;;  %v9028_v8 = vld [vmem:[#allocation44_spill] sm:$0xff] }
 0x430   :  { %6235 = vmatprep.subr.bf16.mxu0 %v9019_v3  ;;  %6263 = vmatprep.subr.bf16.mxu1 %v8931_v59  ;;  %v9027_v3 = vld [vmem:[#allocation43_spill] sm:$0xff] }
 0x433   :  { %6237 = vmatpush1.bf16.msra.mxu0 %v9020_v12  ;;  %6265 = vmatpush3.bf16.msra.mxu1 %v9021_v40  ;;  %v9029_v40 = vld [vmem:[#allocation45_spill] sm:$0xff]  ;;  %v9031_v12 = vld [vmem:[#allocation47_spill] sm:$0xff] }
 0x434   :  { %6239 = vmatprep.subr.bf16.mxu0 %v9022_v17  ;;  %6266 = vmatprep.subr.bf16.mxu1 %v8931_v59  ;;  %v9030_v17 = vld [vmem:[#allocation46_spill] sm:$0xff] }
 0x437   :  { %6241 = vmatpush1.bf16.msra.mxu0 %v9023_v23  ;;  %6268 = vmatpush3.bf16.msra.mxu1 %v9024_v36  ;;  %v9032_v36 = vld [vmem:[#allocation48_spill] sm:$0xff]  ;;  %v9034_v23 = vld [vmem:[#allocation50_spill] sm:$0xff] }
 0x438   :  { %6243 = vmatprep.subr.bf16.mxu0 %v9025_v25  ;;  %6269 = vmatprep.subr.bf16.mxu1 %v8931_v59  ;;  %v9033_v25 = vld [vmem:[#allocation49_spill] sm:$0xff] }
 0x43b   :  { %6245 = vmatpush1.bf16.msra.mxu0 %v9026_v20  ;;  %6271 = vmatpush3.bf16.msra.mxu1 %v9027_v3 }
 0x43c   :  { %6247 = vmatprep.subr.bf16.mxu0 %v9028_v8  ;;  %6272 = vmatprep.subr.bf16.mxu1 %v8931_v59 }
 0x43f   :  { %6249 = vmatpush1.bf16.msra.mxu0 %v9029_v40  ;;  %6274 = vmatpush3.bf16.msra.mxu1 %v9030_v17 }
 0x440   :  { %6251 = vmatprep.subr.bf16.mxu0 %v9031_v12  ;;  %6275 = vmatprep.subr.bf16.mxu1 %v8931_v59  ;;  %v9036_v12 = vld [vmem:[#allocation73_spill] sm:$0xff] }
 0x443   :  { %6253 = vmatpush1.bf16.msra.mxu0 %v9032_v36  ;;  %6277 = vmatpush3.bf16.msra.mxu1 %v9033_v25 }
 0x444   :  { %6279 = vmatprep.subr.bf16.mxu0 %v9034_v23  ;;  %6310 = vmatprep.subr.bf16.mxu1 %v8931_v59 }
 0x4b9   :  { %v1759_v3 = vpop.f32.mrb[22].mxu1 }
 0x4ba   :  { %v5066_v8 = vpop.f32.mrb[23].mxu1  ;;  %v1760_v31 = vadd.f32 %v1759_v3, %v7918_v9 }
 0x4d9   :  { %v1829_v20 = vpop.f32.mrb[20].mxu0  ;;  %v1900_v50 = vpop.f32.mrb[24].mxu1 }
 0x4da   :  { %v7050_v40 = vadd.f32 %v1829_v20, %v9035_v1  ;;  %v1831_v11 = vpop.f32.mrb[21].mxu0  ;;  %v5101_v17 = vpop.f32.mrb[25].mxu1  ;;  %v1914_v23 = vadd.f32 %v7914_v16, %v1900_v50 }
 0x4db   :  { %v7051_v52 = vadd.f32 %v1831_v11, %v9036_v12 }
 0x4dc   :  { %v1905_v30 = vmul.f32 0.5, %v7050_v40 }
 0x4dd   :  { %v1910_v60 = vmul.f32 0.5, %v7051_v52 }
 0x4de   :  { %7136 = vtanh.f32 %v1905_v30 }
 0x4df   :  { %7138 = vtanh.f32 %v1910_v60 }
 0x4e8   :  { %v7137_v36 = vpop.eup %7136 }
 0x4e9   :  { %v1907_v27 = vmul.f32 0.5, %v7137_v36  ;;  %v7139_v21 = vpop.eup %7138 }
 0x4ea   :  { %v1912_v20 = vmul.f32 0.5, %v7139_v21 }
 0x4eb   :  { %v1908_v25 = vadd.f32 0.5, %v1907_v27 }
 0x4ec   :  { %v1913_v12 = vadd.f32 0.5, %v1912_v20 }
 0x4ed   :  { %v1915_v8 = vmul.f32 %v1914_v23, %v1908_v25 }
 0x4ef   :  { %v1916_v56 = vadd.f32 %v1915_v8, %v1760_v31  ;;  %v9037_v8 = vld [vmem:[#allocation57_spill] sm:$0xff] }
 0x4f1   :  { %7140 = vtanh.f32 %v1916_v56 }
 0x4f9   :  { %v1987_v1 = vpop.f32.mrb[8].mxu0  ;;  %v2058_v17 = vpop.f32.mrb[26].mxu1 }
 0x4fa   :  { %v7038_v30 = vadd.f32 %v1987_v1, %v8997_v37  ;;  %v1989_v40 = vpop.f32.mrb[9].mxu0  ;;  %v5136_v11 = vpop.f32.mrb[27].mxu1  ;;  %v8179_v1 = vld [vmem:[%s8760_s4] ss:$0 sm:$0xff] }
 0x4fb   :  { %v7141_v52 = vpop.eup %7140  ;;  %v7039_v31 = vadd.f32 %v1989_v40, %v8958_v53  ;;  %v2072_v23 = vadd.f32 %v8179_v1, %v2058_v17  ;;  %v9039_v17 = vld [vmem:[#allocation16_spill] sm:$0xff] }
 0x4fc   :  { %v1918_v27 = vsub.f32 %v8048_v63, %v7141_v52  ;;  %v2063_v36 = vmul.f32 0.5, %v7038_v30 }
 0x4fd   :  { %v2068_v56 = vmul.f32 0.5, %v7039_v31  ;;  %v9041_v31 = vld [vmem:[#allocation23_spill] sm:$0xff] }
 0x4fe   :  { %v1919_v50 = vmul.f32 %v1918_v27, %v1913_v12  ;;  %7142 = vtanh.f32 %v2063_v36 }
 0x4ff   :  { %7144 = vtanh.f32 %v2068_v56  ;;  %v9042_v56 = vld [vmem:[#allocation18_spill] sm:$0xff] }
 0x500   :  { %v8173_v60 = vadd.f32 %v7141_v52, %v1919_v50  ;;  %v9040_v50 = vld [vmem:[#allocation17_spill] sm:$0xff] }
 0x508   :  { %v7143_v3 = vpop.eup %7142 }
 0x509   :  { %v2065_v21 = vmul.f32 0.5, %v7143_v3  ;;  %v7145_v20 = vpop.eup %7144  ;;  %v9043_v3 = vld [vmem:[#allocation19_spill] sm:$0xff] }
 0x50a   :  { %v2070_v30 = vmul.f32 0.5, %v7145_v20  ;;  %v9050_v20 = vld [vmem:[#allocation28_spill] sm:$0xff] }
 0x50b   :  { %v2066_v25 = vadd.f32 0.5, %v2065_v21  ;;  %v9044_v21 = vld [vmem:[#allocation24_spill] sm:$0xff] }
 0x50c   :  { %v2071_v40 = vadd.f32 0.5, %v2070_v30  ;;  %v9051_v30 = vld [vmem:[#allocation29_spill] sm:$0xff] }
 0x50d   :  { %v2073_v63 = vmul.f32 %v2072_v23, %v2066_v25  ;;  %v9045_v25 = vld [vmem:[#allocation21_spill] sm:$0xff]  ;;  %v9046_v23 = vld [vmem:[#allocation22_spill] sm:$0xff] }
 0x50f   :  { %v2074_v12 = vadd.f32 %v2073_v63, %v9037_v8  ;;  %v9047_v63 = vld [vmem:[#allocation25_spill] sm:$0xff]  ;;  %v9048_v8 = vld [vmem:[#allocation26_spill] sm:$0xff] }
 0x511   :  { %7146 = vtanh.f32 %v2074_v12  ;;  %v9049_v12 = vld [vmem:[#allocation27_spill] sm:$0xff] }
 0x51b   :  { %v7147_v11 = vpop.eup %7146 }
 0x51c   :  { %v2076_v52 = vsub.f32 %v8054_v6, %v7147_v11  ;;  %v9038_v6 = vld [vmem:[#allocation20_spill] sm:$0xff] }
 0x51e   :  { %v2077_v27 = vmul.f32 %v2076_v52, %v2071_v40  ;;  %v9053_v40 = vld [vmem:[#allocation31_spill] sm:$0xff]  ;;  %v9054_v52 = vld [vmem:[#allocation32_spill] sm:$0xff] }
 0x520   :  { %v8184_v36 = vadd.f32 %v7147_v11, %v2077_v27  ;;  %v9052_v11 = vld [vmem:[#allocation30_spill] sm:$0xff]  ;;  %v9055_v27 = vld [vmem:[#allocation33_spill] sm:$0xff] }
 0x522   :  { %2144 = vmatmul.mubr.f32.vlgmr.msra.gmra.mrb[22].mxu0 %v8184_v36  ;;  %5170 = vmatmul.mubr.f32.vlgmr.msra.gmra.mrb[28].mxu1 %v8184_v36 }
 0x523   :  { %6281 = vmatpush1.bf16.msra.mxu0 %v7739_v58  ;;  %6312 = vmatpush3.bf16.msra.mxu1 %v7741_v61 }
 0x524   :  { %6283 = vmatprep.subr.bf16.mxu0 %v8960_v45  ;;  %6313 = vmatprep.subr.bf16.mxu1 %v8931_v59 }
 0x525   :  { %2284 = vmatprep.mubr.f32.mxu0 %v8933_v38  ;;  %5204 = vmatprep.mubr.msk.f32.mxu1 %vm7333_vm2, %v8933_v38 }
 0x527   :  { %6285 = vmatpush1.bf16.msra.mxu0 %v8961_v54  ;;  %6315 = vmatpush3.bf16.msra.mxu1 %v8962_v55 }
 0x528   :  { %6287 = vmatprep.subr.bf16.mxu0 %v8963_v47  ;;  %6316 = vmatprep.subr.bf16.mxu1 %v8931_v59 }
 0x52b   :  { %6289 = vmatpush1.bf16.msra.mxu0 %v8964_v43  ;;  %6318 = vmatpush3.bf16.msra.mxu1 %v8965_v44 }
 0x52c   :  { %6291 = vmatprep.subr.bf16.mxu0 %v8966_v48  ;;  %6319 = vmatprep.subr.bf16.mxu1 %v8931_v59 }
 0x52f   :  { %6293 = vmatpush1.bf16.msra.mxu0 %v8967_v29  ;;  %6321 = vmatpush3.bf16.msra.mxu1 %v8968_v34 }
 0x530   :  { %6295 = vmatprep.subr.bf16.mxu0 %v8969_v22  ;;  %6322 = vmatprep.subr.bf16.mxu1 %v8931_v59 }
 0x533   :  { %6297 = vmatpush1.bf16.msra.mxu0 %v7784_v0  ;;  %6324 = vmatpush3.bf16.msra.mxu1 %v7786_v14 }
 0x534   :  { %6299 = vmatprep.subr.bf16.mxu0 %v8970_v24  ;;  %6325 = vmatprep.subr.bf16.mxu1 %v8931_v59 }
 0x537   :  { %6301 = vmatpush1.bf16.msra.mxu0 %v8971_v57  ;;  %6327 = vmatpush3.bf16.msra.mxu1 %v7796_v32 }
 0x538   :  { %6303 = vmatprep.subr.bf16.mxu0 %v7800_v5  ;;  %6328 = vmatprep.subr.bf16.mxu1 %v8931_v59 }
 0x53b   :  { %6305 = vmatpush1.bf16.msra.mxu0 %v7804_v33  ;;  %6330 = vmatpush3.bf16.msra.mxu1 %v7806_v4 }
 0x53c   :  { %6307 = vmatprep.subr.bf16.mxu0 %v7810_v46  ;;  %6331 = vmatprep.subr.bf16.mxu1 %v8931_v59 }
 0x53f   :  { %6309 = vmatpush1.bf16.msra.mxu0 %v7814_v2  ;;  %6333 = vmatpush3.bf16.msra.mxu1 %v7816_v13 }
 0x540   :  { %6335 = vmatprep.subr.bf16.mxu0 %v7479_v7  ;;  %6366 = vmatprep.subr.bf16.mxu1 %v8931_v59 }
 0x542   :  { %2285 = vmatmul.mubr.f32.vlgmr.msra.gmra.mrb[22].mxu0 %v8173_v60  ;;  %5205 = vmatmul.mubr.f32.vlgmr.msra.gmra.mrb[30].mxu1 %v8173_v60 }
 0x543   :  { %6337 = vmatpush1.bf16.msra.mxu0 %v7482_v10  ;;  %6368 = vmatpush3.bf16.msra.mxu1 %v7515_v35 }
 0x544   :  { %6339 = vmatprep.subr.bf16.mxu0 %v7489_v15  ;;  %6369 = vmatprep.subr.bf16.mxu1 %v8931_v59 }
 0x545   :  { %2442 = vmatprep.mubr.f32.mxu0 %v8933_v38  ;;  %5239 = vmatprep.mubr.msk.f32.mxu1 %vm7333_vm2, %v8933_v38 }
 0x547   :  { %6341 = vmatpush1.bf16.msra.mxu0 %v7492_v18  ;;  %6371 = vmatpush3.bf16.msra.mxu1 %v7526_v41 }
 0x548   :  { %6343 = vmatprep.subr.bf16.mxu0 %v7495_v19  ;;  %6372 = vmatprep.subr.bf16.mxu1 %v8931_v59 }
 0x54b   :  { %6345 = vmatpush1.bf16.msra.mxu0 %v7506_v26  ;;  %6374 = vmatpush3.bf16.msra.mxu1 %v7543_v51 }
 0x54c   :  { %6347 = vmatprep.subr.bf16.mxu0 %v7510_v28  ;;  %6375 = vmatprep.subr.bf16.mxu1 %v8931_v59 }
 0x54f   :  { %6349 = vmatpush1.bf16.msra.mxu0 %v7523_v39  ;;  %6377 = vmatpush3.bf16.msra.mxu1 %v7563_v62 }
 0x550   :  { %6351 = vmatprep.subr.bf16.mxu0 %v7529_v42  ;;  %6378 = vmatprep.subr.bf16.mxu1 %v8931_v59 }
 0x553   :  { %6353 = vmatpush1.bf16.msra.mxu0 %v8999_v49  ;;  %6380 = vmatpush3.bf16.msra.mxu1 %v9038_v6 }
 0x554   :  { %6355 = vmatprep.subr.bf16.mxu0 %v9039_v17  ;;  %6381 = vmatprep.subr.bf16.mxu1 %v8931_v59 }
 0x557   :  { %6357 = vmatpush1.bf16.msra.mxu0 %v9040_v50  ;;  %6383 = vmatpush3.bf16.msra.mxu1 %v9041_v31 }
 0x558   :  { %6359 = vmatprep.subr.bf16.mxu0 %v9042_v56  ;;  %6384 = vmatprep.subr.bf16.mxu1 %v8931_v59 }
 0x55b   :  { %6361 = vmatpush1.bf16.msra.mxu0 %v9043_v3  ;;  %6386 = vmatpush3.bf16.msra.mxu1 %v9044_v21 }
 0x55c   :  { %6363 = vmatprep.subr.bf16.mxu0 %v9045_v25  ;;  %6387 = vmatprep.subr.bf16.mxu1 %v8931_v59  ;;  %v9073_v25 = vld [vmem:[#allocation51_spill] sm:$0xff] }
 0x55f   :  { %6365 = vmatpush1.bf16.msra.mxu0 %v9046_v23  ;;  %6389 = vmatpush3.bf16.msra.mxu1 %v9047_v63  ;;  %v9060_v63 = vld [vmem:[#allocation38_spill] sm:$0xff] }
 0x560   :  { %6391 = vmatprep.subr.bf16.mxu0 %v9048_v8  ;;  %6422 = vmatprep.subr.bf16.mxu1 %v8931_v59  ;;  %v9059_v8 = vld [vmem:[#allocation37_spill] sm:$0xff] }
 0x562   :  { %2443 = vmatmul.mubr.f32.vlgmr.msra.gmra.mrb[6].mxu0 %v8184_v36  ;;  %5240 = vmatmul.mubr.f32.vlgmr.msra.gmra.mrb[32].mxu1 %v8184_v36 }
 0x563   :  { %6393 = vmatpush1.bf16.msra.mxu0 %v9049_v12  ;;  %6424 = vmatpush3.bf16.msra.mxu1 %v9050_v20  ;;  %v9056_v20 = vld [vmem:[#allocation34_spill] sm:$0xff]  ;;  %v9058_v12 = vld [vmem:[#allocation36_spill] sm:$0xff] }
 0x564   :  { %6395 = vmatprep.subr.bf16.mxu0 %v9051_v30  ;;  %6425 = vmatprep.subr.bf16.mxu1 %v8931_v59  ;;  %v9057_v30 = vld [vmem:[#allocation35_spill] sm:$0xff] }
 0x565   :  { %2600 = vmatprep.mubr.f32.mxu0 %v8933_v38  ;;  %5274 = vmatprep.mubr.msk.f32.mxu1 %vm7333_vm2, %v8933_v38 }
 0x567   :  { %6397 = vmatpush1.bf16.msra.mxu0 %v9052_v11  ;;  %6427 = vmatpush3.bf16.msra.mxu1 %v9053_v40  ;;  %v9061_v40 = vld [vmem:[#allocation39_spill] sm:$0xff]  ;;  %v9063_v11 = vld [vmem:[#allocation41_spill] sm:$0xff] }
 0x568   :  { %6399 = vmatprep.subr.bf16.mxu0 %v9054_v52  ;;  %6428 = vmatprep.subr.bf16.mxu1 %v8931_v59  ;;  %v9062_v52 = vld [vmem:[#allocation40_spill] sm:$0xff] }
 0x56b   :  { %6401 = vmatpush1.bf16.msra.mxu0 %v9055_v27  ;;  %6430 = vmatpush3.bf16.msra.mxu1 %v9056_v20  ;;  %v9064_v20 = vld [vmem:[#allocation42_spill] sm:$0xff]  ;;  %v9066_v27 = vld [vmem:[#allocation44_spill] sm:$0xff] }
 0x56c   :  { %6403 = vmatprep.subr.bf16.mxu0 %v9057_v30  ;;  %6431 = vmatprep.subr.bf16.mxu1 %v8931_v59  ;;  %v9065_v30 = vld [vmem:[#allocation43_spill] sm:$0xff] }
 0x56f   :  { %6405 = vmatpush1.bf16.msra.mxu0 %v9058_v12  ;;  %6433 = vmatpush3.bf16.msra.mxu1 %v9059_v8  ;;  %v9067_v8 = vld [vmem:[#allocation45_spill] sm:$0xff]  ;;  %v9069_v12 = vld [vmem:[#allocation47_spill] sm:$0xff] }
 0x570   :  { %6407 = vmatprep.subr.bf16.mxu0 %v9060_v63  ;;  %6434 = vmatprep.subr.bf16.mxu1 %v8931_v59  ;;  %v9068_v63 = vld [vmem:[#allocation46_spill] sm:$0xff] }
 0x573   :  { %6409 = vmatpush1.bf16.msra.mxu0 %v9061_v40  ;;  %6436 = vmatpush3.bf16.msra.mxu1 %v9062_v52  ;;  %v9070_v52 = vld [vmem:[#allocation48_spill] sm:$0xff]  ;;  %v9072_v40 = vld [vmem:[#allocation50_spill] sm:$0xff] }
 0x574   :  { %6411 = vmatprep.subr.bf16.mxu0 %v9063_v11  ;;  %6437 = vmatprep.subr.bf16.mxu1 %v8931_v59  ;;  %v9071_v11 = vld [vmem:[#allocation49_spill] sm:$0xff] }
 0x577   :  { %6413 = vmatpush1.bf16.msra.mxu0 %v9064_v20  ;;  %6439 = vmatpush3.bf16.msra.mxu1 %v9065_v30 }
 0x578   :  { %6415 = vmatprep.subr.bf16.mxu0 %v9066_v27  ;;  %6440 = vmatprep.subr.bf16.mxu1 %v8931_v59 }
 0x57b   :  { %6417 = vmatpush1.bf16.msra.mxu0 %v9067_v8  ;;  %6442 = vmatpush3.bf16.msra.mxu1 %v9068_v63 }
 0x57c   :  { %6419 = vmatprep.subr.bf16.mxu0 %v9069_v12  ;;  %6443 = vmatprep.subr.bf16.mxu1 %v8931_v59  ;;  %v9074_v12 = vld [vmem:[#allocation73_spill] sm:$0xff] }
 0x57f   :  { %6421 = vmatpush1.bf16.msra.mxu0 %v9070_v52  ;;  %6445 = vmatpush3.bf16.msra.mxu1 %v9071_v11 }
 0x580   :  { %6447 = vmatprep.subr.bf16.mxu0 %v9072_v40  ;;  %6478 = vmatprep.subr.bf16.mxu1 %v8931_v59 }
 0x5f5   :  { %v2216_v30 = vpop.f32.mrb[28].mxu1 }
 0x5f6   :  { %v5171_v27 = vpop.f32.mrb[29].mxu1  ;;  %v2217_v17 = vadd.f32 %v2216_v30, %v7918_v9 }
 0x615   :  { %v2286_v20 = vpop.f32.mrb[22].mxu0  ;;  %v2357_v23 = vpop.f32.mrb[30].mxu1 }
 0x616   :  { %v7052_v8 = vadd.f32 %v2286_v20, %v9073_v25  ;;  %v2288_v21 = vpop.f32.mrb[23].mxu0  ;;  %v5206_v63 = vpop.f32.mrb[31].mxu1  ;;  %v2371_v40 = vadd.f32 %v7914_v16, %v2357_v23 }
 0x617   :  { %v7053_v56 = vadd.f32 %v2288_v21, %v9074_v12 }
 0x618   :  { %v2362_v3 = vmul.f32 0.5, %v7052_v8 }
 0x619   :  { %v2367_v31 = vmul.f32 0.5, %v7053_v56 }
 0x61a   :  { %7148 = vtanh.f32 %v2362_v3 }
 0x61b   :  { %7150 = vtanh.f32 %v2367_v31 }
 0x624   :  { %v7149_v52 = vpop.eup %7148 }
 0x625   :  { %v2364_v50 = vmul.f32 0.5, %v7149_v52  ;;  %v7151_v49 = vpop.eup %7150 }
 0x626   :  { %v2369_v20 = vmul.f32 0.5, %v7151_v49 }
 0x627   :  { %v2365_v11 = vadd.f32 0.5, %v2364_v50 }
 0x628   :  { %v2370_v12 = vadd.f32 0.5, %v2369_v20 }
 0x629   :  { %v2372_v27 = vmul.f32 %v2371_v40, %v2365_v11  ;;  %v9075_v40 = vld [vmem:[#allocation54_spill] sm:$0xff] }
 0x62b   :  { %v2373_v6 = vadd.f32 %v2372_v27, %v2217_v17 }
 0x62d   :  { %7152 = vtanh.f32 %v2373_v6 }
 0x635   :  { %v2444_v25 = vpop.f32.mrb[6].mxu0  ;;  %v2515_v63 = vpop.f32.mrb[32].mxu1 }
 0x636   :  { %v7036_v3 = vadd.f32 %v2444_v25, %v8997_v37  ;;  %v2446_v8 = vpop.f32.mrb[7].mxu0  ;;  %v5241_v21 = vpop.f32.mrb[33].mxu1  ;;  %v2529_v11 = vadd.f32 %v8179_v1, %v2515_v63  ;;  %v9077_v63 = vld [vmem:[#allocation20_spill] sm:$0xff] }
 0x637   :  { %v7153_v56 = vpop.eup %7152  ;;  %v7037_v17 = vadd.f32 %v2446_v8, %v8958_v53  ;;  %v9078_v8 = vld [vmem:[#allocation16_spill] sm:$0xff] }
 0x638   :  { %v2375_v50 = vsub.f32 %v8173_v60, %v7153_v56  ;;  %v2520_v52 = vmul.f32 0.5, %v7036_v3 }
 0x639   :  { %v2525_v6 = vmul.f32 0.5, %v7037_v17  ;;  %v9081_v17 = vld [vmem:[#allocation18_spill] sm:$0xff] }
 0x63a   :  { %v2376_v16 = vmul.f32 %v2375_v50, %v2370_v12  ;;  %7154 = vtanh.f32 %v2520_v52  ;;  %v9079_v52 = vld [vmem:[#allocation17_spill] sm:$0xff] }
 0x63b   :  { %7156 = vtanh.f32 %v2525_v6  ;;  %v9082_v6 = vld [vmem:[#allocation19_spill] sm:$0xff] }
 0x63c   :  { %v8303_v31 = vadd.f32 %v7153_v56, %v2376_v16  ;;  %v9080_v16 = vld [vmem:[#allocation23_spill] sm:$0xff] }
 0x644   :  { %v7155_v23 = vpop.eup %7154 }
 0x645   :  { %v2522_v49 = vmul.f32 0.5, %v7155_v23  ;;  %v7157_v20 = vpop.eup %7156  ;;  %v9083_v23 = vld [vmem:[#allocation24_spill] sm:$0xff] }
 0x646   :  { %v2527_v60 = vmul.f32 0.5, %v7157_v20  ;;  %v9090_v20 = vld [vmem:[#allocation29_spill] sm:$0xff] }
 0x647   :  { %v2523_v30 = vadd.f32 0.5, %v2522_v49  ;;  %v9084_v49 = vld [vmem:[#allocation21_spill] sm:$0xff] }
 0x648   :  { %v2528_v12 = vadd.f32 0.5, %v2527_v60  ;;  %v9091_v60 = vld [vmem:[#allocation30_spill] sm:$0xff] }
 0x649   :  { %v2530_v25 = vmul.f32 %v2529_v11, %v2523_v30  ;;  %v9085_v30 = vld [vmem:[#allocation22_spill] sm:$0xff]  ;;  %v9086_v11 = vld [vmem:[#allocation25_spill] sm:$0xff] }
 0x64b   :  { %v2531_v27 = vadd.f32 %v2530_v25, %v9075_v40  ;;  %v9087_v25 = vld [vmem:[#allocation26_spill] sm:$0xff]  ;;  %v9088_v40 = vld [vmem:[#allocation27_spill] sm:$0xff] }
 0x64d   :  { %7158 = vtanh.f32 %v2531_v27  ;;  %v9089_v27 = vld [vmem:[#allocation28_spill] sm:$0xff] }
 0x657   :  { %v7159_v3 = vpop.eup %7158 }
 0x658   :  { %v2533_v21 = vsub.f32 %v8184_v36, %v7159_v3  ;;  %v9076_v36 = vld [vmem:[#allocation15_spill] sm:$0xff] }
 0x65a   :  { %v2534_v56 = vmul.f32 %v2533_v21, %v2528_v12  ;;  %v9093_v12 = vld [vmem:[#allocation32_spill] sm:$0xff]  ;;  %v9094_v21 = vld [vmem:[#allocation33_spill] sm:$0xff] }
 0x65c   :  { %v8309_v50 = vadd.f32 %v7159_v3, %v2534_v56  ;;  %v9092_v3 = vld [vmem:[#allocation31_spill] sm:$0xff]  ;;  %v9095_v56 = vld [vmem:[#allocation34_spill] sm:$0xff] }
 0x65e   :  { %2601 = vmatmul.mubr.f32.vlgmr.msra.gmra.mrb[24].mxu0 %v8309_v50  ;;  %5275 = vmatmul.mubr.f32.vlgmr.msra.gmra.mrb[34].mxu1 %v8309_v50 }
 0x65f   :  { %6449 = vmatpush1.bf16.msra.mxu0 %v7739_v58  ;;  %6480 = vmatpush3.bf16.msra.mxu1 %v7741_v61 }
 0x660   :  { %6451 = vmatprep.subr.bf16.mxu0 %v8960_v45  ;;  %6481 = vmatprep.subr.bf16.mxu1 %v8931_v59 }
 0x661   :  { %2741 = vmatprep.mubr.f32.mxu0 %v8933_v38  ;;  %5309 = vmatprep.mubr.msk.f32.mxu1 %vm7333_vm2, %v8933_v38 }
 0x663   :  { %6453 = vmatpush1.bf16.msra.mxu0 %v8961_v54  ;;  %6483 = vmatpush3.bf16.msra.mxu1 %v8962_v55 }
 0x664   :  { %6455 = vmatprep.subr.bf16.mxu0 %v8963_v47  ;;  %6484 = vmatprep.subr.bf16.mxu1 %v8931_v59 }
 0x667   :  { %6457 = vmatpush1.bf16.msra.mxu0 %v8964_v43  ;;  %6486 = vmatpush3.bf16.msra.mxu1 %v8965_v44 }
 0x668   :  { %6459 = vmatprep.subr.bf16.mxu0 %v8966_v48  ;;  %6487 = vmatprep.subr.bf16.mxu1 %v8931_v59 }
 0x66b   :  { %6461 = vmatpush1.bf16.msra.mxu0 %v8967_v29  ;;  %6489 = vmatpush3.bf16.msra.mxu1 %v8968_v34 }
 0x66c   :  { %6463 = vmatprep.subr.bf16.mxu0 %v8969_v22  ;;  %6490 = vmatprep.subr.bf16.mxu1 %v8931_v59 }
 0x66f   :  { %6465 = vmatpush1.bf16.msra.mxu0 %v7784_v0  ;;  %6492 = vmatpush3.bf16.msra.mxu1 %v7786_v14 }
 0x670   :  { %6467 = vmatprep.subr.bf16.mxu0 %v8970_v24  ;;  %6493 = vmatprep.subr.bf16.mxu1 %v8931_v59 }
 0x673   :  { %6469 = vmatpush1.bf16.msra.mxu0 %v8971_v57  ;;  %6495 = vmatpush3.bf16.msra.mxu1 %v7796_v32 }
 0x674   :  { %6471 = vmatprep.subr.bf16.mxu0 %v7800_v5  ;;  %6496 = vmatprep.subr.bf16.mxu1 %v8931_v59 }
 0x677   :  { %6473 = vmatpush1.bf16.msra.mxu0 %v7804_v33  ;;  %6498 = vmatpush3.bf16.msra.mxu1 %v7806_v4 }
 0x678   :  { %6475 = vmatprep.subr.bf16.mxu0 %v7810_v46  ;;  %6499 = vmatprep.subr.bf16.mxu1 %v8931_v59 }
 0x67b   :  { %6477 = vmatpush1.bf16.msra.mxu0 %v7814_v2  ;;  %6501 = vmatpush3.bf16.msra.mxu1 %v7816_v13 }
 0x67c   :  { %6503 = vmatprep.subr.bf16.mxu0 %v7479_v7  ;;  %6534 = vmatprep.subr.bf16.mxu1 %v8931_v59 }
 0x67e   :  { %2742 = vmatmul.mubr.f32.vlgmr.msra.gmra.mrb[24].mxu0 %v8303_v31  ;;  %5310 = vmatmul.mubr.f32.vlgmr.msra.gmra.mrb[36].mxu1 %v8303_v31 }
 0x67f   :  { %6505 = vmatpush1.bf16.msra.mxu0 %v7482_v10  ;;  %6536 = vmatpush3.bf16.msra.mxu1 %v7515_v35 }
 0x680   :  { %6507 = vmatprep.subr.bf16.mxu0 %v7489_v15  ;;  %6537 = vmatprep.subr.bf16.mxu1 %v8931_v59 }
 0x681   :  { %2899 = vmatprep.mubr.f32.mxu0 %v8933_v38  ;;  %5344 = vmatprep.mubr.msk.f32.mxu1 %vm7333_vm2, %v8933_v38 }
 0x683   :  { %6509 = vmatpush1.bf16.msra.mxu0 %v7492_v18  ;;  %6539 = vmatpush3.bf16.msra.mxu1 %v7526_v41 }
 0x684   :  { %6511 = vmatprep.subr.bf16.mxu0 %v7495_v19  ;;  %6540 = vmatprep.subr.bf16.mxu1 %v8931_v59 }
 0x687   :  { %6513 = vmatpush1.bf16.msra.mxu0 %v7506_v26  ;;  %6542 = vmatpush3.bf16.msra.mxu1 %v7543_v51 }
 0x688   :  { %6515 = vmatprep.subr.bf16.mxu0 %v7510_v28  ;;  %6543 = vmatprep.subr.bf16.mxu1 %v8931_v59 }
 0x68b   :  { %6517 = vmatpush1.bf16.msra.mxu0 %v7523_v39  ;;  %6545 = vmatpush3.bf16.msra.mxu1 %v7563_v62 }
 0x68c   :  { %6519 = vmatprep.subr.bf16.mxu0 %v7529_v42  ;;  %6546 = vmatprep.subr.bf16.mxu1 %v8931_v59 }
 0x68f   :  { %6521 = vmatpush1.bf16.msra.mxu0 %v9076_v36  ;;  %6548 = vmatpush3.bf16.msra.mxu1 %v9077_v63 }
 0x690   :  { %6523 = vmatprep.subr.bf16.mxu0 %v9078_v8  ;;  %6549 = vmatprep.subr.bf16.mxu1 %v8931_v59 }
 0x693   :  { %6525 = vmatpush1.bf16.msra.mxu0 %v9079_v52  ;;  %6551 = vmatpush3.bf16.msra.mxu1 %v9080_v16 }
 0x694   :  { %6527 = vmatprep.subr.bf16.mxu0 %v9081_v17  ;;  %6552 = vmatprep.subr.bf16.mxu1 %v8931_v59 }
 0x697   :  { %6529 = vmatpush1.bf16.msra.mxu0 %v9082_v6  ;;  %6554 = vmatpush3.bf16.msra.mxu1 %v9083_v23 }
 0x698   :  { %6531 = vmatprep.subr.bf16.mxu0 %v9084_v49  ;;  %6555 = vmatprep.subr.bf16.mxu1 %v8931_v59 }
 0x69b   :  { %6533 = vmatpush1.bf16.msra.mxu0 %v9085_v30  ;;  %6557 = vmatpush3.bf16.msra.mxu1 %v9086_v11  ;;  %v9112_v30 = vld [vmem:[#allocation51_spill] sm:$0xff] }
 0x69c   :  { %6559 = vmatprep.subr.bf16.mxu0 %v9087_v25  ;;  %6590 = vmatprep.subr.bf16.mxu1 %v8931_v59  ;;  %v9099_v25 = vld [vmem:[#allocation38_spill] sm:$0xff] }
 0x69e   :  { %2900 = vmatmul.mubr.f32.vlgmr.msra.gmra.mrb[4].mxu0 %v8309_v50  ;;  %5345 = vmatmul.mubr.f32.vlgmr.msra.gmra.mrb[38].mxu1 %v8309_v50 }
 0x69f   :  { %6561 = vmatpush1.bf16.msra.mxu0 %v9088_v40  ;;  %6592 = vmatpush3.bf16.msra.mxu1 %v9089_v27  ;;  %v9097_v27 = vld [vmem:[#allocation36_spill] sm:$0xff]  ;;  %v9098_v40 = vld [vmem:[#allocation37_spill] sm:$0xff] }
 0x6a0   :  { %6563 = vmatprep.subr.bf16.mxu0 %v9090_v20  ;;  %6593 = vmatprep.subr.bf16.mxu1 %v8931_v59  ;;  %v9096_v20 = vld [vmem:[#allocation35_spill] sm:$0xff] }
 0x6a1   :  { %3057 = vmatprep.mubr.f32.mxu0 %v8933_v38  ;;  %5379 = vmatprep.mubr.msk.f32.mxu1 %vm7333_vm2, %v8933_v38 }
 0x6a3   :  { %6565 = vmatpush1.bf16.msra.mxu0 %v9091_v60  ;;  %6595 = vmatpush3.bf16.msra.mxu1 %v9092_v3  ;;  %v9100_v3 = vld [vmem:[#allocation39_spill] sm:$0xff]  ;;  %v9102_v60 = vld [vmem:[#allocation41_spill] sm:$0xff] }
 0x6a4   :  { %6567 = vmatprep.subr.bf16.mxu0 %v9093_v12  ;;  %6596 = vmatprep.subr.bf16.mxu1 %v8931_v59  ;;  %v9101_v12 = vld [vmem:[#allocation40_spill] sm:$0xff] }
 0x6a7   :  { %6569 = vmatpush1.bf16.msra.mxu0 %v9094_v21  ;;  %6598 = vmatpush3.bf16.msra.mxu1 %v9095_v56  ;;  %v9103_v56 = vld [vmem:[#allocation42_spill] sm:$0xff]  ;;  %v9105_v21 = vld [vmem:[#allocation44_spill] sm:$0xff] }
 0x6a8   :  { %6571 = vmatprep.subr.bf16.mxu0 %v9096_v20  ;;  %6599 = vmatprep.subr.bf16.mxu1 %v8931_v59  ;;  %v9104_v20 = vld [vmem:[#allocation43_spill] sm:$0xff] }
 0x6ab   :  { %6573 = vmatpush1.bf16.msra.mxu0 %v9097_v27  ;;  %6601 = vmatpush3.bf16.msra.mxu1 %v9098_v40  ;;  %v9106_v40 = vld [vmem:[#allocation45_spill] sm:$0xff]  ;;  %v9108_v27 = vld [vmem:[#allocation47_spill] sm:$0xff] }
 0x6ac   :  { %6575 = vmatprep.subr.bf16.mxu0 %v9099_v25  ;;  %6602 = vmatprep.subr.bf16.mxu1 %v8931_v59  ;;  %v9107_v25 = vld [vmem:[#allocation46_spill] sm:$0xff] }
 0x6af   :  { %6577 = vmatpush1.bf16.msra.mxu0 %v9100_v3  ;;  %6604 = vmatpush3.bf16.msra.mxu1 %v9101_v12  ;;  %v9109_v12 = vld [vmem:[#allocation48_spill] sm:$0xff]  ;;  %v9111_v3 = vld [vmem:[#allocation50_spill] sm:$0xff] }
 0x6b0   :  { %6579 = vmatprep.subr.bf16.mxu0 %v9102_v60  ;;  %6605 = vmatprep.subr.bf16.mxu1 %v8931_v59  ;;  %v9110_v60 = vld [vmem:[#allocation49_spill] sm:$0xff] }
 0x6b3   :  { %6581 = vmatpush1.bf16.msra.mxu0 %v9103_v56  ;;  %6607 = vmatpush3.bf16.msra.mxu1 %v9104_v20 }
 0x6b4   :  { %6583 = vmatprep.subr.bf16.mxu0 %v9105_v21  ;;  %6608 = vmatprep.subr.bf16.mxu1 %v8931_v59 }
 0x6b7   :  { %6585 = vmatpush1.bf16.msra.mxu0 %v9106_v40  ;;  %6610 = vmatpush3.bf16.msra.mxu1 %v9107_v25 }
 0x6b8   :  { %6587 = vmatprep.subr.bf16.mxu0 %v9108_v27  ;;  %6611 = vmatprep.subr.bf16.mxu1 %v8931_v59  ;;  %v9113_v27 = vld [vmem:[#allocation73_spill] sm:$0xff] }
 0x6bb   :  { %6589 = vmatpush1.bf16.msra.mxu0 %v9109_v12  ;;  %6613 = vmatpush3.bf16.msra.mxu1 %v9110_v60 }
 0x6bc   :  { %6615 = vmatprep.subr.bf16.mxu0 %v9111_v3  ;;  %6646 = vmatprep.subr.bf16.mxu1 %v8931_v59  ;;  %v8427_v3 = vld [vmem:[%s8764_s8] ss:$0 sm:$0xff] }
 0x731   :  { %v2673_v20 = vpop.f32.mrb[34].mxu1 }
 0x732   :  { %v5276_v21 = vpop.f32.mrb[35].mxu1 }
 0x751   :  { %v2743_v56 = vpop.f32.mrb[24].mxu0  ;;  %v2814_v11 = vpop.f32.mrb[36].mxu1 }
 0x752   :  { %v7054_v40 = vadd.f32 %v2743_v56, %v9112_v30  ;;  %v2745_v49 = vpop.f32.mrb[25].mxu0  ;;  %v5311_v25 = vpop.f32.mrb[37].mxu1  ;;  %v2828_v21 = vadd.f32 %v8427_v3, %v2814_v11  ;;  %v2674_v56 = vadd.f32 %v2673_v20, %v7918_v9 }
 0x753   :  { %v7055_v6 = vadd.f32 %v2745_v49, %v9113_v27 }
 0x754   :  { %v2819_v23 = vmul.f32 0.5, %v7054_v40 }
 0x755   :  { %v2824_v17 = vmul.f32 0.5, %v7055_v6 }
 0x756   :  { %7160 = vtanh.f32 %v2819_v23 }
 0x757   :  { %7162 = vtanh.f32 %v2824_v17 }
 0x760   :  { %v7161_v12 = vpop.eup %7160 }
 0x761   :  { %v2821_v16 = vmul.f32 0.5, %v7161_v12  ;;  %v7163_v23 = vpop.eup %7162 }
 0x762   :  { %v2826_v40 = vmul.f32 0.5, %v7163_v23 }
 0x763   :  { %v2822_v60 = vadd.f32 0.5, %v2821_v16 }
 0x764   :  { %v2827_v8 = vadd.f32 0.5, %v2826_v40 }
 0x765   :  { %v2829_v30 = vmul.f32 %v2828_v21, %v2822_v60 }
 0x767   :  { %v2830_v25 = vadd.f32 %v2829_v30, %v2674_v56 }
 0x769   :  { %7164 = vtanh.f32 %v2830_v25 }
 0x771   :  { %v2901_v49 = vpop.f32.mrb[4].mxu0  ;;  %v2972_v6 = vpop.f32.mrb[38].mxu1 }
 0x772   :  { %v7034_v12 = vadd.f32 %v2901_v49, %v8997_v37  ;;  %v2903_v16 = vpop.f32.mrb[5].mxu0  ;;  %v5346_v27 = vpop.f32.mrb[39].mxu1  ;;  %v2986_v25 = vadd.f32 %v8179_v1, %v2972_v6  ;;  %v9116_v6 = vld [vmem:[#allocation20_spill] sm:$0xff] }
 0x773   :  { %v7165_v52 = vpop.eup %7164  ;;  %v7035_v30 = vadd.f32 %v2903_v16, %v8958_v53  ;;  %v9114_v27 = vld [vmem:[#allocation55_spill] sm:$0xff]  ;;  %v9117_v16 = vld [vmem:[#allocation16_spill] sm:$0xff] }
 0x774   :  { %v2832_v63 = vsub.f32 %v8303_v31, %v7165_v52  ;;  %v2977_v36 = vmul.f32 0.5, %v7034_v12 }
 0x775   :  { %v2982_v20 = vmul.f32 0.5, %v7035_v30  ;;  %v9119_v30 = vld [vmem:[#allocation23_spill] sm:$0xff] }
 0x776   :  { %v2833_v11 = vmul.f32 %v2832_v63, %v2827_v8  ;;  %7166 = vtanh.f32 %v2977_v36 }
 0x777   :  { %7168 = vtanh.f32 %v2982_v20  ;;  %v9120_v20 = vld [vmem:[#allocation18_spill] sm:$0xff] }
 0x778   :  { %v8433_v17 = vadd.f32 %v7165_v52, %v2833_v11  ;;  %v9118_v11 = vld [vmem:[#allocation17_spill] sm:$0xff] }
 0x780   :  { %v7167_v60 = vpop.eup %7166 }
 0x781   :  { %v2979_v21 = vmul.f32 0.5, %v7167_v60  ;;  %v7169_v40 = vpop.eup %7168  ;;  %v9121_v60 = vld [vmem:[#allocation19_spill] sm:$0xff] }
 0x782   :  { %v2984_v31 = vmul.f32 0.5, %v7169_v40  ;;  %v9128_v40 = vld [vmem:[#allocation28_spill] sm:$0xff] }
 0x783   :  { %v2980_v56 = vadd.f32 0.5, %v2979_v21  ;;  %v9122_v21 = vld [vmem:[#allocation24_spill] sm:$0xff] }
 0x784   :  { %v2985_v63 = vadd.f32 0.5, %v2984_v31  ;;  %v9129_v31 = vld [vmem:[#allocation29_spill] sm:$0xff] }
 0x785   :  { %v2987_v23 = vmul.f32 %v2986_v25, %v2980_v56  ;;  %v9123_v56 = vld [vmem:[#allocation21_spill] sm:$0xff]  ;;  %v9124_v25 = vld [vmem:[#allocation22_spill] sm:$0xff] }
 0x787   :  { %v2988_v49 = vadd.f32 %v2987_v23, %v9114_v27  ;;  %v9125_v23 = vld [vmem:[#allocation25_spill] sm:$0xff]  ;;  %v9126_v27 = vld [vmem:[#allocation26_spill] sm:$0xff] }
 0x789   :  { %7170 = vtanh.f32 %v2988_v49  ;;  %v9127_v49 = vld [vmem:[#allocation27_spill] sm:$0xff] }
 0x793   :  { %v7171_v12 = vpop.eup %7170 }
 0x794   :  { %v2990_v36 = vsub.f32 %v8309_v50, %v7171_v12  ;;  %v9115_v50 = vld [vmem:[#allocation15_spill] sm:$0xff] }
 0x796   :  { %v2991_v8 = vmul.f32 %v2990_v36, %v2985_v63  ;;  %v9131_v63 = vld [vmem:[#allocation31_spill] sm:$0xff]  ;;  %v9132_v36 = vld [vmem:[#allocation32_spill] sm:$0xff] }
 0x798   :  { %v8439_v52 = vadd.f32 %v7171_v12, %v2991_v8  ;;  %v9130_v12 = vld [vmem:[#allocation30_spill] sm:$0xff]  ;;  %v9133_v8 = vld [vmem:[#allocation33_spill] sm:$0xff] }
 0x79a   :  { %3058 = vmatmul.mubr.f32.vlgmr.msra.gmra.mrb[26].mxu0 %v8439_v52  ;;  %5380 = vmatmul.mubr.f32.vlgmr.msra.gmra.mrb[40].mxu1 %v8439_v52 }
 0x79b   :  { %6617 = vmatpush1.bf16.msra.mxu0 %v7739_v58  ;;  %6648 = vmatpush3.bf16.msra.mxu1 %v7741_v61 }
 0x79c   :  { %6619 = vmatprep.subr.bf16.mxu0 %v8960_v45  ;;  %6649 = vmatprep.subr.bf16.mxu1 %v8931_v59 }
 0x79d   :  { %3198 = vmatprep.mubr.f32.mxu0 %v8933_v38  ;;  %5414 = vmatprep.mubr.msk.f32.mxu1 %vm7333_vm2, %v8933_v38 }
 0x79f   :  { %6621 = vmatpush1.bf16.msra.mxu0 %v8961_v54  ;;  %6651 = vmatpush3.bf16.msra.mxu1 %v8962_v55 }
 0x7a0   :  { %6623 = vmatprep.subr.bf16.mxu0 %v8963_v47  ;;  %6652 = vmatprep.subr.bf16.mxu1 %v8931_v59 }
 0x7a3   :  { %6625 = vmatpush1.bf16.msra.mxu0 %v8964_v43  ;;  %6654 = vmatpush3.bf16.msra.mxu1 %v8965_v44 }
 0x7a4   :  { %6627 = vmatprep.subr.bf16.mxu0 %v8966_v48  ;;  %6655 = vmatprep.subr.bf16.mxu1 %v8931_v59 }
 0x7a7   :  { %6629 = vmatpush1.bf16.msra.mxu0 %v8967_v29  ;;  %6657 = vmatpush3.bf16.msra.mxu1 %v8968_v34 }
 0x7a8   :  { %6631 = vmatprep.subr.bf16.mxu0 %v8969_v22  ;;  %6658 = vmatprep.subr.bf16.mxu1 %v8931_v59 }
 0x7ab   :  { %6633 = vmatpush1.bf16.msra.mxu0 %v7784_v0  ;;  %6660 = vmatpush3.bf16.msra.mxu1 %v7786_v14 }
 0x7ac   :  { %6635 = vmatprep.subr.bf16.mxu0 %v8970_v24  ;;  %6661 = vmatprep.subr.bf16.mxu1 %v8931_v59 }
 0x7af   :  { %6637 = vmatpush1.bf16.msra.mxu0 %v8971_v57  ;;  %6663 = vmatpush3.bf16.msra.mxu1 %v7796_v32 }
 0x7b0   :  { %6639 = vmatprep.subr.bf16.mxu0 %v7800_v5  ;;  %6664 = vmatprep.subr.bf16.mxu1 %v8931_v59 }
 0x7b3   :  { %6641 = vmatpush1.bf16.msra.mxu0 %v7804_v33  ;;  %6666 = vmatpush3.bf16.msra.mxu1 %v7806_v4 }
 0x7b4   :  { %6643 = vmatprep.subr.bf16.mxu0 %v7810_v46  ;;  %6667 = vmatprep.subr.bf16.mxu1 %v8931_v59 }
 0x7b7   :  { %6645 = vmatpush1.bf16.msra.mxu0 %v7814_v2  ;;  %6669 = vmatpush3.bf16.msra.mxu1 %v7816_v13 }
 0x7b8   :  { %6671 = vmatprep.subr.bf16.mxu0 %v7479_v7  ;;  %6702 = vmatprep.subr.bf16.mxu1 %v8931_v59 }
 0x7ba   :  { %3199 = vmatmul.mubr.f32.vlgmr.msra.gmra.mrb[26].mxu0 %v8433_v17  ;;  %5415 = vmatmul.mubr.f32.vlgmr.msra.gmra.mrb[42].mxu1 %v8433_v17 }
 0x7bb   :  { %6673 = vmatpush1.bf16.msra.mxu0 %v7482_v10  ;;  %6704 = vmatpush3.bf16.msra.mxu1 %v7515_v35 }
 0x7bc   :  { %6675 = vmatprep.subr.bf16.mxu0 %v7489_v15  ;;  %6705 = vmatprep.subr.bf16.mxu1 %v8931_v59 }
 0x7bd   :  { %3356 = vmatprep.mubr.f32.mxu0 %v8933_v38  ;;  %5449 = vmatprep.mubr.msk.f32.mxu1 %vm7333_vm2, %v8933_v38 }
 0x7bf   :  { %6677 = vmatpush1.bf16.msra.mxu0 %v7492_v18  ;;  %6707 = vmatpush3.bf16.msra.mxu1 %v7526_v41 }
 0x7c0   :  { %6679 = vmatprep.subr.bf16.mxu0 %v7495_v19  ;;  %6708 = vmatprep.subr.bf16.mxu1 %v8931_v59 }
 0x7c3   :  { %6681 = vmatpush1.bf16.msra.mxu0 %v7506_v26  ;;  %6710 = vmatpush3.bf16.msra.mxu1 %v7543_v51 }
 0x7c4   :  { %6683 = vmatprep.subr.bf16.mxu0 %v7510_v28  ;;  %6711 = vmatprep.subr.bf16.mxu1 %v8931_v59 }
 0x7c7   :  { %6685 = vmatpush1.bf16.msra.mxu0 %v7523_v39  ;;  %6713 = vmatpush3.bf16.msra.mxu1 %v7563_v62 }
 0x7c8   :  { %6687 = vmatprep.subr.bf16.mxu0 %v7529_v42  ;;  %6714 = vmatprep.subr.bf16.mxu1 %v8931_v59 }
 0x7cb   :  { %6689 = vmatpush1.bf16.msra.mxu0 %v9115_v50  ;;  %6716 = vmatpush3.bf16.msra.mxu1 %v9116_v6 }
 0x7cc   :  { %6691 = vmatprep.subr.bf16.mxu0 %v9117_v16  ;;  %6717 = vmatprep.subr.bf16.mxu1 %v8931_v59 }
 0x7cf   :  { %6693 = vmatpush1.bf16.msra.mxu0 %v9118_v11  ;;  %6719 = vmatpush3.bf16.msra.mxu1 %v9119_v30 }
 0x7d0   :  { %6695 = vmatprep.subr.bf16.mxu0 %v9120_v20  ;;  %6720 = vmatprep.subr.bf16.mxu1 %v8931_v59 }
 0x7d3   :  { %6697 = vmatpush1.bf16.msra.mxu0 %v9121_v60  ;;  %6722 = vmatpush3.bf16.msra.mxu1 %v9122_v21 }
 0x7d4   :  { %6699 = vmatprep.subr.bf16.mxu0 %v9123_v56  ;;  %6723 = vmatprep.subr.bf16.mxu1 %v8931_v59  ;;  %v9151_v56 = vld [vmem:[#allocation51_spill] sm:$0xff] }
 0x7d7   :  { %6701 = vmatpush1.bf16.msra.mxu0 %v9124_v25  ;;  %6725 = vmatpush3.bf16.msra.mxu1 %v9125_v23  ;;  %v9138_v23 = vld [vmem:[#allocation38_spill] sm:$0xff] }
 0x7d8   :  { %6727 = vmatprep.subr.bf16.mxu0 %v9126_v27  ;;  %6758 = vmatprep.subr.bf16.mxu1 %v8931_v59  ;;  %v9137_v27 = vld [vmem:[#allocation37_spill] sm:$0xff] }
 0x7da   :  { %3357 = vmatmul.mubr.f32.vlgmr.msra.gmra.mrb[2].mxu0 %v8439_v52  ;;  %5450 = vmatmul.mubr.f32.vlgmr.msra.gmra.mrb[44].mxu1 %v8439_v52 }
 0x7db   :  { %6729 = vmatpush1.bf16.msra.mxu0 %v9127_v49  ;;  %6760 = vmatpush3.bf16.msra.mxu1 %v9128_v40  ;;  %v9134_v40 = vld [vmem:[#allocation34_spill] sm:$0xff]  ;;  %v9136_v49 = vld [vmem:[#allocation36_spill] sm:$0xff] }
 0x7dc   :  { %6731 = vmatprep.subr.bf16.mxu0 %v9129_v31  ;;  %6761 = vmatprep.subr.bf16.mxu1 %v8931_v59  ;;  %v9135_v31 = vld [vmem:[#allocation35_spill] sm:$0xff] }
 0x7dd   :  { %3514 = vmatprep.mubr.f32.mxu0 %v8933_v38  ;;  %5484 = vmatprep.mubr.msk.f32.mxu1 %vm7333_vm2, %v8933_v38 }
 0x7df   :  { %6733 = vmatpush1.bf16.msra.mxu0 %v9130_v12  ;;  %6763 = vmatpush3.bf16.msra.mxu1 %v9131_v63  ;;  %v9139_v63 = vld [vmem:[#allocation39_spill] sm:$0xff]  ;;  %v9141_v12 = vld [vmem:[#allocation41_spill] sm:$0xff] }
 0x7e0   :  { %6735 = vmatprep.subr.bf16.mxu0 %v9132_v36  ;;  %6764 = vmatprep.subr.bf16.mxu1 %v8931_v59  ;;  %v9140_v36 = vld [vmem:[#allocation40_spill] sm:$0xff] }
 0x7e3   :  { %6737 = vmatpush1.bf16.msra.mxu0 %v9133_v8  ;;  %6766 = vmatpush3.bf16.msra.mxu1 %v9134_v40  ;;  %v9142_v40 = vld [vmem:[#allocation42_spill] sm:$0xff]  ;;  %v9144_v8 = vld [vmem:[#allocation44_spill] sm:$0xff] }
 0x7e4   :  { %6739 = vmatprep.subr.bf16.mxu0 %v9135_v31  ;;  %6767 = vmatprep.subr.bf16.mxu1 %v8931_v59  ;;  %v9143_v31 = vld [vmem:[#allocation43_spill] sm:$0xff] }
 0x7e7   :  { %6741 = vmatpush1.bf16.msra.mxu0 %v9136_v49  ;;  %6769 = vmatpush3.bf16.msra.mxu1 %v9137_v27  ;;  %v9145_v27 = vld [vmem:[#allocation45_spill] sm:$0xff]  ;;  %v9147_v49 = vld [vmem:[#allocation47_spill] sm:$0xff] }
 0x7e8   :  { %6743 = vmatprep.subr.bf16.mxu0 %v9138_v23  ;;  %6770 = vmatprep.subr.bf16.mxu1 %v8931_v59  ;;  %v9146_v23 = vld [vmem:[#allocation46_spill] sm:$0xff] }
 0x7eb   :  { %6745 = vmatpush1.bf16.msra.mxu0 %v9139_v63  ;;  %6772 = vmatpush3.bf16.msra.mxu1 %v9140_v36  ;;  %v9148_v36 = vld [vmem:[#allocation48_spill] sm:$0xff]  ;;  %v9150_v63 = vld [vmem:[#allocation50_spill] sm:$0xff] }
 0x7ec   :  { %6747 = vmatprep.subr.bf16.mxu0 %v9141_v12  ;;  %6773 = vmatprep.subr.bf16.mxu1 %v8931_v59  ;;  %v9149_v12 = vld [vmem:[#allocation49_spill] sm:$0xff] }
 0x7ef   :  { %6749 = vmatpush1.bf16.msra.mxu0 %v9142_v40  ;;  %6775 = vmatpush3.bf16.msra.mxu1 %v9143_v31 }
 0x7f0   :  { %6751 = vmatprep.subr.bf16.mxu0 %v9144_v8  ;;  %6776 = vmatprep.subr.bf16.mxu1 %v8931_v59 }
 0x7f3   :  { %6753 = vmatpush1.bf16.msra.mxu0 %v9145_v27  ;;  %6778 = vmatpush3.bf16.msra.mxu1 %v9146_v23 }
 0x7f4   :  { %6755 = vmatprep.subr.bf16.mxu0 %v9147_v49  ;;  %6779 = vmatprep.subr.bf16.mxu1 %v8931_v59  ;;  %v9152_v49 = vld [vmem:[#allocation73_spill] sm:$0xff] }
 0x7f7   :  { %6757 = vmatpush1.bf16.msra.mxu0 %v9148_v36  ;;  %6781 = vmatpush3.bf16.msra.mxu1 %v9149_v12 }
 0x7f8   :  { %6783 = vmatprep.subr.bf16.mxu0 %v9150_v63  ;;  %6814 = vmatprep.subr.bf16.mxu1 %v8931_v59 }
 0x86d   :  { %v3130_v31 = vpop.f32.mrb[40].mxu1 }
 0x86e   :  { %v5381_v8 = vpop.f32.mrb[41].mxu1  ;;  %v3131_v16 = vadd.f32 %v3130_v31, %v7918_v9 }
 0x88d   :  { %v3200_v40 = vpop.f32.mrb[26].mxu0  ;;  %v3271_v25 = vpop.f32.mrb[42].mxu1 }
 0x88e   :  { %v7056_v27 = vadd.f32 %v3200_v40, %v9151_v56  ;;  %v3202_v21 = vpop.f32.mrb[27].mxu0  ;;  %v5416_v23 = vpop.f32.mrb[43].mxu1  ;;  %v3285_v63 = vadd.f32 %v8427_v3, %v3271_v25 }
 0x88f   :  { %v7057_v20 = vadd.f32 %v3202_v21, %v9152_v49 }
 0x890   :  { %v3276_v60 = vmul.f32 0.5, %v7056_v27 }
 0x891   :  { %v3281_v30 = vmul.f32 0.5, %v7057_v20 }
 0x892   :  { %7172 = vtanh.f32 %v3276_v60 }
 0x893   :  { %7174 = vtanh.f32 %v3281_v30 }
 0x89c   :  { %v7173_v36 = vpop.eup %7172 }
 0x89d   :  { %v3278_v11 = vmul.f32 0.5, %v7173_v36  ;;  %v7175_v50 = vpop.eup %7174 }
 0x89e   :  { %v3283_v40 = vmul.f32 0.5, %v7175_v50 }
 0x89f   :  { %v3279_v12 = vadd.f32 0.5, %v3278_v11 }
 0x8a0   :  { %v3284_v49 = vadd.f32 0.5, %v3283_v40 }
 0x8a1   :  { %v3286_v8 = vmul.f32 %v3285_v63, %v3279_v12 }
 0x8a3   :  { %v3287_v6 = vadd.f32 %v3286_v8, %v3131_v16  ;;  %v9153_v8 = vld [vmem:[#allocation52_spill] sm:$0xff] }
 0x8a5   :  { %7176 = vtanh.f32 %v3287_v6 }
 0x8ad   :  { %v3358_v56 = vpop.f32.mrb[2].mxu0  ;;  %v3429_v23 = vpop.f32.mrb[44].mxu1 }
 0x8ae   :  { %v7032_v60 = vadd.f32 %v3358_v56, %v8997_v37  ;;  %v3360_v27 = vpop.f32.mrb[3].mxu0  ;;  %v5451_v21 = vpop.f32.mrb[45].mxu1  ;;  %v3443_v63 = vadd.f32 %v8179_v1, %v3429_v23  ;;  %v9167_v1 = vld [vmem:[#allocation28_spill] sm:$0xff]  ;;  %v9169_v23 = vld [vmem:[#allocation30_spill] sm:$0xff] }
 0x8af   :  { %v7177_v20 = vpop.eup %7176  ;;  %v7033_v16 = vadd.f32 %v3360_v27, %v8958_v53  ;;  %v9170_v27 = vld [vmem:[#allocation31_spill] sm:$0xff] }
 0x8b0   :  { %v3289_v11 = vsub.f32 %v8433_v17, %v7177_v20  ;;  %v3434_v36 = vmul.f32 0.5, %v7032_v60 }
 0x8b1   :  { %v3439_v6 = vmul.f32 0.5, %v7033_v16  ;;  %v9172_v16 = vld [vmem:[#allocation33_spill] sm:$0xff] }
 0x8b2   :  { %v3290_v25 = vmul.f32 %v3289_v11, %v3284_v49  ;;  %7178 = vtanh.f32 %v3434_v36 }
 0x8b3   :  { %7180 = vtanh.f32 %v3439_v6  ;;  %v9173_v6 = vld [vmem:[#allocation34_spill] sm:$0xff] }
 0x8b4   :  { %v8558_v30 = vadd.f32 %v7177_v20, %v3290_v25  ;;  %v9171_v25 = vld [vmem:[#allocation32_spill] sm:$0xff] }
 0x8bc   :  { %v7179_v31 = vpop.eup %7178 }
 0x8bd   :  { %v3436_v50 = vmul.f32 0.5, %v7179_v31  ;;  %v7181_v40 = vpop.eup %7180  ;;  %v9174_v31 = vld [vmem:[#allocation35_spill] sm:$0xff] }
 0x8be   :  { %v3441_v17 = vmul.f32 0.5, %v7181_v40  ;;  %v9181_v40 = vld [vmem:[#allocation42_spill] sm:$0xff] }
 0x8bf   :  { %v3437_v12 = vadd.f32 0.5, %v3436_v50  ;;  %v9175_v50 = vld [vmem:[#allocation36_spill] sm:$0xff] }
 0x8c0   :  { %v3442_v49 = vadd.f32 0.5, %v3441_v17  ;;  %v9182_v17 = vld [vmem:[#allocation43_spill] sm:$0xff] }
 0x8c1   :  { %v3444_v56 = vmul.f32 %v3443_v63, %v3437_v12  ;;  %v9176_v12 = vld [vmem:[#allocation37_spill] sm:$0xff]  ;;  %v9177_v63 = vld [vmem:[#allocation38_spill] sm:$0xff] }
 0x8c3   :  { %v3445_v21 = vadd.f32 %v3444_v56, %v9153_v8  ;;  %v9178_v56 = vld [vmem:[#allocation39_spill] sm:$0xff]  ;;  %v9179_v8 = vld [vmem:[#allocation40_spill] sm:$0xff] }
 0x8c5   :  { %7182 = vtanh.f32 %v3445_v21  ;;  %v9180_v21 = vld [vmem:[#allocation41_spill] sm:$0xff] }
 0x8cf   :  { %v7183_v60 = vpop.eup %7182 }
 0x8d0   :  { %v3447_v20 = vsub.f32 %v8439_v52, %v7183_v60  ;;  %v9168_v52 = vld [vmem:[#allocation29_spill] sm:$0xff] }
 0x8d2   :  { %v3448_v11 = vmul.f32 %v3447_v20, %v3442_v49  ;;  %v9184_v49 = vld [vmem:[#allocation45_spill] sm:$0xff]  ;;  %v9185_v20 = vld [vmem:[#allocation46_spill] sm:$0xff] }
 0x8d4   :  { %v8564_v36 = vadd.f32 %v7183_v60, %v3448_v11  ;;  %v9183_v60 = vld [vmem:[#allocation44_spill] sm:$0xff]  ;;  %v9186_v11 = vld [vmem:[#allocation47_spill] sm:$0xff] }
 0x8d6   :  { %3515 = vmatmul.mubr.f32.vlgmr.msra.gmra.mrb[28].mxu0 %v8564_v36  ;;  %5485 = vmatmul.mubr.f32.vlgmr.msra.gmra.mrb[46].mxu1 %v8564_v36 }
 0x8d7   :  { %6785 = vmatpush1.bf16.msra.mxu0 %v7739_v58  ;;  %6816 = vmatpush3.bf16.msra.mxu1 %v7741_v61 }
 0x8d8   :  { %6787 = vmatprep.subr.bf16.mxu0 %v8960_v45  ;;  %6817 = vmatprep.subr.bf16.mxu1 %v8931_v59 }
 0x8d9   :  { %3655 = vmatprep.mubr.f32.mxu0 %v8933_v38  ;;  %5519 = vmatprep.mubr.msk.f32.mxu1 %vm7333_vm2, %v8933_v38 }
 0x8db   :  { %6789 = vmatpush1.bf16.msra.mxu0 %v8961_v54  ;;  %6819 = vmatpush3.bf16.msra.mxu1 %v8962_v55 }
 0x8dc   :  { %6791 = vmatprep.subr.bf16.mxu0 %v8963_v47  ;;  %6820 = vmatprep.subr.bf16.mxu1 %v8931_v59 }
 0x8df   :  { %6793 = vmatpush1.bf16.msra.mxu0 %v8964_v43  ;;  %6822 = vmatpush3.bf16.msra.mxu1 %v8965_v44 }
 0x8e0   :  { %6795 = vmatprep.subr.bf16.mxu0 %v8966_v48  ;;  %6823 = vmatprep.subr.bf16.mxu1 %v8931_v59 }
 0x8e3   :  { %6797 = vmatpush1.bf16.msra.mxu0 %v8967_v29  ;;  %6825 = vmatpush3.bf16.msra.mxu1 %v8968_v34 }
 0x8e4   :  { %6799 = vmatprep.subr.bf16.mxu0 %v8969_v22  ;;  %6826 = vmatprep.subr.bf16.mxu1 %v8931_v59 }
 0x8e7   :  { %6801 = vmatpush1.bf16.msra.mxu0 %v7784_v0  ;;  %6828 = vmatpush3.bf16.msra.mxu1 %v7786_v14 }
 0x8e8   :  { %6803 = vmatprep.subr.bf16.mxu0 %v8970_v24  ;;  %6829 = vmatprep.subr.bf16.mxu1 %v8931_v59 }
 0x8eb   :  { %6805 = vmatpush1.bf16.msra.mxu0 %v8971_v57  ;;  %6831 = vmatpush3.bf16.msra.mxu1 %v7796_v32 }
 0x8ec   :  { %6807 = vmatprep.subr.bf16.mxu0 %v7800_v5  ;;  %6832 = vmatprep.subr.bf16.mxu1 %v8931_v59 }
 0x8ef   :  { %6809 = vmatpush1.bf16.msra.mxu0 %v7804_v33  ;;  %6834 = vmatpush3.bf16.msra.mxu1 %v7806_v4 }
 0x8f0   :  { %6811 = vmatprep.subr.bf16.mxu0 %v7810_v46  ;;  %6835 = vmatprep.subr.bf16.mxu1 %v8931_v59 }
 0x8f3   :  { %6813 = vmatpush1.bf16.msra.mxu0 %v7814_v2  ;;  %6837 = vmatpush3.bf16.msra.mxu1 %v7816_v13 }
 0x8f4   :  { %6839 = vmatprep.subr.bf16.mxu0 %v7479_v7  ;;  %6870 = vmatprep.subr.bf16.mxu1 %v8931_v59  ;;  %v9154_v7 = vld [vmem:[#allocation15_spill] sm:$0xff] }
 0x8f6   :  { %3656 = vmatmul.mubr.f32.vlgmr.msra.gmra.mrb[28].mxu0 %v8558_v30  ;;  %5520 = vmatmul.mubr.f32.vlgmr.msra.gmra.mrb[48].mxu1 %v8558_v30 }
 0x8f7   :  { %6841 = vmatpush1.bf16.msra.mxu0 %v7482_v10  ;;  %6872 = vmatpush3.bf16.msra.mxu1 %v7515_v35  ;;  %v9155_v10 = vld [vmem:[#allocation20_spill] sm:$0xff] }
 0x8f8   :  { %6843 = vmatprep.subr.bf16.mxu0 %v7489_v15  ;;  %6873 = vmatprep.subr.bf16.mxu1 %v8931_v59  ;;  %v9156_v15 = vld [vmem:[#allocation16_spill] sm:$0xff] }
 0x8f9   :  { %3813 = vmatprep.mubr.f32.mxu0 %v8933_v38  ;;  %5554 = vmatprep.mubr.msk.f32.mxu1 %vm7333_vm2, %v8933_v38  ;;  %v9161_v35 = vld [vmem:[#allocation24_spill] sm:$0xff] }
 0x8fb   :  { %6845 = vmatpush1.bf16.msra.mxu0 %v7492_v18  ;;  %6875 = vmatpush3.bf16.msra.mxu1 %v7526_v41  ;;  %v9157_v18 = vld [vmem:[#allocation17_spill] sm:$0xff]  ;;  %v9163_v41 = vld [vmem:[#allocation22_spill] sm:$0xff] }
 0x8fc   :  { %6847 = vmatprep.subr.bf16.mxu0 %v7495_v19  ;;  %6876 = vmatprep.subr.bf16.mxu1 %v8931_v59  ;;  %v9158_v19 = vld [vmem:[#allocation23_spill] sm:$0xff] }
 0x8ff   :  { %6849 = vmatpush1.bf16.msra.mxu0 %v7506_v26  ;;  %6878 = vmatpush3.bf16.msra.mxu1 %v7543_v51  ;;  %v9159_v26 = vld [vmem:[#allocation18_spill] sm:$0xff] }
 0x900   :  { %6851 = vmatprep.subr.bf16.mxu0 %v7510_v28  ;;  %6879 = vmatprep.subr.bf16.mxu1 %v8931_v59  ;;  %v9160_v28 = vld [vmem:[#allocation19_spill] sm:$0xff]  ;;  %v9165_v51 = vld [vmem:[#allocation26_spill] sm:$0xff] }
 0x903   :  { %6853 = vmatpush1.bf16.msra.mxu0 %v7523_v39  ;;  %6881 = vmatpush3.bf16.msra.mxu1 %v7563_v62  ;;  %v9162_v39 = vld [vmem:[#allocation21_spill] sm:$0xff]  ;;  %v9166_v62 = vld [vmem:[#allocation27_spill] sm:$0xff] }
 0x904   :  { %6855 = vmatprep.subr.bf16.mxu0 %v7529_v42  ;;  %6882 = vmatprep.subr.bf16.mxu1 %v8931_v59  ;;  %v9164_v42 = vld [vmem:[#allocation25_spill] sm:$0xff] }
 0x907   :  { %6857 = vmatpush1.bf16.msra.mxu0 %v9154_v7  ;;  %6884 = vmatpush3.bf16.msra.mxu1 %v9155_v10  ;;  %v9187_v7 = vld [vmem:[#allocation48_spill] sm:$0xff]  ;;  %v9188_v10 = vld [vmem:[#allocation49_spill] sm:$0xff] }
 0x908   :  { %6859 = vmatprep.subr.bf16.mxu0 %v9156_v15  ;;  %6885 = vmatprep.subr.bf16.mxu1 %v8931_v59  ;;  %v9189_v15 = vld [vmem:[#allocation50_spill] sm:$0xff] }
 0x90b   :  { %6861 = vmatpush1.bf16.msra.mxu0 %v9157_v18  ;;  %6887 = vmatpush3.bf16.msra.mxu1 %v9158_v19 }
 0x90c   :  { %6863 = vmatprep.subr.bf16.mxu0 %v9159_v26  ;;  %6888 = vmatprep.subr.bf16.mxu1 %v8931_v59 }
 0x90f   :  { %6865 = vmatpush1.bf16.msra.mxu0 %v9160_v28  ;;  %6890 = vmatpush3.bf16.msra.mxu1 %v9161_v35  ;;  %v9190_v35 = vld [vmem:[#allocation51_spill] sm:$0xff] }
 0x910   :  { %6867 = vmatprep.subr.bf16.mxu0 %v9162_v39  ;;  %6891 = vmatprep.subr.bf16.mxu1 %v8931_v59 }
 0x913   :  { %6869 = vmatpush1.bf16.msra.mxu0 %v9163_v41  ;;  %6893 = vmatpush3.bf16.msra.mxu1 %v9164_v42 }
 0x914   :  { %6895 = vmatprep.subr.bf16.mxu0 %v9165_v51  ;;  %6926 = vmatprep.subr.bf16.mxu1 %v8931_v59 }
 0x916   :  { %3814 = vmatmul.mubr.f32.vlgmr.msra.gmra.mrb[0].mxu0 %v8564_v36  ;;  %5555 = vmatmul.mubr.f32.vlgmr.msra.gmra.mrb[50].mxu1 %v8564_v36 }
 0x917   :  { %6897 = vmatpush1.bf16.msra.mxu0 %v9166_v62  ;;  %6928 = vmatpush3.bf16.msra.mxu1 %v9167_v1  ;;  %v9191_v62 = vld [vmem:[#allocation73_spill] sm:$0xff] }
 0x918   :  { %6899 = vmatprep.subr.bf16.mxu0 %v9168_v52  ;;  %6929 = vmatprep.subr.bf16.mxu1 %v8931_v59 }
 0x919   :  { %3971 = vmatprep.mubr.f32.mxu0 %v8933_v38  ;;  %5589 = vmatprep.mubr.msk.f32.mxu1 %vm7333_vm2, %v8933_v38 }
 0x91b   :  { %6901 = vmatpush1.bf16.msra.mxu0 %v9169_v23  ;;  %6931 = vmatpush3.bf16.msra.mxu1 %v9170_v27 }
 0x91c   :  { %6903 = vmatprep.subr.bf16.mxu0 %v9171_v25  ;;  %6932 = vmatprep.subr.bf16.mxu1 %v8931_v59 }
 0x91f   :  { %6905 = vmatpush1.bf16.msra.mxu0 %v9172_v16  ;;  %6934 = vmatpush3.bf16.msra.mxu1 %v9173_v6 }
 0x920   :  { %6907 = vmatprep.subr.bf16.mxu0 %v9174_v31  ;;  %6935 = vmatprep.subr.bf16.mxu1 %v8931_v59 }
 0x923   :  { %6909 = vmatpush1.bf16.msra.mxu0 %v9175_v50  ;;  %6937 = vmatpush3.bf16.msra.mxu1 %v9176_v12 }
 0x924   :  { %6911 = vmatprep.subr.bf16.mxu0 %v9177_v63  ;;  %6938 = vmatprep.subr.bf16.mxu1 %v8931_v59 }
 0x927   :  { %6913 = vmatpush1.bf16.msra.mxu0 %v9178_v56  ;;  %6940 = vmatpush3.bf16.msra.mxu1 %v9179_v8 }
 0x928   :  { %6915 = vmatprep.subr.bf16.mxu0 %v9180_v21  ;;  %6941 = vmatprep.subr.bf16.mxu1 %v8931_v59 }
 0x92b   :  { %6917 = vmatpush1.bf16.msra.mxu0 %v9181_v40  ;;  %6943 = vmatpush3.bf16.msra.mxu1 %v9182_v17 }
 0x92c   :  { %6919 = vmatprep.subr.bf16.mxu0 %v9183_v60  ;;  %6944 = vmatprep.subr.bf16.mxu1 %v8931_v59 }
 0x92f   :  { %6921 = vmatpush1.bf16.msra.mxu0 %v9184_v49  ;;  %6946 = vmatpush3.bf16.msra.mxu1 %v9185_v20 }
 0x930   :  { %6923 = vmatprep.subr.bf16.mxu0 %v9186_v11  ;;  %6947 = vmatprep.subr.bf16.mxu1 %v8931_v59 }
 0x933   :  { %6925 = vmatpush1.bf16.msra.mxu0 %v9187_v7  ;;  %6949 = vmatpush3.bf16.msra.mxu1 %v9188_v10 }
 0x934   :  { %6951 = vmatprep.subr.bf16.mxu0 %v9189_v15  ;;  %6982 = vmatprep.subr.bf16.mxu1 %v8931_v59 }
 0x9a9   :  { %v3587_v18 = vpop.f32.mrb[46].mxu1 }
 0x9aa   :  { %v5486_v19 = vpop.f32.mrb[47].mxu1  ;;  %v3588_v6 = vadd.f32 %v3587_v18, %v7918_v9 }
 0x9c9   :  { %v3657_v26 = vpop.f32.mrb[28].mxu0  ;;  %v3728_v28 = vpop.f32.mrb[48].mxu1 }
 0x9ca   :  { %v7058_v39 = vadd.f32 %v3657_v26, %v9190_v35  ;;  %v3659_v41 = vpop.f32.mrb[29].mxu0  ;;  %v5521_v42 = vpop.f32.mrb[49].mxu1  ;;  %v3742_v16 = vadd.f32 %v8427_v3, %v3728_v28 }
 0x9cb   :  { %v7059_v1 = vadd.f32 %v3659_v41, %v9191_v62  ;;  %v9192_v42 = vld [vmem:[#allocation53_spill] sm:$0xff] }
 0x9cc   :  { %v3733_v51 = vmul.f32 0.5, %v7058_v39 }
 0x9cd   :  { %v3738_v52 = vmul.f32 0.5, %v7059_v1 }
 0x9ce   :  { %7184 = vtanh.f32 %v3733_v51 }
 0x9cf   :  { %7186 = vtanh.f32 %v3738_v52 }
 0x9d8   :  { %v7185_v23 = vpop.eup %7184 }
 0x9d9   :  { %v3735_v27 = vmul.f32 0.5, %v7185_v23  ;;  %v7187_v12 = vpop.eup %7186 }
 0x9da   :  { %v3740_v63 = vmul.f32 0.5, %v7187_v12 }
 0x9db   :  { %v3736_v25 = vadd.f32 0.5, %v3735_v27 }
 0x9dc   :  { %v3741_v49 = vadd.f32 0.5, %v3740_v63 }
 0x9dd   :  { %v3743_v31 = vmul.f32 %v3742_v16, %v3736_v25 }
 0x9df   :  { %v3744_v50 = vadd.f32 %v3743_v31, %v3588_v6 }
 0x9e1   :  { %7188 = vtanh.f32 %v3744_v50 }
 0x9e9   :  { %v3815_v56 = vpop.f32.mrb[0].mxu0  ;;  %v3886_v8 = vpop.f32.mrb[50].mxu1 }
 0x9ea   :  { %v7030_v21 = vadd.f32 %v3815_v56, %v8997_v37  ;;  %v3817_v40 = vpop.f32.mrb[1].mxu0  ;;  %v5556_v17 = vpop.f32.mrb[51].mxu1  ;;  %v7204_v37 = vld [vmem:[%s8760_s4] ss:$0 sm:$0xff] }
 0x9eb   :  { %v7189_v60 = vpop.eup %7188  ;;  %v7031_v15 = vadd.f32 %v3817_v40, %v8958_v53  ;;  %v3900_v39 = vadd.f32 %v7204_v37, %v3886_v8 }
 0x9ec   :  { %v3746_v20 = vsub.f32 %v8558_v30, %v7189_v60  ;;  %v3891_v11 = vmul.f32 0.5, %v7030_v21 }
 0x9ed   :  { %v3896_v18 = vmul.f32 0.5, %v7031_v15 }
 0x9ee   :  { %v3747_v7 = vmul.f32 %v3746_v20, %v3741_v49  ;;  %7190 = vtanh.f32 %v3891_v11 }
 0x9ef   :  { %7192 = vtanh.f32 %v3896_v18 }
 0x9f0   :  { %v8683_v10 = vadd.f32 %v7189_v60, %v3747_v7 }
 0x9f8   :  { %v7191_v19 = vpop.eup %7190 }
 0x9f9   :  { %v3893_v26 = vmul.f32 0.5, %v7191_v19  ;;  %v7193_v51 = vpop.eup %7192 }
 0x9fa   :  { %v3898_v1 = vmul.f32 0.5, %v7193_v51 }
 0x9fb   :  { %v3894_v28 = vadd.f32 0.5, %v3893_v26 }
 0x9fc   :  { %v3899_v23 = vadd.f32 0.5, %v3898_v1 }
 0x9fd   :  { %v3901_v41 = vmul.f32 %v3900_v39, %v3894_v28  ;;  %v4338_v28 = vld [vmem:[%s8766_s10] ss:$0 sm:$0xff] }
 0x9ff   :  { %v3902_v30 = vadd.f32 %v3901_v41, %v9192_v42 }
 0xa01   :  { %7194 = vtanh.f32 %v3902_v30 }
 0xa0b   :  { %v7195_v52 = vpop.eup %7194 }
 0xa0c   :  { %v3904_v53 = vsub.f32 %v8564_v36, %v7195_v52 }
 0xa0e   :  { %v3905_v27 = vmul.f32 %v3904_v53, %v3899_v23 }
 0xa10   :  { %v3906_v25 = vadd.f32 %v7195_v52, %v3905_v27 }
 0xa12   :  { %3972 = vmatmul.mubr.f32.vlgmr.msra.gmra.mrb[30].mxu0 %v3906_v25  ;;  %5590 = vmatmul.mubr.f32.vlgmr.msra.gmra.mrb[52].mxu1 %v3906_v25 }
 0xa13   :  { %6953 = vmatpush1.bf16.msra.mxu0 %v7739_v58  ;;  %6984 = vmatpush3.bf16.msra.mxu1 %v7741_v61  ;;  %v4206_v58 = vld [vmem:[#allocation8] sm:$0xff]  ;;  %v4207_v61 = vld [vmem:[#allocation8 + $0x8] sm:$0xff] }
 0xa14   :  { %6955 = vmatprep.subr.bf16.mxu0 %v8960_v45  ;;  %6985 = vmatprep.subr.bf16.mxu1 %v8931_v59  ;;  %v4214_v45 = vld [vmem:[#allocation8 + $0x40] sm:$0xff] }
 0xa15   :  { %4112 = vmatprep.mubr.f32.mxu0 %v8933_v38  ;;  %5624 = vmatprep.mubr.msk.f32.mxu1 %vm7333_vm2, %v8933_v38 }
 0xa17   :  { %6957 = vmatpush1.bf16.msra.mxu0 %v8961_v54  ;;  %6987 = vmatpush3.bf16.msra.mxu1 %v8962_v55  ;;  %v4215_v54 = vld [vmem:[#allocation8 + $0x48] sm:$0xff] }
 0xa18   :  { %6959 = vmatprep.subr.bf16.mxu0 %v8963_v47  ;;  %6988 = vmatprep.subr.bf16.mxu1 %v8931_v59  ;;  %v7019_v55 = vpack.c.bf16 %v4215_v54, %v4214_v45  ;;  %v4216_v47 = vld [vmem:[#allocation8 + $0x50] sm:$0xff] }
 0xa1b   :  { %6961 = vmatpush1.bf16.msra.mxu0 %v8964_v43  ;;  %6990 = vmatpush3.bf16.msra.mxu1 %v8965_v44  ;;  %v4217_v43 = vld [vmem:[#allocation8 + $0x58] sm:$0xff] }
 0xa1c   :  { %6963 = vmatprep.subr.bf16.mxu0 %v8966_v48  ;;  %6991 = vmatprep.subr.bf16.mxu1 %v8931_v59  ;;  %v7022_v44 = vpack.c.bf16 %v4217_v43, %v4216_v47  ;;  %v4218_v48 = vld [vmem:[#allocation8 + $0x60] sm:$0xff] }
 0xa1f   :  { %6965 = vmatpush1.bf16.msra.mxu0 %v8967_v29  ;;  %6993 = vmatpush3.bf16.msra.mxu1 %v8968_v34  ;;  %v4219_v29 = vld [vmem:[#allocation8 + $0x68] sm:$0xff] }
 0xa20   :  { %6967 = vmatprep.subr.bf16.mxu0 %v8969_v22  ;;  %6994 = vmatprep.subr.bf16.mxu1 %v8931_v59  ;;  %v7025_v34 = vpack.c.bf16 %v4219_v29, %v4218_v48  ;;  %v4220_v22 = vld [vmem:[#allocation8 + $0x70] sm:$0xff] }
 0xa23   :  { %6969 = vmatpush1.bf16.msra.mxu0 %v7784_v0  ;;  %6996 = vmatpush3.bf16.msra.mxu1 %v7786_v14  ;;  %v7007_v0 = vpack.c.bf16 %v4207_v61, %v4206_v58  ;;  %v4208_v14 = vld [vmem:[#allocation8 + $0x10] sm:$0xff] }
 0xa24   :  { %6971 = vmatprep.subr.bf16.mxu0 %v8970_v24  ;;  %6997 = vmatprep.subr.bf16.mxu1 %v8931_v59  ;;  %v4221_v24 = vld [vmem:[#allocation8 + $0x78] sm:$0xff] }
 0xa27   :  { %6973 = vmatpush1.bf16.msra.mxu0 %v8971_v57  ;;  %6999 = vmatpush3.bf16.msra.mxu1 %v7796_v32  ;;  %v4209_v32 = vld [vmem:[#allocation8 + $0x18] sm:$0xff]  ;;  %v7028_v57 = vpack.c.bf16 %v4221_v24, %v4220_v22 }
 0xa28   :  { %6975 = vmatprep.subr.bf16.mxu0 %v7800_v5  ;;  %7000 = vmatprep.subr.bf16.mxu1 %v8931_v59  ;;  %v4210_v5 = vld [vmem:[#allocation8 + $0x20] sm:$0xff] }
 0xa2b   :  { %6977 = vmatpush1.bf16.msra.mxu0 %v7804_v33  ;;  %7002 = vmatpush3.bf16.msra.mxu1 %v7806_v4  ;;  %v4211_v33 = vld [vmem:[#allocation8 + $0x28] sm:$0xff] }
 0xa2c   :  { %6979 = vmatprep.subr.bf16.mxu0 %v7810_v46  ;;  %7003 = vmatprep.subr.bf16.mxu1 %v8931_v59  ;;  %v7013_v4 = vpack.c.bf16 %v4211_v33, %v4210_v5  ;;  %v4212_v46 = vld [vmem:[#allocation8 + $0x30] sm:$0xff] }
 0xa2f   :  { %6981 = vmatpush1.bf16.msra.mxu0 %v7814_v2  ;;  %7005 = vmatpush3.bf16.msra.mxu1 %v7816_v13  ;;  %v7010_v2 = vpack.c.bf16 %v4209_v32, %v4208_v14 }
 0xa30   :  { %7006 = vmatprep.subr.bf16.mxu0 %v8931_v59 }
 0xa32   :  { %4113 = vmatmul.mubr.f32.vlgmr.msra.gmra.mrb[30].mxu0 %v8683_v10  ;;  %5625 = vmatmul.mubr.f32.vlgmr.msra.gmra.mrb[54].mxu1 %v8683_v10 }
 0xa33   :  { %5659 = vmatprep.mubr.msk.f32.mxu0 %vm7333_vm2, %v8933_v38  ;;  %7008 = vmatpush3.bf16.msra.mxu0 %v7007_v0  ;;  %v4213_v38 = vld [vmem:[#allocation8 + $0x38] sm:$0xff] }
 0xa34   :  { %7009 = vmatprep.subr.bf16.mxu0 %v8931_v59  ;;  %v7016_v13 = vpack.c.bf16 %v4213_v38, %v4212_v46 }
 0xa37   :  { %7011 = vmatpush3.bf16.msra.mxu0 %v7010_v2 }
 0xa38   :  { %7012 = vmatprep.subr.bf16.mxu0 %v8931_v59 }
 0xa3b   :  { %7014 = vmatpush3.bf16.msra.mxu0 %v7013_v4 }
 0xa3c   :  { %7015 = vmatprep.subr.bf16.mxu0 %v8931_v59 }
 0xa3f   :  { %7017 = vmatpush3.bf16.msra.mxu0 %v7016_v13 }
 0xa40   :  { %7018 = vmatprep.subr.bf16.mxu0 %v8931_v59 }
 0xa43   :  { %7020 = vmatpush3.bf16.msra.mxu0 %v7019_v55 }
 0xa44   :  { %7021 = vmatprep.subr.bf16.mxu0 %v8931_v59 }
 0xa47   :  { %7023 = vmatpush3.bf16.msra.mxu0 %v7022_v44 }
 0xa48   :  { %7024 = vmatprep.subr.bf16.mxu0 %v8931_v59 }
 0xa4b   :  { %7026 = vmatpush3.bf16.msra.mxu0 %v7025_v34 }
 0xa4c   :  { %7027 = vmatprep.subr.bf16.mxu0 %v8931_v59 }
 0xa4f   :  { %7029 = vmatpush3.bf16.msra.mxu0 %v7028_v57 }
 0xae5   :  { %v4044_v36 = vpop.f32.mrb[52].mxu1 }
 0xae6   :  { %v5591_v16 = vpop.f32.mrb[53].mxu1  ;;  %v4045_v49 = vadd.f32 %v4044_v36, %v7918_v9 }
 0xb05   :  { %v4114_v6 = vpop.f32.mrb[30].mxu0  ;;  %v4185_v31 = vpop.f32.mrb[54].mxu1 }
 0xb06   :  { %v7060_v50 = vadd.f32 %v4114_v6, %v9190_v35  ;;  %v4116_v12 = vpop.f32.mrb[31].mxu0  ;;  %v5626_v63 = vpop.f32.mrb[55].mxu1  ;;  %v4199_v60 = vadd.f32 %v8427_v3, %v4185_v31 }
 0xb07   :  { %v7061_v8 = vadd.f32 %v4116_v12, %v9191_v62 }
 0xb08   :  { %v4190_v56 = vmul.f32 0.5, %v7060_v50 }
 0xb09   :  { %v4195_v21 = vmul.f32 0.5, %v7061_v8 }
 0xb0a   :  { %7196 = vtanh.f32 %v4190_v56 }
 0xb0b   :  { %7198 = vtanh.f32 %v4195_v21 }
 0xb14   :  { %v7197_v40 = vpop.eup %7196 }
 0xb15   :  { %v4192_v17 = vmul.f32 0.5, %v7197_v40  ;;  %v7199_v7 = vpop.eup %7198 }
 0xb16   :  { %v4197_v35 = vmul.f32 0.5, %v7199_v7 }
 0xb17   :  { %v4193_v59 = vadd.f32 0.5, %v4192_v17 }
 0xb18   :  { %v4198_v18 = vadd.f32 0.5, %v4197_v35 }
 0xb19   :  { %v4200_v20 = vmul.f32 %v4199_v60, %v4193_v59 }
 0xb1b   :  { %v4201_v11 = vadd.f32 %v4200_v20, %v4045_v49 }
 0xb1d   :  { %7200 = vtanh.f32 %v4201_v11 }
 0xb27   :  { %v7201_v15 = vpop.eup %7200 }
 0xb28   :  { %v4203_v19 = vsub.f32 %v8683_v10, %v7201_v15 }
 0xb2a   :  { %v4204_v26 = vmul.f32 %v4203_v19, %v4198_v18 }
 0xb2c   :  { %v4205_v62 = vadd.f32 %v7201_v15, %v4204_v26 }
 0xb2e   :  { %5660 = vmatmul.mubr.f32.vlgmr.msra.gmra.mrb[32].mxu0 %v4205_v62 }
 0xc01   :  { %v4295_v3 = vpop.f32.mrb[32].mxu0 }
 0xc02   :  { %v4296_v9 = vadd.f32 %v4338_v28, %v4295_v3  ;;  %v5661_v37 = vpop.f32.mrb[33].mxu0 }
 0xc04   :  { %4299 = vst [vmem:[#allocation10] sm:$0xff] %v4296_v9 }
 0xc05   :  { %7304 = shalt.err (!%p7301_p8)
}
 0xc06   :  { %s7305_s23 = scalar_lea.hbm %s8767_s11, 128 }
 0xc07   :  { %p7306_p9 = scmp.ne.s32.totalorder %s8767_s11, %s7305_s23  ;;  %p7309_p10 = scmp.lt.u32.totalorder %s7305_s23, %s8767_s11 }
 0xc09   :  { %p7311_p11 = pnand %p7309_p10, %p7306_p9 }
 0xc0b   :  { %7314 = shalt.err (!%p7311_p11)
}
 0xc0c   :  { %4309 = dma.vmem_to_hbm [thread:$0]  %s4307_s19, 128, %s8767_s11, [#allocation4]  }
 0xc0d   :  { %7321 = dma.done.wait [#allocation4], 128  }
 0xc0e   :  { %7322 = vsyncadd [#allocation4], 4294967168 }
 0xc0f   :  { %4313 = vsyncpa [#allocation3], 1 }
 0xc10   :  { %4314 = vsyncpa [#allocation6], 1 }
 0xc11   :  { %4315 = vsyncpa [#allocation9], 1 }
 0xc12   :  { %4316 = vsyncpa [#allocation4], 1 }

</bundles_post_ra>
